<compile_context>
chip_gen: v7x
topology: tpu7x:2x2x1
jax: 0.10.0
libtpu: 0.0.40
codegen_flags: <defaults>
</compile_context>

<pallas_src>
import jax
import jax.numpy as jnp
from jax.experimental import pallas as pl
from jax.experimental.pallas import tpu as pltpu
import numpy as np

# Module hyper-parameters (from LSTMTagger.__init__)
INPUT_DIM = 300
HIDDEN_DIM = 6
N_LAYERS = 2
SEQ_LEN = 70
BATCH = 10

NG = 4                    # number of gates; kernel lane order: i, f, o, g
GP = 8                    # per-gate lane padding (hidden 6 -> 8)
GPAD = NG * GP            # 32 gate lanes
GATE_PERM = (0, 1, 3, 2)  # PyTorch (i, f, g, o) -> kernel (i, f, o, g)
UNROLL = 5                # manual recurrence unroll (70 = 14 * 5)
HIGHEST = jax.lax.Precision.HIGHEST


def lstm_tagger_kernel(xp_ref, s0_ref, w0c_ref, w1c_ref, b1_ref,
                       wout_ref, bout_ref, out_ref):
    """All refs live in VMEM.  Layout: batch on sublanes, gates on lanes.

    xp_ref   : (T, BP, 32)  layer-0 gate pre-activations x @ W_ih0^T + b0,
                            time-major, gates (i,f,o,g) each padded 6->8 lanes.
    s0_ref   : (4, BP, 8)   initial [h0, c0, h1, c1], hidden padded 6->8 lanes.
    w0c_ref  : (6, BP, 32)  W_hh0 column k as a (BP,32) slab (gate-reordered,
                            gate-lane padded, replicated over batch sublanes).
    w1c_ref  : (12, BP, 32) [W_ih1 ; W_hh1] columns, same layout.
    b1_ref   : (BP, 32)     layer-1 bias (b_ih1 + b_hh1), same layout.
    wout_ref : (BP, 8)      output Linear weight (padded, batch-replicated).
    bout_ref : (1, 1)       output Linear bias.
    out_ref  : (BP, 1)      sigmoid(Linear(h1_last)); wrapper slices to (B, 1).
    """
    T = xp_ref.shape[0]
    K = w0c_ref.shape[0]          # = HIDDEN_DIM = 6

    # Loop-invariant layer-1 bias slab (pre-broadcast by the wrapper).
    b1 = b1_ref[...]              # (BP, 32)

    def tree_combine(parts):
        # Pairwise tree add (keeps the final combine shallow).
        while len(parts) > 1:
            nxt = [parts[i] + parts[i + 1] for i in range(0, len(parts) - 1, 2)]
            if len(parts) % 2:
                nxt.append(parts[-1])
            parts = nxt
        return parts[0]

    def multi_acc_sum(terms, n_acc):
        # Accumulate `terms` into n_acc independent partial sums, then tree-add.
        accs = list(terms[:n_acc])
        for idx in range(n_acc, len(terms)):
            accs[idx % n_acc] = accs[idx % n_acc] + terms[idx]
        return tree_combine(accs)

    def cell(gates, c_prev):
        # gates: (BP, 32); lanes [0:8)=i, [8:16)=f, [16:24)=o, [24:32)=g.
        sig = jax.nn.sigmoid(gates)                   # one EUP slab (2 vregs)
        g = jnp.tanh(gates[:, 3 * GP:4 * GP])         # (BP, 8)
        i = sig[:, 0 * GP:1 * GP]                     # static lane slices (XLU)
        f = sig[:, 1 * GP:2 * GP]
        o = sig[:, 2 * GP:3 * GP]
        c_new = f * c_prev + i * g
        h_new = o * jnp.tanh(c_new)
        return h_new, c_new

    def one_step(t, carry):
        h0, c0, h1, c1 = carry
        # --- layer 0: input projection precomputed; 6-wide hidden contraction
        # as lane-broadcast FMAs on the VPU, 4 independent accumulators.
        terms0 = [xp_ref[t]]                          # (BP, 32)
        for k in range(K):                            # static unroll
            terms0.append(h0[:, k:k + 1] * w0c_ref[k])
        g0 = multi_acc_sum(terms0, 4)
        h0, c0 = cell(g0, c0)
        # --- layer 1: 12 broadcast-FMA terms + bias, 4 accumulators.
        terms1 = [b1]
        for k in range(K):
            terms1.append(h0[:, k:k + 1] * w1c_ref[k])        # W_ih1 columns
        for k in range(K):
            terms1.append(h1[:, k:k + 1] * w1c_ref[K + k])    # W_hh1 columns
        g1 = multi_acc_sum(terms1, 4)
        h1, c1 = cell(g1, c1)
        return (h0, c0, h1, c1)

    init = (s0_ref[0], s0_ref[1], s0_ref[2], s0_ref[3])

    # 5-deep manual unroll inside a fori_loop over 14 chunks: gives the LLO
    # scheduler cross-step visibility to hide EUP latency behind the next
    # step's loads/FMAs and removes most loop-control overhead.
    n_chunks = T // UNROLL

    def chunk(it, carry):
        base = it * UNROLL
        for u in range(UNROLL):                       # static unroll
            carry = one_step(base + u, carry)
        return carry

    carry = jax.lax.fori_loop(0, n_chunks, chunk, init)
    for t in range(n_chunks * UNROLL, T):             # static remainder (empty for T=70)
        carry = one_step(t, carry)

    h1 = carry[2]                                     # (BP, 8); pad lanes are 0

    # Output head: Linear(H, 1) + sigmoid (lane reduction on the XLU).
    y = jnp.sum(h1 * wout_ref[...], axis=1, keepdims=True) + bout_ref[...]
    out_ref[...] = jax.nn.sigmoid(y)


# ----------------------------------------------------------------------------
# Wrapper-side layout plumbing
# ----------------------------------------------------------------------------
def _gate_rows_to_kernel(x):
    """PyTorch (4H, ...) gate-major -> (32, ...): reorder gates (i,f,g,o) ->
    (i,f,o,g) and zero-pad each gate block from H=6 to GP=8 rows."""
    blocks = x.reshape(NG, HIDDEN_DIM, *x.shape[1:])
    blocks = jnp.take(blocks, jnp.asarray(GATE_PERM), axis=0)
    pad = [(0, 0), (0, GP - HIDDEN_DIM)] + [(0, 0)] * (x.ndim - 1)
    return jnp.pad(blocks, pad).reshape(NG * GP, *x.shape[1:])


@jax.jit
def lstm_tagger_forward(inp, hidden, params):
    """inp: (B, T, D) batch-first; hidden: (h, c) each (n_layers, B, H);
    params: raw PyTorch-layout weights."""
    B, T, _ = inp.shape
    h_init, c_init = hidden
    BP = ((B + 7) // 8) * 8            # batch padded to a sublane multiple

    # --- one-time weight plumbing (tiny) ------------------------------------
    w0p = _gate_rows_to_kernel(params["w_ih_l0"])                        # (32, 300)
    b0p = _gate_rows_to_kernel(params["b_ih_l0"] + params["b_hh_l0"])    # (32,)
    b1p = _gate_rows_to_kernel(params["b_ih_l1"] + params["b_hh_l1"])    # (32,)

    def weight_cols(w):   # PyTorch (4H, K) -> (K, BP, 32)
        wp = _gate_rows_to_kernel(w)                                     # (32, K)
        return jnp.broadcast_to(jnp.transpose(wp)[:, None, :],
                                (HIDDEN_DIM, BP, GPAD))

    w0c = weight_cols(params["w_hh_l0"])                                 # (6, BP, 32)
    w1c = jnp.concatenate([weight_cols(params["w_ih_l1"]),
                           weight_cols(params["w_hh_l1"])], axis=0)      # (12, BP, 32)
    b1 = jnp.broadcast_to(b1p[None, :], (BP, GPAD))                      # (BP, 32)
    wout = jnp.broadcast_to(
        jnp.pad(params["w_out"], ((0, 0), (0, GP - HIDDEN_DIM))),
        (BP, GP))                                                        # (BP, 8)
    bout = params["b_out"].reshape(1, 1)                                 # (1, 1)

    # --- hoisted layer-0 input projection, emitted gate-minor (lane-dense) --
    proj = jnp.einsum("btd,gd->tbg", inp, w0p, precision=HIGHEST)        # (T, B, 32)
    proj = proj + b0p[None, None, :]
    xp = jnp.pad(proj, ((0, 0), (0, BP - B), (0, 0)))                    # (T, BP, 32)

    def pad_state(x):  # (B, H) -> (BP, 8), zero pad rows/lanes
        return jnp.pad(x, ((0, BP - B), (0, GP - HIDDEN_DIM)))

    s0 = jnp.stack([pad_state(h_init[0]), pad_state(c_init[0]),
                    pad_state(h_init[1]), pad_state(c_init[1])])         # (4, BP, 8)

    vmem = pl.BlockSpec(memory_space=pltpu.MemorySpace.VMEM)
    out_p = pl.pallas_call(
        lstm_tagger_kernel,
        out_shape=jax.ShapeDtypeStruct((BP, 1), jnp.float32),
        in_specs=[vmem] * 7,
        out_specs=vmem,
    )(xp, s0, w0c, w1c, b1, wout, bout)

    return out_p[:B]                                                     # (B, 1)


# ----------------------------------------------------------------------------
# Pure-JAX reference (PyTorch semantics, raw PyTorch-layout weights)
# ----------------------------------------------------------------------------
def lstm_tagger_reference(inp, hidden, params):
    H = HIDDEN_DIM
    h, c = hidden
    h0, c0 = h[0], c[0]
    h1, c1 = h[1], c[1]

    def cell(x, hh, cc, w_ih, w_hh, b_ih, b_hh):
        g = (jnp.dot(x, w_ih.T, precision=HIGHEST)
             + jnp.dot(hh, w_hh.T, precision=HIGHEST) + b_ih + b_hh)
        i = jax.nn.sigmoid(g[:, 0 * H:1 * H])
        f = jax.nn.sigmoid(g[:, 1 * H:2 * H])
        gg = jnp.tanh(g[:, 2 * H:3 * H])
        o = jax.nn.sigmoid(g[:, 3 * H:4 * H])
        cn = f * cc + i * gg
        return o * jnp.tanh(cn), cn

    for t in range(inp.shape[1]):
        x = inp[:, t, :]
        h0, c0 = cell(x, h0, c0, params["w_ih_l0"], params["w_hh_l0"],
                      params["b_ih_l0"], params["b_hh_l0"])
        h1, c1 = cell(h0, h1, c1, params["w_ih_l1"], params["w_hh_l1"],
                      params["b_ih_l1"], params["b_hh_l1"])
    y = jnp.dot(h1, params["w_out"].T, precision=HIGHEST) + params["b_out"]
    return jax.nn.sigmoid(y)


def init_params(key):
    """PyTorch-default uniform(-1/sqrt(H), 1/sqrt(H)) init, PyTorch layouts."""
    k = 1.0 / np.sqrt(HIDDEN_DIM)
    keys = jax.random.split(key, 10)

    def u(kk, shape):
        return jax.random.uniform(kk, shape, jnp.float32, -k, k)

    return {
        "w_ih_l0": u(keys[0], (4 * HIDDEN_DIM, INPUT_DIM)),
        "w_hh_l0": u(keys[1], (4 * HIDDEN_DIM, HIDDEN_DIM)),
        "b_ih_l0": u(keys[2], (4 * HIDDEN_DIM,)),
        "b_hh_l0": u(keys[3], (4 * HIDDEN_DIM,)),
        "w_ih_l1": u(keys[4], (4 * HIDDEN_DIM, HIDDEN_DIM)),
        "w_hh_l1": u(keys[5], (4 * HIDDEN_DIM, HIDDEN_DIM)),
        "b_ih_l1": u(keys[6], (4 * HIDDEN_DIM,)),
        "b_hh_l1": u(keys[7], (4 * HIDDEN_DIM,)),
        "w_out": u(keys[8], (1, HIDDEN_DIM)),
        "b_out": u(keys[9], (1,)),
    }


if __name__ == "__main__":
    key = jax.random.PRNGKey(0)
    pkey, xkey = jax.random.split(key)

    params = init_params(pkey)

    # Example input: batch_first (B, T, D) like the PyTorch module expects.
    inp = jax.random.normal(xkey, (BATCH, SEQ_LEN, INPUT_DIM), dtype=jnp.float32)

    # init_hidden(batch_size): zeros of shape (n_layers, B, H) for h and c.
    hidden = (jnp.zeros((N_LAYERS, BATCH, HIDDEN_DIM), jnp.float32),
              jnp.zeros((N_LAYERS, BATCH, HIDDEN_DIM), jnp.float32))

    tag_scores = jax.block_until_ready(lstm_tagger_forward(inp, hidden, params))
    ref = jax.block_until_ready(lstm_tagger_reference(inp, hidden, params))

    assert tag_scores.shape == (BATCH, 1)
    np.testing.assert_allclose(np.asarray(tag_scores), np.asarray(ref),
                               rtol=1e-5, atol=1e-5)

    print("KERNEL_OK")
</pallas_src>

<mosaic_0001>
module attributes {stable_mosaic.version = 11 : i64} {
  func.func @lstm_tagger_kernel(%arg0: memref<70x16x32xf32, #tpu.memory_space<vmem>>, %arg1: memref<4x16x8xf32, #tpu.memory_space<vmem>>, %arg2: memref<6x16x32xf32, #tpu.memory_space<vmem>>, %arg3: memref<12x16x32xf32, #tpu.memory_space<vmem>>, %arg4: memref<16x32xf32, #tpu.memory_space<vmem>>, %arg5: memref<16x8xf32, #tpu.memory_space<vmem>>, %arg6: memref<1x1xf32, #tpu.memory_space<vmem>>, %arg7: memref<16x1xf32, #tpu.memory_space<vmem>>) attributes {dimension_semantics = [], scalar_prefetch = 0 : i64, scratch_operands = 0 : i64, tpu.core_type = #tpu.core_type<tc>} {
    %c0 = arith.constant 0 : index
    %c0_0 = arith.constant 0 : index
    %0 = vector.load %arg4[%c0, %c0_0] : memref<16x32xf32, #tpu.memory_space<vmem>>, vector<16x32xf32>
    %c0_1 = arith.constant 0 : index
    %c0_2 = arith.constant 0 : index
    %c0_3 = arith.constant 0 : index
    %1 = vector.load %arg1[%c0_1, %c0_2, %c0_3] : memref<4x16x8xf32, #tpu.memory_space<vmem>>, vector<1x16x8xf32>
    %2 = vector.shape_cast %1 : vector<1x16x8xf32> to vector<16x8xf32>
    %c1 = arith.constant 1 : index
    %c0_4 = arith.constant 0 : index
    %c0_5 = arith.constant 0 : index
    %3 = vector.load %arg1[%c1, %c0_4, %c0_5] : memref<4x16x8xf32, #tpu.memory_space<vmem>>, vector<1x16x8xf32>
    %4 = vector.shape_cast %3 : vector<1x16x8xf32> to vector<16x8xf32>
    %c2 = arith.constant 2 : index
    %c0_6 = arith.constant 0 : index
    %c0_7 = arith.constant 0 : index
    %5 = vector.load %arg1[%c2, %c0_6, %c0_7] : memref<4x16x8xf32, #tpu.memory_space<vmem>>, vector<1x16x8xf32>
    %6 = vector.shape_cast %5 : vector<1x16x8xf32> to vector<16x8xf32>
    %c3 = arith.constant 3 : index
    %c0_8 = arith.constant 0 : index
    %c0_9 = arith.constant 0 : index
    %7 = vector.load %arg1[%c3, %c0_8, %c0_9] : memref<4x16x8xf32, #tpu.memory_space<vmem>>, vector<1x16x8xf32>
    %8 = vector.shape_cast %7 : vector<1x16x8xf32> to vector<16x8xf32>
    %c0_i32 = arith.constant 0 : i32
    %c14_i32 = arith.constant 14 : i32
    %9 = arith.addi %c0_i32, %c14_i32 : i32
    %c1_i32 = arith.constant 1 : i32
    %10:4 = scf.for %arg8 = %c0_i32 to %9 step %c1_i32 iter_args(%arg9 = %2, %arg10 = %4, %arg11 = %6, %arg12 = %8) -> (vector<16x8xf32>, vector<16x8xf32>, vector<16x8xf32>, vector<16x8xf32>)  : i32 {
      %c5_i32 = arith.constant 5 : i32
      %24 = arith.muli %arg8, %c5_i32 : i32
      %c0_i32_18 = arith.constant 0 : i32
      %25 = arith.addi %24, %c0_i32_18 : i32
      %26 = arith.index_cast %25 : i32 to index
      %c0_19 = arith.constant 0 : index
      %c0_20 = arith.constant 0 : index
      %27 = vector.load %arg0[%26, %c0_19, %c0_20] : memref<70x16x32xf32, #tpu.memory_space<vmem>>, vector<1x16x32xf32>
      %28 = vector.shape_cast %27 : vector<1x16x32xf32> to vector<16x32xf32>
      %29 = vector.extract_strided_slice %arg9 {offsets = [0, 0], sizes = [16, 1], strides = [1, 1]} : vector<16x8xf32> to vector<16x1xf32>
      %c0_21 = arith.constant 0 : index
      %c0_22 = arith.constant 0 : index
      %c0_23 = arith.constant 0 : index
      %30 = vector.load %arg2[%c0_21, %c0_22, %c0_23] : memref<6x16x32xf32, #tpu.memory_space<vmem>>, vector<1x16x32xf32>
      %31 = vector.shape_cast %30 : vector<1x16x32xf32> to vector<16x32xf32>
      %32 = vector.broadcast %29 : vector<16x1xf32> to vector<16x32xf32>
      %33 = arith.mulf %32, %31 : vector<16x32xf32>
      %34 = vector.extract_strided_slice %arg9 {offsets = [0, 1], sizes = [16, 1], strides = [1, 1]} : vector<16x8xf32> to vector<16x1xf32>
      %c1_24 = arith.constant 1 : index
      %c0_25 = arith.constant 0 : index
      %c0_26 = arith.constant 0 : index
      %35 = vector.load %arg2[%c1_24, %c0_25, %c0_26] : memref<6x16x32xf32, #tpu.memory_space<vmem>>, vector<1x16x32xf32>
      %36 = vector.shape_cast %35 : vector<1x16x32xf32> to vector<16x32xf32>
      %37 = vector.broadcast %34 : vector<16x1xf32> to vector<16x32xf32>
      %38 = arith.mulf %37, %36 : vector<16x32xf32>
      %39 = vector.extract_strided_slice %arg9 {offsets = [0, 2], sizes = [16, 1], strides = [1, 1]} : vector<16x8xf32> to vector<16x1xf32>
      %c2_27 = arith.constant 2 : index
      %c0_28 = arith.constant 0 : index
      %c0_29 = arith.constant 0 : index
      %40 = vector.load %arg2[%c2_27, %c0_28, %c0_29] : memref<6x16x32xf32, #tpu.memory_space<vmem>>, vector<1x16x32xf32>
      %41 = vector.shape_cast %40 : vector<1x16x32xf32> to vector<16x32xf32>
      %42 = vector.broadcast %39 : vector<16x1xf32> to vector<16x32xf32>
      %43 = arith.mulf %42, %41 : vector<16x32xf32>
      %44 = vector.extract_strided_slice %arg9 {offsets = [0, 3], sizes = [16, 1], strides = [1, 1]} : vector<16x8xf32> to vector<16x1xf32>
      %c3_30 = arith.constant 3 : index
      %c0_31 = arith.constant 0 : index
      %c0_32 = arith.constant 0 : index
      %45 = vector.load %arg2[%c3_30, %c0_31, %c0_32] : memref<6x16x32xf32, #tpu.memory_space<vmem>>, vector<1x16x32xf32>
      %46 = vector.shape_cast %45 : vector<1x16x32xf32> to vector<16x32xf32>
      %47 = vector.broadcast %44 : vector<16x1xf32> to vector<16x32xf32>
      %48 = arith.mulf %47, %46 : vector<16x32xf32>
      %49 = vector.extract_strided_slice %arg9 {offsets = [0, 4], sizes = [16, 1], strides = [1, 1]} : vector<16x8xf32> to vector<16x1xf32>
      %c4 = arith.constant 4 : index
      %c0_33 = arith.constant 0 : index
      %c0_34 = arith.constant 0 : index
      %50 = vector.load %arg2[%c4, %c0_33, %c0_34] : memref<6x16x32xf32, #tpu.memory_space<vmem>>, vector<1x16x32xf32>
      %51 = vector.shape_cast %50 : vector<1x16x32xf32> to vector<16x32xf32>
      %52 = vector.broadcast %49 : vector<16x1xf32> to vector<16x32xf32>
      %53 = arith.mulf %52, %51 : vector<16x32xf32>
      %54 = vector.extract_strided_slice %arg9 {offsets = [0, 5], sizes = [16, 1], strides = [1, 1]} : vector<16x8xf32> to vector<16x1xf32>
      %c5 = arith.constant 5 : index
      %c0_35 = arith.constant 0 : index
      %c0_36 = arith.constant 0 : index
      %55 = vector.load %arg2[%c5, %c0_35, %c0_36] : memref<6x16x32xf32, #tpu.memory_space<vmem>>, vector<1x16x32xf32>
      %56 = vector.shape_cast %55 : vector<1x16x32xf32> to vector<16x32xf32>
      %57 = vector.broadcast %54 : vector<16x1xf32> to vector<16x32xf32>
      %58 = arith.mulf %57, %56 : vector<16x32xf32>
      %59 = arith.addf %28, %48 : vector<16x32xf32>
      %60 = arith.addf %33, %53 : vector<16x32xf32>
      %61 = arith.addf %38, %58 : vector<16x32xf32>
      %62 = arith.addf %59, %60 : vector<16x32xf32>
      %63 = arith.addf %61, %43 : vector<16x32xf32>
      %64 = arith.addf %62, %63 : vector<16x32xf32>
      %65 = arith.negf %64 : vector<16x32xf32>
      %66 = math.exp %65 : vector<16x32xf32>
      %cst_37 = arith.constant 1.000000e+00 : f32
      %67 = vector.broadcast %cst_37 : f32 to vector<16x32xf32>
      %68 = arith.addf %67, %66 : vector<16x32xf32>
      %69 = arith.divf %67, %68 : vector<16x32xf32>
      %70 = vector.extract_strided_slice %64 {offsets = [0, 24], sizes = [16, 8], strides = [1, 1]} : vector<16x32xf32> to vector<16x8xf32>
      %71 = math.tanh %70 : vector<16x8xf32>
      %72 = vector.extract_strided_slice %69 {offsets = [0, 0], sizes = [16, 8], strides = [1, 1]} : vector<16x32xf32> to vector<16x8xf32>
      %73 = vector.extract_strided_slice %69 {offsets = [0, 8], sizes = [16, 8], strides = [1, 1]} : vector<16x32xf32> to vector<16x8xf32>
      %74 = vector.extract_strided_slice %69 {offsets = [0, 16], sizes = [16, 8], strides = [1, 1]} : vector<16x32xf32> to vector<16x8xf32>
      %75 = arith.mulf %73, %arg10 : vector<16x8xf32>
      %76 = arith.mulf %72, %71 : vector<16x8xf32>
      %77 = arith.addf %75, %76 : vector<16x8xf32>
      %78 = math.tanh %77 : vector<16x8xf32>
      %79 = arith.mulf %74, %78 : vector<16x8xf32>
      %80 = vector.extract_strided_slice %79 {offsets = [0, 0], sizes = [16, 1], strides = [1, 1]} : vector<16x8xf32> to vector<16x1xf32>
      %c0_38 = arith.constant 0 : index
      %c0_39 = arith.constant 0 : index
      %c0_40 = arith.constant 0 : index
      %81 = vector.load %arg3[%c0_38, %c0_39, %c0_40] : memref<12x16x32xf32, #tpu.memory_space<vmem>>, vector<1x16x32xf32>
      %82 = vector.shape_cast %81 : vector<1x16x32xf32> to vector<16x32xf32>
      %83 = vector.broadcast %80 : vector<16x1xf32> to vector<16x32xf32>
      %84 = arith.mulf %83, %82 : vector<16x32xf32>
      %85 = vector.extract_strided_slice %79 {offsets = [0, 1], sizes = [16, 1], strides = [1, 1]} : vector<16x8xf32> to vector<16x1xf32>
      %c1_41 = arith.constant 1 : index
      %c0_42 = arith.constant 0 : index
      %c0_43 = arith.constant 0 : index
      %86 = vector.load %arg3[%c1_41, %c0_42, %c0_43] : memref<12x16x32xf32, #tpu.memory_space<vmem>>, vector<1x16x32xf32>
      %87 = vector.shape_cast %86 : vector<1x16x32xf32> to vector<16x32xf32>
      %88 = vector.broadcast %85 : vector<16x1xf32> to vector<16x32xf32>
      %89 = arith.mulf %88, %87 : vector<16x32xf32>
      %90 = vector.extract_strided_slice %79 {offsets = [0, 2], sizes = [16, 1], strides = [1, 1]} : vector<16x8xf32> to vector<16x1xf32>
      %c2_44 = arith.constant 2 : index
      %c0_45 = arith.constant 0 : index
      %c0_46 = arith.constant 0 : index
      %91 = vector.load %arg3[%c2_44, %c0_45, %c0_46] : memref<12x16x32xf32, #tpu.memory_space<vmem>>, vector<1x16x32xf32>
      %92 = vector.shape_cast %91 : vector<1x16x32xf32> to vector<16x32xf32>
      %93 = vector.broadcast %90 : vector<16x1xf32> to vector<16x32xf32>
      %94 = arith.mulf %93, %92 : vector<16x32xf32>
      %95 = vector.extract_strided_slice %79 {offsets = [0, 3], sizes = [16, 1], strides = [1, 1]} : vector<16x8xf32> to vector<16x1xf32>
      %c3_47 = arith.constant 3 : index
      %c0_48 = arith.constant 0 : index
      %c0_49 = arith.constant 0 : index
      %96 = vector.load %arg3[%c3_47, %c0_48, %c0_49] : memref<12x16x32xf32, #tpu.memory_space<vmem>>, vector<1x16x32xf32>
      %97 = vector.shape_cast %96 : vector<1x16x32xf32> to vector<16x32xf32>
      %98 = vector.broadcast %95 : vector<16x1xf32> to vector<16x32xf32>
      %99 = arith.mulf %98, %97 : vector<16x32xf32>
      %100 = vector.extract_strided_slice %79 {offsets = [0, 4], sizes = [16, 1], strides = [1, 1]} : vector<16x8xf32> to vector<16x1xf32>
      %c4_50 = arith.constant 4 : index
      %c0_51 = arith.constant 0 : index
      %c0_52 = arith.constant 0 : index
      %101 = vector.load %arg3[%c4_50, %c0_51, %c0_52] : memref<12x16x32xf32, #tpu.memory_space<vmem>>, vector<1x16x32xf32>
      %102 = vector.shape_cast %101 : vector<1x16x32xf32> to vector<16x32xf32>
      %103 = vector.broadcast %100 : vector<16x1xf32> to vector<16x32xf32>
      %104 = arith.mulf %103, %102 : vector<16x32xf32>
      %105 = vector.extract_strided_slice %79 {offsets = [0, 5], sizes = [16, 1], strides = [1, 1]} : vector<16x8xf32> to vector<16x1xf32>
      %c5_53 = arith.constant 5 : index
      %c0_54 = arith.constant 0 : index
      %c0_55 = arith.constant 0 : index
      %106 = vector.load %arg3[%c5_53, %c0_54, %c0_55] : memref<12x16x32xf32, #tpu.memory_space<vmem>>, vector<1x16x32xf32>
      %107 = vector.shape_cast %106 : vector<1x16x32xf32> to vector<16x32xf32>
      %108 = vector.broadcast %105 : vector<16x1xf32> to vector<16x32xf32>
      %109 = arith.mulf %108, %107 : vector<16x32xf32>
      %110 = vector.extract_strided_slice %arg11 {offsets = [0, 0], sizes = [16, 1], strides = [1, 1]} : vector<16x8xf32> to vector<16x1xf32>
      %c6 = arith.constant 6 : index
      %c0_56 = arith.constant 0 : index
      %c0_57 = arith.constant 0 : index
      %111 = vector.load %arg3[%c6, %c0_56, %c0_57] : memref<12x16x32xf32, #tpu.memory_space<vmem>>, vector<1x16x32xf32>
      %112 = vector.shape_cast %111 : vector<1x16x32xf32> to vector<16x32xf32>
      %113 = vector.broadcast %110 : vector<16x1xf32> to vector<16x32xf32>
      %114 = arith.mulf %113, %112 : vector<16x32xf32>
      %115 = vector.extract_strided_slice %arg11 {offsets = [0, 1], sizes = [16, 1], strides = [1, 1]} : vector<16x8xf32> to vector<16x1xf32>
      %c7 = arith.constant 7 : index
      %c0_58 = arith.constant 0 : index
      %c0_59 = arith.constant 0 : index
      %116 = vector.load %arg3[%c7, %c0_58, %c0_59] : memref<12x16x32xf32, #tpu.memory_space<vmem>>, vector<1x16x32xf32>
      %117 = vector.shape_cast %116 : vector<1x16x32xf32> to vector<16x32xf32>
      %118 = vector.broadcast %115 : vector<16x1xf32> to vector<16x32xf32>
      %119 = arith.mulf %118, %117 : vector<16x32xf32>
      %120 = vector.extract_strided_slice %arg11 {offsets = [0, 2], sizes = [16, 1], strides = [1, 1]} : vector<16x8xf32> to vector<16x1xf32>
      %c8 = arith.constant 8 : index
      %c0_60 = arith.constant 0 : index
      %c0_61 = arith.constant 0 : index
      %121 = vector.load %arg3[%c8, %c0_60, %c0_61] : memref<12x16x32xf32, #tpu.memory_space<vmem>>, vector<1x16x32xf32>
      %122 = vector.shape_cast %121 : vector<1x16x32xf32> to vector<16x32xf32>
      %123 = vector.broadcast %120 : vector<16x1xf32> to vector<16x32xf32>
      %124 = arith.mulf %123, %122 : vector<16x32xf32>
      %125 = vector.extract_strided_slice %arg11 {offsets = [0, 3], sizes = [16, 1], strides = [1, 1]} : vector<16x8xf32> to vector<16x1xf32>
      %c9 = arith.constant 9 : index
      %c0_62 = arith.constant 0 : index
      %c0_63 = arith.constant 0 : index
      %126 = vector.load %arg3[%c9, %c0_62, %c0_63] : memref<12x16x32xf32, #tpu.memory_space<vmem>>, vector<1x16x32xf32>
      %127 = vector.shape_cast %126 : vector<1x16x32xf32> to vector<16x32xf32>
      %128 = vector.broadcast %125 : vector<16x1xf32> to vector<16x32xf32>
      %129 = arith.mulf %128, %127 : vector<16x32xf32>
      %130 = vector.extract_strided_slice %arg11 {offsets = [0, 4], sizes = [16, 1], strides = [1, 1]} : vector<16x8xf32> to vector<16x1xf32>
      %c10 = arith.constant 10 : index
      %c0_64 = arith.constant 0 : index
      %c0_65 = arith.constant 0 : index
      %131 = vector.load %arg3[%c10, %c0_64, %c0_65] : memref<12x16x32xf32, #tpu.memory_space<vmem>>, vector<1x16x32xf32>
      %132 = vector.shape_cast %131 : vector<1x16x32xf32> to vector<16x32xf32>
      %133 = vector.broadcast %130 : vector<16x1xf32> to vector<16x32xf32>
      %134 = arith.mulf %133, %132 : vector<16x32xf32>
      %135 = vector.extract_strided_slice %arg11 {offsets = [0, 5], sizes = [16, 1], strides = [1, 1]} : vector<16x8xf32> to vector<16x1xf32>
      %c11 = arith.constant 11 : index
      %c0_66 = arith.constant 0 : index
      %c0_67 = arith.constant 0 : index
      %136 = vector.load %arg3[%c11, %c0_66, %c0_67] : memref<12x16x32xf32, #tpu.memory_space<vmem>>, vector<1x16x32xf32>
      %137 = vector.shape_cast %136 : vector<1x16x32xf32> to vector<16x32xf32>
      %138 = vector.broadcast %135 : vector<16x1xf32> to vector<16x32xf32>
      %139 = arith.mulf %138, %137 : vector<16x32xf32>
      %140 = arith.addf %0, %99 : vector<16x32xf32>
      %141 = arith.addf %84, %104 : vector<16x32xf32>
      %142 = arith.addf %89, %109 : vector<16x32xf32>
      %143 = arith.addf %94, %114 : vector<16x32xf32>
      %144 = arith.addf %140, %119 : vector<16x32xf32>
      %145 = arith.addf %141, %124 : vector<16x32xf32>
      %146 = arith.addf %142, %129 : vector<16x32xf32>
      %147 = arith.addf %143, %134 : vector<16x32xf32>
      %148 = arith.addf %144, %139 : vector<16x32xf32>
      %149 = arith.addf %148, %145 : vector<16x32xf32>
      %150 = arith.addf %146, %147 : vector<16x32xf32>
      %151 = arith.addf %149, %150 : vector<16x32xf32>
      %152 = arith.negf %151 : vector<16x32xf32>
      %153 = math.exp %152 : vector<16x32xf32>
      %cst_68 = arith.constant 1.000000e+00 : f32
      %154 = vector.broadcast %cst_68 : f32 to vector<16x32xf32>
      %155 = arith.addf %154, %153 : vector<16x32xf32>
      %156 = arith.divf %154, %155 : vector<16x32xf32>
      %157 = vector.extract_strided_slice %151 {offsets = [0, 24], sizes = [16, 8], strides = [1, 1]} : vector<16x32xf32> to vector<16x8xf32>
      %158 = math.tanh %157 : vector<16x8xf32>
      %159 = vector.extract_strided_slice %156 {offsets = [0, 0], sizes = [16, 8], strides = [1, 1]} : vector<16x32xf32> to vector<16x8xf32>
      %160 = vector.extract_strided_slice %156 {offsets = [0, 8], sizes = [16, 8], strides = [1, 1]} : vector<16x32xf32> to vector<16x8xf32>
      %161 = vector.extract_strided_slice %156 {offsets = [0, 16], sizes = [16, 8], strides = [1, 1]} : vector<16x32xf32> to vector<16x8xf32>
      %162 = arith.mulf %160, %arg12 : vector<16x8xf32>
      %163 = arith.mulf %159, %158 : vector<16x8xf32>
      %164 = arith.addf %162, %163 : vector<16x8xf32>
      %165 = math.tanh %164 : vector<16x8xf32>
      %166 = arith.mulf %161, %165 : vector<16x8xf32>
      %c1_i32_69 = arith.constant 1 : i32
      %167 = arith.addi %24, %c1_i32_69 : i32
      %168 = arith.index_cast %167 : i32 to index
      %c0_70 = arith.constant 0 : index
      %c0_71 = arith.constant 0 : index
      %169 = vector.load %arg0[%168, %c0_70, %c0_71] : memref<70x16x32xf32, #tpu.memory_space<vmem>>, vector<1x16x32xf32>
      %170 = vector.shape_cast %169 : vector<1x16x32xf32> to vector<16x32xf32>
      %171 = vector.extract_strided_slice %79 {offsets = [0, 0], sizes = [16, 1], strides = [1, 1]} : vector<16x8xf32> to vector<16x1xf32>
      %c0_72 = arith.constant 0 : index
      %c0_73 = arith.constant 0 : index
      %c0_74 = arith.constant 0 : index
      %172 = vector.load %arg2[%c0_72, %c0_73, %c0_74] : memref<6x16x32xf32, #tpu.memory_space<vmem>>, vector<1x16x32xf32>
      %173 = vector.shape_cast %172 : vector<1x16x32xf32> to vector<16x32xf32>
      %174 = vector.broadcast %171 : vector<16x1xf32> to vector<16x32xf32>
      %175 = arith.mulf %174, %173 : vector<16x32xf32>
      %176 = vector.extract_strided_slice %79 {offsets = [0, 1], sizes = [16, 1], strides = [1, 1]} : vector<16x8xf32> to vector<16x1xf32>
      %c1_75 = arith.constant 1 : index
      %c0_76 = arith.constant 0 : index
      %c0_77 = arith.constant 0 : index
      %177 = vector.load %arg2[%c1_75, %c0_76, %c0_77] : memref<6x16x32xf32, #tpu.memory_space<vmem>>, vector<1x16x32xf32>
      %178 = vector.shape_cast %177 : vector<1x16x32xf32> to vector<16x32xf32>
      %179 = vector.broadcast %176 : vector<16x1xf32> to vector<16x32xf32>
      %180 = arith.mulf %179, %178 : vector<16x32xf32>
      %181 = vector.extract_strided_slice %79 {offsets = [0, 2], sizes = [16, 1], strides = [1, 1]} : vector<16x8xf32> to vector<16x1xf32>
      %c2_78 = arith.constant 2 : index
      %c0_79 = arith.constant 0 : index
      %c0_80 = arith.constant 0 : index
      %182 = vector.load %arg2[%c2_78, %c0_79, %c0_80] : memref<6x16x32xf32, #tpu.memory_space<vmem>>, vector<1x16x32xf32>
      %183 = vector.shape_cast %182 : vector<1x16x32xf32> to vector<16x32xf32>
      %184 = vector.broadcast %181 : vector<16x1xf32> to vector<16x32xf32>
      %185 = arith.mulf %184, %183 : vector<16x32xf32>
      %186 = vector.extract_strided_slice %79 {offsets = [0, 3], sizes = [16, 1], strides = [1, 1]} : vector<16x8xf32> to vector<16x1xf32>
      %c3_81 = arith.constant 3 : index
      %c0_82 = arith.constant 0 : index
      %c0_83 = arith.constant 0 : index
      %187 = vector.load %arg2[%c3_81, %c0_82, %c0_83] : memref<6x16x32xf32, #tpu.memory_space<vmem>>, vector<1x16x32xf32>
      %188 = vector.shape_cast %187 : vector<1x16x32xf32> to vector<16x32xf32>
      %189 = vector.broadcast %186 : vector<16x1xf32> to vector<16x32xf32>
      %190 = arith.mulf %189, %188 : vector<16x32xf32>
      %191 = vector.extract_strided_slice %79 {offsets = [0, 4], sizes = [16, 1], strides = [1, 1]} : vector<16x8xf32> to vector<16x1xf32>
      %c4_84 = arith.constant 4 : index
      %c0_85 = arith.constant 0 : index
      %c0_86 = arith.constant 0 : index
      %192 = vector.load %arg2[%c4_84, %c0_85, %c0_86] : memref<6x16x32xf32, #tpu.memory_space<vmem>>, vector<1x16x32xf32>
      %193 = vector.shape_cast %192 : vector<1x16x32xf32> to vector<16x32xf32>
      %194 = vector.broadcast %191 : vector<16x1xf32> to vector<16x32xf32>
      %195 = arith.mulf %194, %193 : vector<16x32xf32>
      %196 = vector.extract_strided_slice %79 {offsets = [0, 5], sizes = [16, 1], strides = [1, 1]} : vector<16x8xf32> to vector<16x1xf32>
      %c5_87 = arith.constant 5 : index
      %c0_88 = arith.constant 0 : index
      %c0_89 = arith.constant 0 : index
      %197 = vector.load %arg2[%c5_87, %c0_88, %c0_89] : memref<6x16x32xf32, #tpu.memory_space<vmem>>, vector<1x16x32xf32>
      %198 = vector.shape_cast %197 : vector<1x16x32xf32> to vector<16x32xf32>
      %199 = vector.broadcast %196 : vector<16x1xf32> to vector<16x32xf32>
      %200 = arith.mulf %199, %198 : vector<16x32xf32>
      %201 = arith.addf %170, %190 : vector<16x32xf32>
      %202 = arith.addf %175, %195 : vector<16x32xf32>
      %203 = arith.addf %180, %200 : vector<16x32xf32>
      %204 = arith.addf %201, %202 : vector<16x32xf32>
      %205 = arith.addf %203, %185 : vector<16x32xf32>
      %206 = arith.addf %204, %205 : vector<16x32xf32>
      %207 = arith.negf %206 : vector<16x32xf32>
      %208 = math.exp %207 : vector<16x32xf32>
      %cst_90 = arith.constant 1.000000e+00 : f32
      %209 = vector.broadcast %cst_90 : f32 to vector<16x32xf32>
      %210 = arith.addf %209, %208 : vector<16x32xf32>
      %211 = arith.divf %209, %210 : vector<16x32xf32>
      %212 = vector.extract_strided_slice %206 {offsets = [0, 24], sizes = [16, 8], strides = [1, 1]} : vector<16x32xf32> to vector<16x8xf32>
      %213 = math.tanh %212 : vector<16x8xf32>
      %214 = vector.extract_strided_slice %211 {offsets = [0, 0], sizes = [16, 8], strides = [1, 1]} : vector<16x32xf32> to vector<16x8xf32>
      %215 = vector.extract_strided_slice %211 {offsets = [0, 8], sizes = [16, 8], strides = [1, 1]} : vector<16x32xf32> to vector<16x8xf32>
      %216 = vector.extract_strided_slice %211 {offsets = [0, 16], sizes = [16, 8], strides = [1, 1]} : vector<16x32xf32> to vector<16x8xf32>
      %217 = arith.mulf %215, %77 : vector<16x8xf32>
      %218 = arith.mulf %214, %213 : vector<16x8xf32>
      %219 = arith.addf %217, %218 : vector<16x8xf32>
      %220 = math.tanh %219 : vector<16x8xf32>
      %221 = arith.mulf %216, %220 : vector<16x8xf32>
      %222 = vector.extract_strided_slice %221 {offsets = [0, 0], sizes = [16, 1], strides = [1, 1]} : vector<16x8xf32> to vector<16x1xf32>
      %c0_91 = arith.constant 0 : index
      %c0_92 = arith.constant 0 : index
      %c0_93 = arith.constant 0 : index
      %223 = vector.load %arg3[%c0_91, %c0_92, %c0_93] : memref<12x16x32xf32, #tpu.memory_space<vmem>>, vector<1x16x32xf32>
      %224 = vector.shape_cast %223 : vector<1x16x32xf32> to vector<16x32xf32>
      %225 = vector.broadcast %222 : vector<16x1xf32> to vector<16x32xf32>
      %226 = arith.mulf %225, %224 : vector<16x32xf32>
      %227 = vector.extract_strided_slice %221 {offsets = [0, 1], sizes = [16, 1], strides = [1, 1]} : vector<16x8xf32> to vector<16x1xf32>
      %c1_94 = arith.constant 1 : index
      %c0_95 = arith.constant 0 : index
      %c0_96 = arith.constant 0 : index
      %228 = vector.load %arg3[%c1_94, %c0_95, %c0_96] : memref<12x16x32xf32, #tpu.memory_space<vmem>>, vector<1x16x32xf32>
      %229 = vector.shape_cast %228 : vector<1x16x32xf32> to vector<16x32xf32>
      %230 = vector.broadcast %227 : vector<16x1xf32> to vector<16x32xf32>
      %231 = arith.mulf %230, %229 : vector<16x32xf32>
      %232 = vector.extract_strided_slice %221 {offsets = [0, 2], sizes = [16, 1], strides = [1, 1]} : vector<16x8xf32> to vector<16x1xf32>
      %c2_97 = arith.constant 2 : index
      %c0_98 = arith.constant 0 : index
      %c0_99 = arith.constant 0 : index
      %233 = vector.load %arg3[%c2_97, %c0_98, %c0_99] : memref<12x16x32xf32, #tpu.memory_space<vmem>>, vector<1x16x32xf32>
      %234 = vector.shape_cast %233 : vector<1x16x32xf32> to vector<16x32xf32>
      %235 = vector.broadcast %232 : vector<16x1xf32> to vector<16x32xf32>
      %236 = arith.mulf %235, %234 : vector<16x32xf32>
      %237 = vector.extract_strided_slice %221 {offsets = [0, 3], sizes = [16, 1], strides = [1, 1]} : vector<16x8xf32> to vector<16x1xf32>
      %c3_100 = arith.constant 3 : index
      %c0_101 = arith.constant 0 : index
      %c0_102 = arith.constant 0 : index
      %238 = vector.load %arg3[%c3_100, %c0_101, %c0_102] : memref<12x16x32xf32, #tpu.memory_space<vmem>>, vector<1x16x32xf32>
      %239 = vector.shape_cast %238 : vector<1x16x32xf32> to vector<16x32xf32>
      %240 = vector.broadcast %237 : vector<16x1xf32> to vector<16x32xf32>
      %241 = arith.mulf %240, %239 : vector<16x32xf32>
      %242 = vector.extract_strided_slice %221 {offsets = [0, 4], sizes = [16, 1], strides = [1, 1]} : vector<16x8xf32> to vector<16x1xf32>
      %c4_103 = arith.constant 4 : index
      %c0_104 = arith.constant 0 : index
      %c0_105 = arith.constant 0 : index
      %243 = vector.load %arg3[%c4_103, %c0_104, %c0_105] : memref<12x16x32xf32, #tpu.memory_space<vmem>>, vector<1x16x32xf32>
      %244 = vector.shape_cast %243 : vector<1x16x32xf32> to vector<16x32xf32>
      %245 = vector.broadcast %242 : vector<16x1xf32> to vector<16x32xf32>
      %246 = arith.mulf %245, %244 : vector<16x32xf32>
      %247 = vector.extract_strided_slice %221 {offsets = [0, 5], sizes = [16, 1], strides = [1, 1]} : vector<16x8xf32> to vector<16x1xf32>
      %c5_106 = arith.constant 5 : index
      %c0_107 = arith.constant 0 : index
      %c0_108 = arith.constant 0 : index
      %248 = vector.load %arg3[%c5_106, %c0_107, %c0_108] : memref<12x16x32xf32, #tpu.memory_space<vmem>>, vector<1x16x32xf32>
      %249 = vector.shape_cast %248 : vector<1x16x32xf32> to vector<16x32xf32>
      %250 = vector.broadcast %247 : vector<16x1xf32> to vector<16x32xf32>
      %251 = arith.mulf %250, %249 : vector<16x32xf32>
      %252 = vector.extract_strided_slice %166 {offsets = [0, 0], sizes = [16, 1], strides = [1, 1]} : vector<16x8xf32> to vector<16x1xf32>
      %c6_109 = arith.constant 6 : index
      %c0_110 = arith.constant 0 : index
      %c0_111 = arith.constant 0 : index
      %253 = vector.load %arg3[%c6_109, %c0_110, %c0_111] : memref<12x16x32xf32, #tpu.memory_space<vmem>>, vector<1x16x32xf32>
      %254 = vector.shape_cast %253 : vector<1x16x32xf32> to vector<16x32xf32>
      %255 = vector.broadcast %252 : vector<16x1xf32> to vector<16x32xf32>
      %256 = arith.mulf %255, %254 : vector<16x32xf32>
      %257 = vector.extract_strided_slice %166 {offsets = [0, 1], sizes = [16, 1], strides = [1, 1]} : vector<16x8xf32> to vector<16x1xf32>
      %c7_112 = arith.constant 7 : index
      %c0_113 = arith.constant 0 : index
      %c0_114 = arith.constant 0 : index
      %258 = vector.load %arg3[%c7_112, %c0_113, %c0_114] : memref<12x16x32xf32, #tpu.memory_space<vmem>>, vector<1x16x32xf32>
      %259 = vector.shape_cast %258 : vector<1x16x32xf32> to vector<16x32xf32>
      %260 = vector.broadcast %257 : vector<16x1xf32> to vector<16x32xf32>
      %261 = arith.mulf %260, %259 : vector<16x32xf32>
      %262 = vector.extract_strided_slice %166 {offsets = [0, 2], sizes = [16, 1], strides = [1, 1]} : vector<16x8xf32> to vector<16x1xf32>
      %c8_115 = arith.constant 8 : index
      %c0_116 = arith.constant 0 : index
      %c0_117 = arith.constant 0 : index
      %263 = vector.load %arg3[%c8_115, %c0_116, %c0_117] : memref<12x16x32xf32, #tpu.memory_space<vmem>>, vector<1x16x32xf32>
      %264 = vector.shape_cast %263 : vector<1x16x32xf32> to vector<16x32xf32>
      %265 = vector.broadcast %262 : vector<16x1xf32> to vector<16x32xf32>
      %266 = arith.mulf %265, %264 : vector<16x32xf32>
      %267 = vector.extract_strided_slice %166 {offsets = [0, 3], sizes = [16, 1], strides = [1, 1]} : vector<16x8xf32> to vector<16x1xf32>
      %c9_118 = arith.constant 9 : index
      %c0_119 = arith.constant 0 : index
      %c0_120 = arith.constant 0 : index
      %268 = vector.load %arg3[%c9_118, %c0_119, %c0_120] : memref<12x16x32xf32, #tpu.memory_space<vmem>>, vector<1x16x32xf32>
      %269 = vector.shape_cast %268 : vector<1x16x32xf32> to vector<16x32xf32>
      %270 = vector.broadcast %267 : vector<16x1xf32> to vector<16x32xf32>
      %271 = arith.mulf %270, %269 : vector<16x32xf32>
      %272 = vector.extract_strided_slice %166 {offsets = [0, 4], sizes = [16, 1], strides = [1, 1]} : vector<16x8xf32> to vector<16x1xf32>
      %c10_121 = arith.constant 10 : index
      %c0_122 = arith.constant 0 : index
      %c0_123 = arith.constant 0 : index
      %273 = vector.load %arg3[%c10_121, %c0_122, %c0_123] : memref<12x16x32xf32, #tpu.memory_space<vmem>>, vector<1x16x32xf32>
      %274 = vector.shape_cast %273 : vector<1x16x32xf32> to vector<16x32xf32>
      %275 = vector.broadcast %272 : vector<16x1xf32> to vector<16x32xf32>
      %276 = arith.mulf %275, %274 : vector<16x32xf32>
      %277 = vector.extract_strided_slice %166 {offsets = [0, 5], sizes = [16, 1], strides = [1, 1]} : vector<16x8xf32> to vector<16x1xf32>
      %c11_124 = arith.constant 11 : index
      %c0_125 = arith.constant 0 : index
      %c0_126 = arith.constant 0 : index
      %278 = vector.load %arg3[%c11_124, %c0_125, %c0_126] : memref<12x16x32xf32, #tpu.memory_space<vmem>>, vector<1x16x32xf32>
      %279 = vector.shape_cast %278 : vector<1x16x32xf32> to vector<16x32xf32>
      %280 = vector.broadcast %277 : vector<16x1xf32> to vector<16x32xf32>
      %281 = arith.mulf %280, %279 : vector<16x32xf32>
      %282 = arith.addf %0, %241 : vector<16x32xf32>
      %283 = arith.addf %226, %246 : vector<16x32xf32>
      %284 = arith.addf %231, %251 : vector<16x32xf32>
      %285 = arith.addf %236, %256 : vector<16x32xf32>
      %286 = arith.addf %282, %261 : vector<16x32xf32>
      %287 = arith.addf %283, %266 : vector<16x32xf32>
      %288 = arith.addf %284, %271 : vector<16x32xf32>
      %289 = arith.addf %285, %276 : vector<16x32xf32>
      %290 = arith.addf %286, %281 : vector<16x32xf32>
      %291 = arith.addf %290, %287 : vector<16x32xf32>
      %292 = arith.addf %288, %289 : vector<16x32xf32>
      %293 = arith.addf %291, %292 : vector<16x32xf32>
      %294 = arith.negf %293 : vector<16x32xf32>
      %295 = math.exp %294 : vector<16x32xf32>
      %cst_127 = arith.constant 1.000000e+00 : f32
      %296 = vector.broadcast %cst_127 : f32 to vector<16x32xf32>
      %297 = arith.addf %296, %295 : vector<16x32xf32>
      %298 = arith.divf %296, %297 : vector<16x32xf32>
      %299 = vector.extract_strided_slice %293 {offsets = [0, 24], sizes = [16, 8], strides = [1, 1]} : vector<16x32xf32> to vector<16x8xf32>
      %300 = math.tanh %299 : vector<16x8xf32>
      %301 = vector.extract_strided_slice %298 {offsets = [0, 0], sizes = [16, 8], strides = [1, 1]} : vector<16x32xf32> to vector<16x8xf32>
      %302 = vector.extract_strided_slice %298 {offsets = [0, 8], sizes = [16, 8], strides = [1, 1]} : vector<16x32xf32> to vector<16x8xf32>
      %303 = vector.extract_strided_slice %298 {offsets = [0, 16], sizes = [16, 8], strides = [1, 1]} : vector<16x32xf32> to vector<16x8xf32>
      %304 = arith.mulf %302, %164 : vector<16x8xf32>
      %305 = arith.mulf %301, %300 : vector<16x8xf32>
      %306 = arith.addf %304, %305 : vector<16x8xf32>
      %307 = math.tanh %306 : vector<16x8xf32>
      %308 = arith.mulf %303, %307 : vector<16x8xf32>
      %c2_i32 = arith.constant 2 : i32
      %309 = arith.addi %24, %c2_i32 : i32
      %310 = arith.index_cast %309 : i32 to index
      %c0_128 = arith.constant 0 : index
      %c0_129 = arith.constant 0 : index
      %311 = vector.load %arg0[%310, %c0_128, %c0_129] : memref<70x16x32xf32, #tpu.memory_space<vmem>>, vector<1x16x32xf32>
      %312 = vector.shape_cast %311 : vector<1x16x32xf32> to vector<16x32xf32>
      %313 = vector.extract_strided_slice %221 {offsets = [0, 0], sizes = [16, 1], strides = [1, 1]} : vector<16x8xf32> to vector<16x1xf32>
      %c0_130 = arith.constant 0 : index
      %c0_131 = arith.constant 0 : index
      %c0_132 = arith.constant 0 : index
      %314 = vector.load %arg2[%c0_130, %c0_131, %c0_132] : memref<6x16x32xf32, #tpu.memory_space<vmem>>, vector<1x16x32xf32>
      %315 = vector.shape_cast %314 : vector<1x16x32xf32> to vector<16x32xf32>
      %316 = vector.broadcast %313 : vector<16x1xf32> to vector<16x32xf32>
      %317 = arith.mulf %316, %315 : vector<16x32xf32>
      %318 = vector.extract_strided_slice %221 {offsets = [0, 1], sizes = [16, 1], strides = [1, 1]} : vector<16x8xf32> to vector<16x1xf32>
      %c1_133 = arith.constant 1 : index
      %c0_134 = arith.constant 0 : index
      %c0_135 = arith.constant 0 : index
      %319 = vector.load %arg2[%c1_133, %c0_134, %c0_135] : memref<6x16x32xf32, #tpu.memory_space<vmem>>, vector<1x16x32xf32>
      %320 = vector.shape_cast %319 : vector<1x16x32xf32> to vector<16x32xf32>
      %321 = vector.broadcast %318 : vector<16x1xf32> to vector<16x32xf32>
      %322 = arith.mulf %321, %320 : vector<16x32xf32>
      %323 = vector.extract_strided_slice %221 {offsets = [0, 2], sizes = [16, 1], strides = [1, 1]} : vector<16x8xf32> to vector<16x1xf32>
      %c2_136 = arith.constant 2 : index
      %c0_137 = arith.constant 0 : index
      %c0_138 = arith.constant 0 : index
      %324 = vector.load %arg2[%c2_136, %c0_137, %c0_138] : memref<6x16x32xf32, #tpu.memory_space<vmem>>, vector<1x16x32xf32>
      %325 = vector.shape_cast %324 : vector<1x16x32xf32> to vector<16x32xf32>
      %326 = vector.broadcast %323 : vector<16x1xf32> to vector<16x32xf32>
      %327 = arith.mulf %326, %325 : vector<16x32xf32>
      %328 = vector.extract_strided_slice %221 {offsets = [0, 3], sizes = [16, 1], strides = [1, 1]} : vector<16x8xf32> to vector<16x1xf32>
      %c3_139 = arith.constant 3 : index
      %c0_140 = arith.constant 0 : index
      %c0_141 = arith.constant 0 : index
      %329 = vector.load %arg2[%c3_139, %c0_140, %c0_141] : memref<6x16x32xf32, #tpu.memory_space<vmem>>, vector<1x16x32xf32>
      %330 = vector.shape_cast %329 : vector<1x16x32xf32> to vector<16x32xf32>
      %331 = vector.broadcast %328 : vector<16x1xf32> to vector<16x32xf32>
      %332 = arith.mulf %331, %330 : vector<16x32xf32>
      %333 = vector.extract_strided_slice %221 {offsets = [0, 4], sizes = [16, 1], strides = [1, 1]} : vector<16x8xf32> to vector<16x1xf32>
      %c4_142 = arith.constant 4 : index
      %c0_143 = arith.constant 0 : index
      %c0_144 = arith.constant 0 : index
      %334 = vector.load %arg2[%c4_142, %c0_143, %c0_144] : memref<6x16x32xf32, #tpu.memory_space<vmem>>, vector<1x16x32xf32>
      %335 = vector.shape_cast %334 : vector<1x16x32xf32> to vector<16x32xf32>
      %336 = vector.broadcast %333 : vector<16x1xf32> to vector<16x32xf32>
      %337 = arith.mulf %336, %335 : vector<16x32xf32>
      %338 = vector.extract_strided_slice %221 {offsets = [0, 5], sizes = [16, 1], strides = [1, 1]} : vector<16x8xf32> to vector<16x1xf32>
      %c5_145 = arith.constant 5 : index
      %c0_146 = arith.constant 0 : index
      %c0_147 = arith.constant 0 : index
      %339 = vector.load %arg2[%c5_145, %c0_146, %c0_147] : memref<6x16x32xf32, #tpu.memory_space<vmem>>, vector<1x16x32xf32>
      %340 = vector.shape_cast %339 : vector<1x16x32xf32> to vector<16x32xf32>
      %341 = vector.broadcast %338 : vector<16x1xf32> to vector<16x32xf32>
      %342 = arith.mulf %341, %340 : vector<16x32xf32>
      %343 = arith.addf %312, %332 : vector<16x32xf32>
      %344 = arith.addf %317, %337 : vector<16x32xf32>
      %345 = arith.addf %322, %342 : vector<16x32xf32>
      %346 = arith.addf %343, %344 : vector<16x32xf32>
      %347 = arith.addf %345, %327 : vector<16x32xf32>
      %348 = arith.addf %346, %347 : vector<16x32xf32>
      %349 = arith.negf %348 : vector<16x32xf32>
      %350 = math.exp %349 : vector<16x32xf32>
      %cst_148 = arith.constant 1.000000e+00 : f32
      %351 = vector.broadcast %cst_148 : f32 to vector<16x32xf32>
      %352 = arith.addf %351, %350 : vector<16x32xf32>
      %353 = arith.divf %351, %352 : vector<16x32xf32>
      %354 = vector.extract_strided_slice %348 {offsets = [0, 24], sizes = [16, 8], strides = [1, 1]} : vector<16x32xf32> to vector<16x8xf32>
      %355 = math.tanh %354 : vector<16x8xf32>
      %356 = vector.extract_strided_slice %353 {offsets = [0, 0], sizes = [16, 8], strides = [1, 1]} : vector<16x32xf32> to vector<16x8xf32>
      %357 = vector.extract_strided_slice %353 {offsets = [0, 8], sizes = [16, 8], strides = [1, 1]} : vector<16x32xf32> to vector<16x8xf32>
      %358 = vector.extract_strided_slice %353 {offsets = [0, 16], sizes = [16, 8], strides = [1, 1]} : vector<16x32xf32> to vector<16x8xf32>
      %359 = arith.mulf %357, %219 : vector<16x8xf32>
      %360 = arith.mulf %356, %355 : vector<16x8xf32>
      %361 = arith.addf %359, %360 : vector<16x8xf32>
      %362 = math.tanh %361 : vector<16x8xf32>
      %363 = arith.mulf %358, %362 : vector<16x8xf32>
      %364 = vector.extract_strided_slice %363 {offsets = [0, 0], sizes = [16, 1], strides = [1, 1]} : vector<16x8xf32> to vector<16x1xf32>
      %c0_149 = arith.constant 0 : index
      %c0_150 = arith.constant 0 : index
      %c0_151 = arith.constant 0 : index
      %365 = vector.load %arg3[%c0_149, %c0_150, %c0_151] : memref<12x16x32xf32, #tpu.memory_space<vmem>>, vector<1x16x32xf32>
      %366 = vector.shape_cast %365 : vector<1x16x32xf32> to vector<16x32xf32>
      %367 = vector.broadcast %364 : vector<16x1xf32> to vector<16x32xf32>
      %368 = arith.mulf %367, %366 : vector<16x32xf32>
      %369 = vector.extract_strided_slice %363 {offsets = [0, 1], sizes = [16, 1], strides = [1, 1]} : vector<16x8xf32> to vector<16x1xf32>
      %c1_152 = arith.constant 1 : index
      %c0_153 = arith.constant 0 : index
      %c0_154 = arith.constant 0 : index
      %370 = vector.load %arg3[%c1_152, %c0_153, %c0_154] : memref<12x16x32xf32, #tpu.memory_space<vmem>>, vector<1x16x32xf32>
      %371 = vector.shape_cast %370 : vector<1x16x32xf32> to vector<16x32xf32>
      %372 = vector.broadcast %369 : vector<16x1xf32> to vector<16x32xf32>
      %373 = arith.mulf %372, %371 : vector<16x32xf32>
      %374 = vector.extract_strided_slice %363 {offsets = [0, 2], sizes = [16, 1], strides = [1, 1]} : vector<16x8xf32> to vector<16x1xf32>
      %c2_155 = arith.constant 2 : index
      %c0_156 = arith.constant 0 : index
      %c0_157 = arith.constant 0 : index
      %375 = vector.load %arg3[%c2_155, %c0_156, %c0_157] : memref<12x16x32xf32, #tpu.memory_space<vmem>>, vector<1x16x32xf32>
      %376 = vector.shape_cast %375 : vector<1x16x32xf32> to vector<16x32xf32>
      %377 = vector.broadcast %374 : vector<16x1xf32> to vector<16x32xf32>
      %378 = arith.mulf %377, %376 : vector<16x32xf32>
      %379 = vector.extract_strided_slice %363 {offsets = [0, 3], sizes = [16, 1], strides = [1, 1]} : vector<16x8xf32> to vector<16x1xf32>
      %c3_158 = arith.constant 3 : index
      %c0_159 = arith.constant 0 : index
      %c0_160 = arith.constant 0 : index
      %380 = vector.load %arg3[%c3_158, %c0_159, %c0_160] : memref<12x16x32xf32, #tpu.memory_space<vmem>>, vector<1x16x32xf32>
      %381 = vector.shape_cast %380 : vector<1x16x32xf32> to vector<16x32xf32>
      %382 = vector.broadcast %379 : vector<16x1xf32> to vector<16x32xf32>
      %383 = arith.mulf %382, %381 : vector<16x32xf32>
      %384 = vector.extract_strided_slice %363 {offsets = [0, 4], sizes = [16, 1], strides = [1, 1]} : vector<16x8xf32> to vector<16x1xf32>
      %c4_161 = arith.constant 4 : index
      %c0_162 = arith.constant 0 : index
      %c0_163 = arith.constant 0 : index
      %385 = vector.load %arg3[%c4_161, %c0_162, %c0_163] : memref<12x16x32xf32, #tpu.memory_space<vmem>>, vector<1x16x32xf32>
      %386 = vector.shape_cast %385 : vector<1x16x32xf32> to vector<16x32xf32>
      %387 = vector.broadcast %384 : vector<16x1xf32> to vector<16x32xf32>
      %388 = arith.mulf %387, %386 : vector<16x32xf32>
      %389 = vector.extract_strided_slice %363 {offsets = [0, 5], sizes = [16, 1], strides = [1, 1]} : vector<16x8xf32> to vector<16x1xf32>
      %c5_164 = arith.constant 5 : index
      %c0_165 = arith.constant 0 : index
      %c0_166 = arith.constant 0 : index
      %390 = vector.load %arg3[%c5_164, %c0_165, %c0_166] : memref<12x16x32xf32, #tpu.memory_space<vmem>>, vector<1x16x32xf32>
      %391 = vector.shape_cast %390 : vector<1x16x32xf32> to vector<16x32xf32>
      %392 = vector.broadcast %389 : vector<16x1xf32> to vector<16x32xf32>
      %393 = arith.mulf %392, %391 : vector<16x32xf32>
      %394 = vector.extract_strided_slice %308 {offsets = [0, 0], sizes = [16, 1], strides = [1, 1]} : vector<16x8xf32> to vector<16x1xf32>
      %c6_167 = arith.constant 6 : index
      %c0_168 = arith.constant 0 : index
      %c0_169 = arith.constant 0 : index
      %395 = vector.load %arg3[%c6_167, %c0_168, %c0_169] : memref<12x16x32xf32, #tpu.memory_space<vmem>>, vector<1x16x32xf32>
      %396 = vector.shape_cast %395 : vector<1x16x32xf32> to vector<16x32xf32>
      %397 = vector.broadcast %394 : vector<16x1xf32> to vector<16x32xf32>
      %398 = arith.mulf %397, %396 : vector<16x32xf32>
      %399 = vector.extract_strided_slice %308 {offsets = [0, 1], sizes = [16, 1], strides = [1, 1]} : vector<16x8xf32> to vector<16x1xf32>
      %c7_170 = arith.constant 7 : index
      %c0_171 = arith.constant 0 : index
      %c0_172 = arith.constant 0 : index
      %400 = vector.load %arg3[%c7_170, %c0_171, %c0_172] : memref<12x16x32xf32, #tpu.memory_space<vmem>>, vector<1x16x32xf32>
      %401 = vector.shape_cast %400 : vector<1x16x32xf32> to vector<16x32xf32>
      %402 = vector.broadcast %399 : vector<16x1xf32> to vector<16x32xf32>
      %403 = arith.mulf %402, %401 : vector<16x32xf32>
      %404 = vector.extract_strided_slice %308 {offsets = [0, 2], sizes = [16, 1], strides = [1, 1]} : vector<16x8xf32> to vector<16x1xf32>
      %c8_173 = arith.constant 8 : index
      %c0_174 = arith.constant 0 : index
      %c0_175 = arith.constant 0 : index
      %405 = vector.load %arg3[%c8_173, %c0_174, %c0_175] : memref<12x16x32xf32, #tpu.memory_space<vmem>>, vector<1x16x32xf32>
      %406 = vector.shape_cast %405 : vector<1x16x32xf32> to vector<16x32xf32>
      %407 = vector.broadcast %404 : vector<16x1xf32> to vector<16x32xf32>
      %408 = arith.mulf %407, %406 : vector<16x32xf32>
      %409 = vector.extract_strided_slice %308 {offsets = [0, 3], sizes = [16, 1], strides = [1, 1]} : vector<16x8xf32> to vector<16x1xf32>
      %c9_176 = arith.constant 9 : index
      %c0_177 = arith.constant 0 : index
      %c0_178 = arith.constant 0 : index
      %410 = vector.load %arg3[%c9_176, %c0_177, %c0_178] : memref<12x16x32xf32, #tpu.memory_space<vmem>>, vector<1x16x32xf32>
      %411 = vector.shape_cast %410 : vector<1x16x32xf32> to vector<16x32xf32>
      %412 = vector.broadcast %409 : vector<16x1xf32> to vector<16x32xf32>
      %413 = arith.mulf %412, %411 : vector<16x32xf32>
      %414 = vector.extract_strided_slice %308 {offsets = [0, 4], sizes = [16, 1], strides = [1, 1]} : vector<16x8xf32> to vector<16x1xf32>
      %c10_179 = arith.constant 10 : index
      %c0_180 = arith.constant 0 : index
      %c0_181 = arith.constant 0 : index
      %415 = vector.load %arg3[%c10_179, %c0_180, %c0_181] : memref<12x16x32xf32, #tpu.memory_space<vmem>>, vector<1x16x32xf32>
      %416 = vector.shape_cast %415 : vector<1x16x32xf32> to vector<16x32xf32>
      %417 = vector.broadcast %414 : vector<16x1xf32> to vector<16x32xf32>
      %418 = arith.mulf %417, %416 : vector<16x32xf32>
      %419 = vector.extract_strided_slice %308 {offsets = [0, 5], sizes = [16, 1], strides = [1, 1]} : vector<16x8xf32> to vector<16x1xf32>
      %c11_182 = arith.constant 11 : index
      %c0_183 = arith.constant 0 : index
      %c0_184 = arith.constant 0 : index
      %420 = vector.load %arg3[%c11_182, %c0_183, %c0_184] : memref<12x16x32xf32, #tpu.memory_space<vmem>>, vector<1x16x32xf32>
      %421 = vector.shape_cast %420 : vector<1x16x32xf32> to vector<16x32xf32>
      %422 = vector.broadcast %419 : vector<16x1xf32> to vector<16x32xf32>
      %423 = arith.mulf %422, %421 : vector<16x32xf32>
      %424 = arith.addf %0, %383 : vector<16x32xf32>
      %425 = arith.addf %368, %388 : vector<16x32xf32>
      %426 = arith.addf %373, %393 : vector<16x32xf32>
      %427 = arith.addf %378, %398 : vector<16x32xf32>
      %428 = arith.addf %424, %403 : vector<16x32xf32>
      %429 = arith.addf %425, %408 : vector<16x32xf32>
      %430 = arith.addf %426, %413 : vector<16x32xf32>
      %431 = arith.addf %427, %418 : vector<16x32xf32>
      %432 = arith.addf %428, %423 : vector<16x32xf32>
      %433 = arith.addf %432, %429 : vector<16x32xf32>
      %434 = arith.addf %430, %431 : vector<16x32xf32>
      %435 = arith.addf %433, %434 : vector<16x32xf32>
      %436 = arith.negf %435 : vector<16x32xf32>
      %437 = math.exp %436 : vector<16x32xf32>
      %cst_185 = arith.constant 1.000000e+00 : f32
      %438 = vector.broadcast %cst_185 : f32 to vector<16x32xf32>
      %439 = arith.addf %438, %437 : vector<16x32xf32>
      %440 = arith.divf %438, %439 : vector<16x32xf32>
      %441 = vector.extract_strided_slice %435 {offsets = [0, 24], sizes = [16, 8], strides = [1, 1]} : vector<16x32xf32> to vector<16x8xf32>
      %442 = math.tanh %441 : vector<16x8xf32>
      %443 = vector.extract_strided_slice %440 {offsets = [0, 0], sizes = [16, 8], strides = [1, 1]} : vector<16x32xf32> to vector<16x8xf32>
      %444 = vector.extract_strided_slice %440 {offsets = [0, 8], sizes = [16, 8], strides = [1, 1]} : vector<16x32xf32> to vector<16x8xf32>
      %445 = vector.extract_strided_slice %440 {offsets = [0, 16], sizes = [16, 8], strides = [1, 1]} : vector<16x32xf32> to vector<16x8xf32>
      %446 = arith.mulf %444, %306 : vector<16x8xf32>
      %447 = arith.mulf %443, %442 : vector<16x8xf32>
      %448 = arith.addf %446, %447 : vector<16x8xf32>
      %449 = math.tanh %448 : vector<16x8xf32>
      %450 = arith.mulf %445, %449 : vector<16x8xf32>
      %c3_i32 = arith.constant 3 : i32
      %451 = arith.addi %24, %c3_i32 : i32
      %452 = arith.index_cast %451 : i32 to index
      %c0_186 = arith.constant 0 : index
      %c0_187 = arith.constant 0 : index
      %453 = vector.load %arg0[%452, %c0_186, %c0_187] : memref<70x16x32xf32, #tpu.memory_space<vmem>>, vector<1x16x32xf32>
      %454 = vector.shape_cast %453 : vector<1x16x32xf32> to vector<16x32xf32>
      %455 = vector.extract_strided_slice %363 {offsets = [0, 0], sizes = [16, 1], strides = [1, 1]} : vector<16x8xf32> to vector<16x1xf32>
      %c0_188 = arith.constant 0 : index
      %c0_189 = arith.constant 0 : index
      %c0_190 = arith.constant 0 : index
      %456 = vector.load %arg2[%c0_188, %c0_189, %c0_190] : memref<6x16x32xf32, #tpu.memory_space<vmem>>, vector<1x16x32xf32>
      %457 = vector.shape_cast %456 : vector<1x16x32xf32> to vector<16x32xf32>
      %458 = vector.broadcast %455 : vector<16x1xf32> to vector<16x32xf32>
      %459 = arith.mulf %458, %457 : vector<16x32xf32>
      %460 = vector.extract_strided_slice %363 {offsets = [0, 1], sizes = [16, 1], strides = [1, 1]} : vector<16x8xf32> to vector<16x1xf32>
      %c1_191 = arith.constant 1 : index
      %c0_192 = arith.constant 0 : index
      %c0_193 = arith.constant 0 : index
      %461 = vector.load %arg2[%c1_191, %c0_192, %c0_193] : memref<6x16x32xf32, #tpu.memory_space<vmem>>, vector<1x16x32xf32>
      %462 = vector.shape_cast %461 : vector<1x16x32xf32> to vector<16x32xf32>
      %463 = vector.broadcast %460 : vector<16x1xf32> to vector<16x32xf32>
      %464 = arith.mulf %463, %462 : vector<16x32xf32>
      %465 = vector.extract_strided_slice %363 {offsets = [0, 2], sizes = [16, 1], strides = [1, 1]} : vector<16x8xf32> to vector<16x1xf32>
      %c2_194 = arith.constant 2 : index
      %c0_195 = arith.constant 0 : index
      %c0_196 = arith.constant 0 : index
      %466 = vector.load %arg2[%c2_194, %c0_195, %c0_196] : memref<6x16x32xf32, #tpu.memory_space<vmem>>, vector<1x16x32xf32>
      %467 = vector.shape_cast %466 : vector<1x16x32xf32> to vector<16x32xf32>
      %468 = vector.broadcast %465 : vector<16x1xf32> to vector<16x32xf32>
      %469 = arith.mulf %468, %467 : vector<16x32xf32>
      %470 = vector.extract_strided_slice %363 {offsets = [0, 3], sizes = [16, 1], strides = [1, 1]} : vector<16x8xf32> to vector<16x1xf32>
      %c3_197 = arith.constant 3 : index
      %c0_198 = arith.constant 0 : index
      %c0_199 = arith.constant 0 : index
      %471 = vector.load %arg2[%c3_197, %c0_198, %c0_199] : memref<6x16x32xf32, #tpu.memory_space<vmem>>, vector<1x16x32xf32>
      %472 = vector.shape_cast %471 : vector<1x16x32xf32> to vector<16x32xf32>
      %473 = vector.broadcast %470 : vector<16x1xf32> to vector<16x32xf32>
      %474 = arith.mulf %473, %472 : vector<16x32xf32>
      %475 = vector.extract_strided_slice %363 {offsets = [0, 4], sizes = [16, 1], strides = [1, 1]} : vector<16x8xf32> to vector<16x1xf32>
      %c4_200 = arith.constant 4 : index
      %c0_201 = arith.constant 0 : index
      %c0_202 = arith.constant 0 : index
      %476 = vector.load %arg2[%c4_200, %c0_201, %c0_202] : memref<6x16x32xf32, #tpu.memory_space<vmem>>, vector<1x16x32xf32>
      %477 = vector.shape_cast %476 : vector<1x16x32xf32> to vector<16x32xf32>
      %478 = vector.broadcast %475 : vector<16x1xf32> to vector<16x32xf32>
      %479 = arith.mulf %478, %477 : vector<16x32xf32>
      %480 = vector.extract_strided_slice %363 {offsets = [0, 5], sizes = [16, 1], strides = [1, 1]} : vector<16x8xf32> to vector<16x1xf32>
      %c5_203 = arith.constant 5 : index
      %c0_204 = arith.constant 0 : index
      %c0_205 = arith.constant 0 : index
      %481 = vector.load %arg2[%c5_203, %c0_204, %c0_205] : memref<6x16x32xf32, #tpu.memory_space<vmem>>, vector<1x16x32xf32>
      %482 = vector.shape_cast %481 : vector<1x16x32xf32> to vector<16x32xf32>
      %483 = vector.broadcast %480 : vector<16x1xf32> to vector<16x32xf32>
      %484 = arith.mulf %483, %482 : vector<16x32xf32>
      %485 = arith.addf %454, %474 : vector<16x32xf32>
      %486 = arith.addf %459, %479 : vector<16x32xf32>
      %487 = arith.addf %464, %484 : vector<16x32xf32>
      %488 = arith.addf %485, %486 : vector<16x32xf32>
      %489 = arith.addf %487, %469 : vector<16x32xf32>
      %490 = arith.addf %488, %489 : vector<16x32xf32>
      %491 = arith.negf %490 : vector<16x32xf32>
      %492 = math.exp %491 : vector<16x32xf32>
      %cst_206 = arith.constant 1.000000e+00 : f32
      %493 = vector.broadcast %cst_206 : f32 to vector<16x32xf32>
      %494 = arith.addf %493, %492 : vector<16x32xf32>
      %495 = arith.divf %493, %494 : vector<16x32xf32>
      %496 = vector.extract_strided_slice %490 {offsets = [0, 24], sizes = [16, 8], strides = [1, 1]} : vector<16x32xf32> to vector<16x8xf32>
      %497 = math.tanh %496 : vector<16x8xf32>
      %498 = vector.extract_strided_slice %495 {offsets = [0, 0], sizes = [16, 8], strides = [1, 1]} : vector<16x32xf32> to vector<16x8xf32>
      %499 = vector.extract_strided_slice %495 {offsets = [0, 8], sizes = [16, 8], strides = [1, 1]} : vector<16x32xf32> to vector<16x8xf32>
      %500 = vector.extract_strided_slice %495 {offsets = [0, 16], sizes = [16, 8], strides = [1, 1]} : vector<16x32xf32> to vector<16x8xf32>
      %501 = arith.mulf %499, %361 : vector<16x8xf32>
      %502 = arith.mulf %498, %497 : vector<16x8xf32>
      %503 = arith.addf %501, %502 : vector<16x8xf32>
      %504 = math.tanh %503 : vector<16x8xf32>
      %505 = arith.mulf %500, %504 : vector<16x8xf32>
      %506 = vector.extract_strided_slice %505 {offsets = [0, 0], sizes = [16, 1], strides = [1, 1]} : vector<16x8xf32> to vector<16x1xf32>
      %c0_207 = arith.constant 0 : index
      %c0_208 = arith.constant 0 : index
      %c0_209 = arith.constant 0 : index
      %507 = vector.load %arg3[%c0_207, %c0_208, %c0_209] : memref<12x16x32xf32, #tpu.memory_space<vmem>>, vector<1x16x32xf32>
      %508 = vector.shape_cast %507 : vector<1x16x32xf32> to vector<16x32xf32>
      %509 = vector.broadcast %506 : vector<16x1xf32> to vector<16x32xf32>
      %510 = arith.mulf %509, %508 : vector<16x32xf32>
      %511 = vector.extract_strided_slice %505 {offsets = [0, 1], sizes = [16, 1], strides = [1, 1]} : vector<16x8xf32> to vector<16x1xf32>
      %c1_210 = arith.constant 1 : index
      %c0_211 = arith.constant 0 : index
      %c0_212 = arith.constant 0 : index
      %512 = vector.load %arg3[%c1_210, %c0_211, %c0_212] : memref<12x16x32xf32, #tpu.memory_space<vmem>>, vector<1x16x32xf32>
      %513 = vector.shape_cast %512 : vector<1x16x32xf32> to vector<16x32xf32>
      %514 = vector.broadcast %511 : vector<16x1xf32> to vector<16x32xf32>
      %515 = arith.mulf %514, %513 : vector<16x32xf32>
      %516 = vector.extract_strided_slice %505 {offsets = [0, 2], sizes = [16, 1], strides = [1, 1]} : vector<16x8xf32> to vector<16x1xf32>
      %c2_213 = arith.constant 2 : index
      %c0_214 = arith.constant 0 : index
      %c0_215 = arith.constant 0 : index
      %517 = vector.load %arg3[%c2_213, %c0_214, %c0_215] : memref<12x16x32xf32, #tpu.memory_space<vmem>>, vector<1x16x32xf32>
      %518 = vector.shape_cast %517 : vector<1x16x32xf32> to vector<16x32xf32>
      %519 = vector.broadcast %516 : vector<16x1xf32> to vector<16x32xf32>
      %520 = arith.mulf %519, %518 : vector<16x32xf32>
      %521 = vector.extract_strided_slice %505 {offsets = [0, 3], sizes = [16, 1], strides = [1, 1]} : vector<16x8xf32> to vector<16x1xf32>
      %c3_216 = arith.constant 3 : index
      %c0_217 = arith.constant 0 : index
      %c0_218 = arith.constant 0 : index
      %522 = vector.load %arg3[%c3_216, %c0_217, %c0_218] : memref<12x16x32xf32, #tpu.memory_space<vmem>>, vector<1x16x32xf32>
      %523 = vector.shape_cast %522 : vector<1x16x32xf32> to vector<16x32xf32>
      %524 = vector.broadcast %521 : vector<16x1xf32> to vector<16x32xf32>
      %525 = arith.mulf %524, %523 : vector<16x32xf32>
      %526 = vector.extract_strided_slice %505 {offsets = [0, 4], sizes = [16, 1], strides = [1, 1]} : vector<16x8xf32> to vector<16x1xf32>
      %c4_219 = arith.constant 4 : index
      %c0_220 = arith.constant 0 : index
      %c0_221 = arith.constant 0 : index
      %527 = vector.load %arg3[%c4_219, %c0_220, %c0_221] : memref<12x16x32xf32, #tpu.memory_space<vmem>>, vector<1x16x32xf32>
      %528 = vector.shape_cast %527 : vector<1x16x32xf32> to vector<16x32xf32>
      %529 = vector.broadcast %526 : vector<16x1xf32> to vector<16x32xf32>
      %530 = arith.mulf %529, %528 : vector<16x32xf32>
      %531 = vector.extract_strided_slice %505 {offsets = [0, 5], sizes = [16, 1], strides = [1, 1]} : vector<16x8xf32> to vector<16x1xf32>
      %c5_222 = arith.constant 5 : index
      %c0_223 = arith.constant 0 : index
      %c0_224 = arith.constant 0 : index
      %532 = vector.load %arg3[%c5_222, %c0_223, %c0_224] : memref<12x16x32xf32, #tpu.memory_space<vmem>>, vector<1x16x32xf32>
      %533 = vector.shape_cast %532 : vector<1x16x32xf32> to vector<16x32xf32>
      %534 = vector.broadcast %531 : vector<16x1xf32> to vector<16x32xf32>
      %535 = arith.mulf %534, %533 : vector<16x32xf32>
      %536 = vector.extract_strided_slice %450 {offsets = [0, 0], sizes = [16, 1], strides = [1, 1]} : vector<16x8xf32> to vector<16x1xf32>
      %c6_225 = arith.constant 6 : index
      %c0_226 = arith.constant 0 : index
      %c0_227 = arith.constant 0 : index
      %537 = vector.load %arg3[%c6_225, %c0_226, %c0_227] : memref<12x16x32xf32, #tpu.memory_space<vmem>>, vector<1x16x32xf32>
      %538 = vector.shape_cast %537 : vector<1x16x32xf32> to vector<16x32xf32>
      %539 = vector.broadcast %536 : vector<16x1xf32> to vector<16x32xf32>
      %540 = arith.mulf %539, %538 : vector<16x32xf32>
      %541 = vector.extract_strided_slice %450 {offsets = [0, 1], sizes = [16, 1], strides = [1, 1]} : vector<16x8xf32> to vector<16x1xf32>
      %c7_228 = arith.constant 7 : index
      %c0_229 = arith.constant 0 : index
      %c0_230 = arith.constant 0 : index
      %542 = vector.load %arg3[%c7_228, %c0_229, %c0_230] : memref<12x16x32xf32, #tpu.memory_space<vmem>>, vector<1x16x32xf32>
      %543 = vector.shape_cast %542 : vector<1x16x32xf32> to vector<16x32xf32>
      %544 = vector.broadcast %541 : vector<16x1xf32> to vector<16x32xf32>
      %545 = arith.mulf %544, %543 : vector<16x32xf32>
      %546 = vector.extract_strided_slice %450 {offsets = [0, 2], sizes = [16, 1], strides = [1, 1]} : vector<16x8xf32> to vector<16x1xf32>
      %c8_231 = arith.constant 8 : index
      %c0_232 = arith.constant 0 : index
      %c0_233 = arith.constant 0 : index
      %547 = vector.load %arg3[%c8_231, %c0_232, %c0_233] : memref<12x16x32xf32, #tpu.memory_space<vmem>>, vector<1x16x32xf32>
      %548 = vector.shape_cast %547 : vector<1x16x32xf32> to vector<16x32xf32>
      %549 = vector.broadcast %546 : vector<16x1xf32> to vector<16x32xf32>
      %550 = arith.mulf %549, %548 : vector<16x32xf32>
      %551 = vector.extract_strided_slice %450 {offsets = [0, 3], sizes = [16, 1], strides = [1, 1]} : vector<16x8xf32> to vector<16x1xf32>
      %c9_234 = arith.constant 9 : index
      %c0_235 = arith.constant 0 : index
      %c0_236 = arith.constant 0 : index
      %552 = vector.load %arg3[%c9_234, %c0_235, %c0_236] : memref<12x16x32xf32, #tpu.memory_space<vmem>>, vector<1x16x32xf32>
      %553 = vector.shape_cast %552 : vector<1x16x32xf32> to vector<16x32xf32>
      %554 = vector.broadcast %551 : vector<16x1xf32> to vector<16x32xf32>
      %555 = arith.mulf %554, %553 : vector<16x32xf32>
      %556 = vector.extract_strided_slice %450 {offsets = [0, 4], sizes = [16, 1], strides = [1, 1]} : vector<16x8xf32> to vector<16x1xf32>
      %c10_237 = arith.constant 10 : index
      %c0_238 = arith.constant 0 : index
      %c0_239 = arith.constant 0 : index
      %557 = vector.load %arg3[%c10_237, %c0_238, %c0_239] : memref<12x16x32xf32, #tpu.memory_space<vmem>>, vector<1x16x32xf32>
      %558 = vector.shape_cast %557 : vector<1x16x32xf32> to vector<16x32xf32>
      %559 = vector.broadcast %556 : vector<16x1xf32> to vector<16x32xf32>
      %560 = arith.mulf %559, %558 : vector<16x32xf32>
      %561 = vector.extract_strided_slice %450 {offsets = [0, 5], sizes = [16, 1], strides = [1, 1]} : vector<16x8xf32> to vector<16x1xf32>
      %c11_240 = arith.constant 11 : index
      %c0_241 = arith.constant 0 : index
      %c0_242 = arith.constant 0 : index
      %562 = vector.load %arg3[%c11_240, %c0_241, %c0_242] : memref<12x16x32xf32, #tpu.memory_space<vmem>>, vector<1x16x32xf32>
      %563 = vector.shape_cast %562 : vector<1x16x32xf32> to vector<16x32xf32>
      %564 = vector.broadcast %561 : vector<16x1xf32> to vector<16x32xf32>
      %565 = arith.mulf %564, %563 : vector<16x32xf32>
      %566 = arith.addf %0, %525 : vector<16x32xf32>
      %567 = arith.addf %510, %530 : vector<16x32xf32>
      %568 = arith.addf %515, %535 : vector<16x32xf32>
      %569 = arith.addf %520, %540 : vector<16x32xf32>
      %570 = arith.addf %566, %545 : vector<16x32xf32>
      %571 = arith.addf %567, %550 : vector<16x32xf32>
      %572 = arith.addf %568, %555 : vector<16x32xf32>
      %573 = arith.addf %569, %560 : vector<16x32xf32>
      %574 = arith.addf %570, %565 : vector<16x32xf32>
      %575 = arith.addf %574, %571 : vector<16x32xf32>
      %576 = arith.addf %572, %573 : vector<16x32xf32>
      %577 = arith.addf %575, %576 : vector<16x32xf32>
      %578 = arith.negf %577 : vector<16x32xf32>
      %579 = math.exp %578 : vector<16x32xf32>
      %cst_243 = arith.constant 1.000000e+00 : f32
      %580 = vector.broadcast %cst_243 : f32 to vector<16x32xf32>
      %581 = arith.addf %580, %579 : vector<16x32xf32>
      %582 = arith.divf %580, %581 : vector<16x32xf32>
      %583 = vector.extract_strided_slice %577 {offsets = [0, 24], sizes = [16, 8], strides = [1, 1]} : vector<16x32xf32> to vector<16x8xf32>
      %584 = math.tanh %583 : vector<16x8xf32>
      %585 = vector.extract_strided_slice %582 {offsets = [0, 0], sizes = [16, 8], strides = [1, 1]} : vector<16x32xf32> to vector<16x8xf32>
      %586 = vector.extract_strided_slice %582 {offsets = [0, 8], sizes = [16, 8], strides = [1, 1]} : vector<16x32xf32> to vector<16x8xf32>
      %587 = vector.extract_strided_slice %582 {offsets = [0, 16], sizes = [16, 8], strides = [1, 1]} : vector<16x32xf32> to vector<16x8xf32>
      %588 = arith.mulf %586, %448 : vector<16x8xf32>
      %589 = arith.mulf %585, %584 : vector<16x8xf32>
      %590 = arith.addf %588, %589 : vector<16x8xf32>
      %591 = math.tanh %590 : vector<16x8xf32>
      %592 = arith.mulf %587, %591 : vector<16x8xf32>
      %c4_i32 = arith.constant 4 : i32
      %593 = arith.addi %24, %c4_i32 : i32
      %594 = arith.index_cast %593 : i32 to index
      %c0_244 = arith.constant 0 : index
      %c0_245 = arith.constant 0 : index
      %595 = vector.load %arg0[%594, %c0_244, %c0_245] : memref<70x16x32xf32, #tpu.memory_space<vmem>>, vector<1x16x32xf32>
      %596 = vector.shape_cast %595 : vector<1x16x32xf32> to vector<16x32xf32>
      %597 = vector.extract_strided_slice %505 {offsets = [0, 0], sizes = [16, 1], strides = [1, 1]} : vector<16x8xf32> to vector<16x1xf32>
      %c0_246 = arith.constant 0 : index
      %c0_247 = arith.constant 0 : index
      %c0_248 = arith.constant 0 : index
      %598 = vector.load %arg2[%c0_246, %c0_247, %c0_248] : memref<6x16x32xf32, #tpu.memory_space<vmem>>, vector<1x16x32xf32>
      %599 = vector.shape_cast %598 : vector<1x16x32xf32> to vector<16x32xf32>
      %600 = vector.broadcast %597 : vector<16x1xf32> to vector<16x32xf32>
      %601 = arith.mulf %600, %599 : vector<16x32xf32>
      %602 = vector.extract_strided_slice %505 {offsets = [0, 1], sizes = [16, 1], strides = [1, 1]} : vector<16x8xf32> to vector<16x1xf32>
      %c1_249 = arith.constant 1 : index
      %c0_250 = arith.constant 0 : index
      %c0_251 = arith.constant 0 : index
      %603 = vector.load %arg2[%c1_249, %c0_250, %c0_251] : memref<6x16x32xf32, #tpu.memory_space<vmem>>, vector<1x16x32xf32>
      %604 = vector.shape_cast %603 : vector<1x16x32xf32> to vector<16x32xf32>
      %605 = vector.broadcast %602 : vector<16x1xf32> to vector<16x32xf32>
      %606 = arith.mulf %605, %604 : vector<16x32xf32>
      %607 = vector.extract_strided_slice %505 {offsets = [0, 2], sizes = [16, 1], strides = [1, 1]} : vector<16x8xf32> to vector<16x1xf32>
      %c2_252 = arith.constant 2 : index
      %c0_253 = arith.constant 0 : index
      %c0_254 = arith.constant 0 : index
      %608 = vector.load %arg2[%c2_252, %c0_253, %c0_254] : memref<6x16x32xf32, #tpu.memory_space<vmem>>, vector<1x16x32xf32>
      %609 = vector.shape_cast %608 : vector<1x16x32xf32> to vector<16x32xf32>
      %610 = vector.broadcast %607 : vector<16x1xf32> to vector<16x32xf32>
      %611 = arith.mulf %610, %609 : vector<16x32xf32>
      %612 = vector.extract_strided_slice %505 {offsets = [0, 3], sizes = [16, 1], strides = [1, 1]} : vector<16x8xf32> to vector<16x1xf32>
      %c3_255 = arith.constant 3 : index
      %c0_256 = arith.constant 0 : index
      %c0_257 = arith.constant 0 : index
      %613 = vector.load %arg2[%c3_255, %c0_256, %c0_257] : memref<6x16x32xf32, #tpu.memory_space<vmem>>, vector<1x16x32xf32>
      %614 = vector.shape_cast %613 : vector<1x16x32xf32> to vector<16x32xf32>
      %615 = vector.broadcast %612 : vector<16x1xf32> to vector<16x32xf32>
      %616 = arith.mulf %615, %614 : vector<16x32xf32>
      %617 = vector.extract_strided_slice %505 {offsets = [0, 4], sizes = [16, 1], strides = [1, 1]} : vector<16x8xf32> to vector<16x1xf32>
      %c4_258 = arith.constant 4 : index
      %c0_259 = arith.constant 0 : index
      %c0_260 = arith.constant 0 : index
      %618 = vector.load %arg2[%c4_258, %c0_259, %c0_260] : memref<6x16x32xf32, #tpu.memory_space<vmem>>, vector<1x16x32xf32>
      %619 = vector.shape_cast %618 : vector<1x16x32xf32> to vector<16x32xf32>
      %620 = vector.broadcast %617 : vector<16x1xf32> to vector<16x32xf32>
      %621 = arith.mulf %620, %619 : vector<16x32xf32>
      %622 = vector.extract_strided_slice %505 {offsets = [0, 5], sizes = [16, 1], strides = [1, 1]} : vector<16x8xf32> to vector<16x1xf32>
      %c5_261 = arith.constant 5 : index
      %c0_262 = arith.constant 0 : index
      %c0_263 = arith.constant 0 : index
      %623 = vector.load %arg2[%c5_261, %c0_262, %c0_263] : memref<6x16x32xf32, #tpu.memory_space<vmem>>, vector<1x16x32xf32>
      %624 = vector.shape_cast %623 : vector<1x16x32xf32> to vector<16x32xf32>
      %625 = vector.broadcast %622 : vector<16x1xf32> to vector<16x32xf32>
      %626 = arith.mulf %625, %624 : vector<16x32xf32>
      %627 = arith.addf %596, %616 : vector<16x32xf32>
      %628 = arith.addf %601, %621 : vector<16x32xf32>
      %629 = arith.addf %606, %626 : vector<16x32xf32>
      %630 = arith.addf %627, %628 : vector<16x32xf32>
      %631 = arith.addf %629, %611 : vector<16x32xf32>
      %632 = arith.addf %630, %631 : vector<16x32xf32>
      %633 = arith.negf %632 : vector<16x32xf32>
      %634 = math.exp %633 : vector<16x32xf32>
      %cst_264 = arith.constant 1.000000e+00 : f32
      %635 = vector.broadcast %cst_264 : f32 to vector<16x32xf32>
      %636 = arith.addf %635, %634 : vector<16x32xf32>
      %637 = arith.divf %635, %636 : vector<16x32xf32>
      %638 = vector.extract_strided_slice %632 {offsets = [0, 24], sizes = [16, 8], strides = [1, 1]} : vector<16x32xf32> to vector<16x8xf32>
      %639 = math.tanh %638 : vector<16x8xf32>
      %640 = vector.extract_strided_slice %637 {offsets = [0, 0], sizes = [16, 8], strides = [1, 1]} : vector<16x32xf32> to vector<16x8xf32>
      %641 = vector.extract_strided_slice %637 {offsets = [0, 8], sizes = [16, 8], strides = [1, 1]} : vector<16x32xf32> to vector<16x8xf32>
      %642 = vector.extract_strided_slice %637 {offsets = [0, 16], sizes = [16, 8], strides = [1, 1]} : vector<16x32xf32> to vector<16x8xf32>
      %643 = arith.mulf %641, %503 : vector<16x8xf32>
      %644 = arith.mulf %640, %639 : vector<16x8xf32>
      %645 = arith.addf %643, %644 : vector<16x8xf32>
      %646 = math.tanh %645 : vector<16x8xf32>
      %647 = arith.mulf %642, %646 : vector<16x8xf32>
      %648 = vector.extract_strided_slice %647 {offsets = [0, 0], sizes = [16, 1], strides = [1, 1]} : vector<16x8xf32> to vector<16x1xf32>
      %c0_265 = arith.constant 0 : index
      %c0_266 = arith.constant 0 : index
      %c0_267 = arith.constant 0 : index
      %649 = vector.load %arg3[%c0_265, %c0_266, %c0_267] : memref<12x16x32xf32, #tpu.memory_space<vmem>>, vector<1x16x32xf32>
      %650 = vector.shape_cast %649 : vector<1x16x32xf32> to vector<16x32xf32>
      %651 = vector.broadcast %648 : vector<16x1xf32> to vector<16x32xf32>
      %652 = arith.mulf %651, %650 : vector<16x32xf32>
      %653 = vector.extract_strided_slice %647 {offsets = [0, 1], sizes = [16, 1], strides = [1, 1]} : vector<16x8xf32> to vector<16x1xf32>
      %c1_268 = arith.constant 1 : index
      %c0_269 = arith.constant 0 : index
      %c0_270 = arith.constant 0 : index
      %654 = vector.load %arg3[%c1_268, %c0_269, %c0_270] : memref<12x16x32xf32, #tpu.memory_space<vmem>>, vector<1x16x32xf32>
      %655 = vector.shape_cast %654 : vector<1x16x32xf32> to vector<16x32xf32>
      %656 = vector.broadcast %653 : vector<16x1xf32> to vector<16x32xf32>
      %657 = arith.mulf %656, %655 : vector<16x32xf32>
      %658 = vector.extract_strided_slice %647 {offsets = [0, 2], sizes = [16, 1], strides = [1, 1]} : vector<16x8xf32> to vector<16x1xf32>
      %c2_271 = arith.constant 2 : index
      %c0_272 = arith.constant 0 : index
      %c0_273 = arith.constant 0 : index
      %659 = vector.load %arg3[%c2_271, %c0_272, %c0_273] : memref<12x16x32xf32, #tpu.memory_space<vmem>>, vector<1x16x32xf32>
      %660 = vector.shape_cast %659 : vector<1x16x32xf32> to vector<16x32xf32>
      %661 = vector.broadcast %658 : vector<16x1xf32> to vector<16x32xf32>
      %662 = arith.mulf %661, %660 : vector<16x32xf32>
      %663 = vector.extract_strided_slice %647 {offsets = [0, 3], sizes = [16, 1], strides = [1, 1]} : vector<16x8xf32> to vector<16x1xf32>
      %c3_274 = arith.constant 3 : index
      %c0_275 = arith.constant 0 : index
      %c0_276 = arith.constant 0 : index
      %664 = vector.load %arg3[%c3_274, %c0_275, %c0_276] : memref<12x16x32xf32, #tpu.memory_space<vmem>>, vector<1x16x32xf32>
      %665 = vector.shape_cast %664 : vector<1x16x32xf32> to vector<16x32xf32>
      %666 = vector.broadcast %663 : vector<16x1xf32> to vector<16x32xf32>
      %667 = arith.mulf %666, %665 : vector<16x32xf32>
      %668 = vector.extract_strided_slice %647 {offsets = [0, 4], sizes = [16, 1], strides = [1, 1]} : vector<16x8xf32> to vector<16x1xf32>
      %c4_277 = arith.constant 4 : index
      %c0_278 = arith.constant 0 : index
      %c0_279 = arith.constant 0 : index
      %669 = vector.load %arg3[%c4_277, %c0_278, %c0_279] : memref<12x16x32xf32, #tpu.memory_space<vmem>>, vector<1x16x32xf32>
      %670 = vector.shape_cast %669 : vector<1x16x32xf32> to vector<16x32xf32>
      %671 = vector.broadcast %668 : vector<16x1xf32> to vector<16x32xf32>
      %672 = arith.mulf %671, %670 : vector<16x32xf32>
      %673 = vector.extract_strided_slice %647 {offsets = [0, 5], sizes = [16, 1], strides = [1, 1]} : vector<16x8xf32> to vector<16x1xf32>
      %c5_280 = arith.constant 5 : index
      %c0_281 = arith.constant 0 : index
      %c0_282 = arith.constant 0 : index
      %674 = vector.load %arg3[%c5_280, %c0_281, %c0_282] : memref<12x16x32xf32, #tpu.memory_space<vmem>>, vector<1x16x32xf32>
      %675 = vector.shape_cast %674 : vector<1x16x32xf32> to vector<16x32xf32>
      %676 = vector.broadcast %673 : vector<16x1xf32> to vector<16x32xf32>
      %677 = arith.mulf %676, %675 : vector<16x32xf32>
      %678 = vector.extract_strided_slice %592 {offsets = [0, 0], sizes = [16, 1], strides = [1, 1]} : vector<16x8xf32> to vector<16x1xf32>
      %c6_283 = arith.constant 6 : index
      %c0_284 = arith.constant 0 : index
      %c0_285 = arith.constant 0 : index
      %679 = vector.load %arg3[%c6_283, %c0_284, %c0_285] : memref<12x16x32xf32, #tpu.memory_space<vmem>>, vector<1x16x32xf32>
      %680 = vector.shape_cast %679 : vector<1x16x32xf32> to vector<16x32xf32>
      %681 = vector.broadcast %678 : vector<16x1xf32> to vector<16x32xf32>
      %682 = arith.mulf %681, %680 : vector<16x32xf32>
      %683 = vector.extract_strided_slice %592 {offsets = [0, 1], sizes = [16, 1], strides = [1, 1]} : vector<16x8xf32> to vector<16x1xf32>
      %c7_286 = arith.constant 7 : index
      %c0_287 = arith.constant 0 : index
      %c0_288 = arith.constant 0 : index
      %684 = vector.load %arg3[%c7_286, %c0_287, %c0_288] : memref<12x16x32xf32, #tpu.memory_space<vmem>>, vector<1x16x32xf32>
      %685 = vector.shape_cast %684 : vector<1x16x32xf32> to vector<16x32xf32>
      %686 = vector.broadcast %683 : vector<16x1xf32> to vector<16x32xf32>
      %687 = arith.mulf %686, %685 : vector<16x32xf32>
      %688 = vector.extract_strided_slice %592 {offsets = [0, 2], sizes = [16, 1], strides = [1, 1]} : vector<16x8xf32> to vector<16x1xf32>
      %c8_289 = arith.constant 8 : index
      %c0_290 = arith.constant 0 : index
      %c0_291 = arith.constant 0 : index
      %689 = vector.load %arg3[%c8_289, %c0_290, %c0_291] : memref<12x16x32xf32, #tpu.memory_space<vmem>>, vector<1x16x32xf32>
      %690 = vector.shape_cast %689 : vector<1x16x32xf32> to vector<16x32xf32>
      %691 = vector.broadcast %688 : vector<16x1xf32> to vector<16x32xf32>
      %692 = arith.mulf %691, %690 : vector<16x32xf32>
      %693 = vector.extract_strided_slice %592 {offsets = [0, 3], sizes = [16, 1], strides = [1, 1]} : vector<16x8xf32> to vector<16x1xf32>
      %c9_292 = arith.constant 9 : index
      %c0_293 = arith.constant 0 : index
      %c0_294 = arith.constant 0 : index
      %694 = vector.load %arg3[%c9_292, %c0_293, %c0_294] : memref<12x16x32xf32, #tpu.memory_space<vmem>>, vector<1x16x32xf32>
      %695 = vector.shape_cast %694 : vector<1x16x32xf32> to vector<16x32xf32>
      %696 = vector.broadcast %693 : vector<16x1xf32> to vector<16x32xf32>
      %697 = arith.mulf %696, %695 : vector<16x32xf32>
      %698 = vector.extract_strided_slice %592 {offsets = [0, 4], sizes = [16, 1], strides = [1, 1]} : vector<16x8xf32> to vector<16x1xf32>
      %c10_295 = arith.constant 10 : index
      %c0_296 = arith.constant 0 : index
      %c0_297 = arith.constant 0 : index
      %699 = vector.load %arg3[%c10_295, %c0_296, %c0_297] : memref<12x16x32xf32, #tpu.memory_space<vmem>>, vector<1x16x32xf32>
      %700 = vector.shape_cast %699 : vector<1x16x32xf32> to vector<16x32xf32>
      %701 = vector.broadcast %698 : vector<16x1xf32> to vector<16x32xf32>
      %702 = arith.mulf %701, %700 : vector<16x32xf32>
      %703 = vector.extract_strided_slice %592 {offsets = [0, 5], sizes = [16, 1], strides = [1, 1]} : vector<16x8xf32> to vector<16x1xf32>
      %c11_298 = arith.constant 11 : index
      %c0_299 = arith.constant 0 : index
      %c0_300 = arith.constant 0 : index
      %704 = vector.load %arg3[%c11_298, %c0_299, %c0_300] : memref<12x16x32xf32, #tpu.memory_space<vmem>>, vector<1x16x32xf32>
      %705 = vector.shape_cast %704 : vector<1x16x32xf32> to vector<16x32xf32>
      %706 = vector.broadcast %703 : vector<16x1xf32> to vector<16x32xf32>
      %707 = arith.mulf %706, %705 : vector<16x32xf32>
      %708 = arith.addf %0, %667 : vector<16x32xf32>
      %709 = arith.addf %652, %672 : vector<16x32xf32>
      %710 = arith.addf %657, %677 : vector<16x32xf32>
      %711 = arith.addf %662, %682 : vector<16x32xf32>
      %712 = arith.addf %708, %687 : vector<16x32xf32>
      %713 = arith.addf %709, %692 : vector<16x32xf32>
      %714 = arith.addf %710, %697 : vector<16x32xf32>
      %715 = arith.addf %711, %702 : vector<16x32xf32>
      %716 = arith.addf %712, %707 : vector<16x32xf32>
      %717 = arith.addf %716, %713 : vector<16x32xf32>
      %718 = arith.addf %714, %715 : vector<16x32xf32>
      %719 = arith.addf %717, %718 : vector<16x32xf32>
      %720 = arith.negf %719 : vector<16x32xf32>
      %721 = math.exp %720 : vector<16x32xf32>
      %cst_301 = arith.constant 1.000000e+00 : f32
      %722 = vector.broadcast %cst_301 : f32 to vector<16x32xf32>
      %723 = arith.addf %722, %721 : vector<16x32xf32>
      %724 = arith.divf %722, %723 : vector<16x32xf32>
      %725 = vector.extract_strided_slice %719 {offsets = [0, 24], sizes = [16, 8], strides = [1, 1]} : vector<16x32xf32> to vector<16x8xf32>
      %726 = math.tanh %725 : vector<16x8xf32>
      %727 = vector.extract_strided_slice %724 {offsets = [0, 0], sizes = [16, 8], strides = [1, 1]} : vector<16x32xf32> to vector<16x8xf32>
      %728 = vector.extract_strided_slice %724 {offsets = [0, 8], sizes = [16, 8], strides = [1, 1]} : vector<16x32xf32> to vector<16x8xf32>
      %729 = vector.extract_strided_slice %724 {offsets = [0, 16], sizes = [16, 8], strides = [1, 1]} : vector<16x32xf32> to vector<16x8xf32>
      %730 = arith.mulf %728, %590 : vector<16x8xf32>
      %731 = arith.mulf %727, %726 : vector<16x8xf32>
      %732 = arith.addf %730, %731 : vector<16x8xf32>
      %733 = math.tanh %732 : vector<16x8xf32>
      %734 = arith.mulf %729, %733 : vector<16x8xf32>
      scf.yield %647, %645, %734, %732 : vector<16x8xf32>, vector<16x8xf32>, vector<16x8xf32>, vector<16x8xf32>
    }
    %c14_i32_10 = arith.constant 14 : i32
    %c0_11 = arith.constant 0 : index
    %c0_12 = arith.constant 0 : index
    %11 = vector.load %arg5[%c0_11, %c0_12] : memref<16x8xf32, #tpu.memory_space<vmem>>, vector<16x8xf32>
    %12 = arith.mulf %10#2, %11 : vector<16x8xf32>
    %cst = arith.constant dense<0.000000e+00> : vector<16xf32>
    %13 = vector.multi_reduction <add>, %12, %cst [1] : vector<16x8xf32> to vector<16xf32>
    %14 = vector.shape_cast %13 : vector<16xf32> to vector<16x1xf32>
    %c0_13 = arith.constant 0 : index
    %c0_14 = arith.constant 0 : index
    %15 = vector.load %arg6[%c0_13, %c0_14] : memref<1x1xf32, #tpu.memory_space<vmem>>, vector<1x1xf32>
    %16 = vector.broadcast %15 : vector<1x1xf32> to vector<16x1xf32>
    %17 = arith.addf %14, %16 : vector<16x1xf32>
    %18 = arith.negf %17 : vector<16x1xf32>
    %19 = math.exp %18 : vector<16x1xf32>
    %cst_15 = arith.constant 1.000000e+00 : f32
    %20 = vector.broadcast %cst_15 : f32 to vector<16x1xf32>
    %21 = arith.addf %20, %19 : vector<16x1xf32>
    %22 = arith.divf %20, %21 : vector<16x1xf32>
    %c0_16 = arith.constant 0 : index
    %c0_17 = arith.constant 0 : index
    %23 = vector.load %arg7[%c0_16, %c0_17] : memref<16x1xf32, #tpu.memory_space<vmem>>, vector<16x1xf32>
    tpu.vector_store %arg7[%c0_16, %c0_17], %22 {strides = array<i32>} : memref<16x1xf32, #tpu.memory_space<vmem>>, vector<16x1xf32>,
    return
  }
}

</mosaic_0001>

<bundles_post_ra>
// kernel: lstm_tagger_forward.1
= control target key start
LH: loop header
LB: loop body
LE: loop exit
PB: predicated region body
PF: predicated region fallthrough
CT: control target
= control target key end

     0   :  { %s2310_s21 = smov 0   ;;  %s3339_s0 = inlined_call_operand.vmem [shape: f32[70,16,32], index: 0, kind: input, shape index: {}]   ;;  %s3340_s1 = inlined_call_operand.vmem [shape: f32[4,16,8], index: 1, kind: input, shape index: {}]   ;;  %s3341_s2 = inlined_call_operand.vmem [shape: f32[6,16,32], index: 2, kind: input, shape index: {}]   ;;  %s3342_s3 = inlined_call_operand.vmem [shape: f32[12,16,32], index: 3, kind: input, shape index: {}]   ;;  %s3343_s4 = inlined_call_operand.vmem [shape: f32[16,32], index: 4, kind: input, shape index: {}]   ;;  %s3344_s5 = inlined_call_operand.vmem [shape: f32[16,8], index: 5, kind: input, shape index: {}]   ;;  %s3345_s6 = inlined_call_operand.<no memory space> [shape: f32[1,1], index: 6, kind: input, shape index: {}]   ;;  %s3346_s7 = inlined_call_operand.vmem [shape: f32[16,1], index: 7, kind: output, shape index: {}]  }
   0x1   :  { %v12_v0 = vstv %s3345_s6  ;;  %v2263_v1 = vld [vmem:[%s3343_s4] sm:$0xff]  ;;  %v2268_v2 = vld [vmem:[%s3343_s4 + $0x8] sm:$0xff]  ;;  %v1654_v5 = vld [vmem:[%s3340_s1 + $0x10] sm:$0xff]  }
   0x2   :  { %3393 = vst [vmem:[#allocation3_spill] sm:$0xff] %v2263_v1  ;;  %3394 = vst [vmem:[#allocation4_spill] sm:$0xff] %v2268_v2  ;;  %v30_v3 = vld [vmem:[%s3340_s1] sm:$0xff]   ;;  %v31_v4 = vld [vmem:[%s3340_s1 + $0x8] sm:$0xff]  }
   0x3   :  { %13 = vst [vmem:[#allocation2] sm:$0x1] %v12_v0  ;;  %v1655_v6 = vld [vmem:[%s3340_s1 + $0x18] sm:$0xff]   ;;  %v1656_v7 = vld [vmem:[%s3340_s1 + $0x20] sm:$0xff]   ;;  %v1657_v8 = vld [vmem:[%s3340_s1 + $0x28] sm:$0xff]  }
   0x4   :  { %v1658_v9 = vld [vmem:[%s3340_s1 + $0x30] sm:$0xff]   ;;  %v1659_v10 = vld [vmem:[%s3340_s1 + $0x38] sm:$0xff]  }
   0x5 LB: > { %v2201_v11 = vmov 1   ;;  %v2202_v12 = vmov 0   ;;  %v2203_v13 = vmov 3   ;;  %v2204_v14 = vmov 4   ;;  %v2346_v23 = vld [vmem:[%s3341_s2 + $0x40] sm:$0xff]  ;;  %s1660_s23 = smul.u32 80, %s2199_s21  ;;  %v2167_v10 = vphi %v1659_v10, %v1565_v10   ;;  %s2199_s21 = sphi %s2310_s21, %s46_s21   ;;  %v2195_v3 = vphi %v30_v3, %v1539_v3   ;;  %v2191_v4 = vphi %v31_v4, %v1541_v4   ;;  %v2187_v5 = vphi %v1654_v5, %v1547_v5   ;;  %v2183_v6 = vphi %v1655_v6, %v1549_v6   ;;  %v2179_v7 = vphi %v1656_v7, %v3453_v7   ;;  %v2175_v8 = vphi %v1657_v8, %v3452_v8   ;;  %v2171_v9 = vphi %v1658_v9, %v1563_v9  }
   0x6   : > { %1817 = vset.pattern.permute.xlu1 %v2201_v11  ;;  %1816 = vset.pattern.permute.xlu0 %v2202_v12  ;;  %v2205_v15 = vmov 5   ;;  %v2206_v16 = vmov 2   ;;  %v2352_v25 = vld [vmem:[%s3341_s2] sm:$0xff]  ;;  %v2357_v26 = vld [vmem:[%s3341_s2 + $0x30] sm:$0xff]  ;;  %v2387_v39 = vld [vmem:[%s3341_s2 + $0x48] sm:$0xff]  ;;  %s2207_s24 = smov 104  }
   0x7   : > { %78 = vperm.xlu1 %1817, %v2195_v3   ;;  %64 = vperm.xlu0 %1816, %v2195_v3   ;;  %v2363_v29 = vld [vmem:[%s3341_s2 + $0x10] sm:$0xff]  ;;  %v2373_v31 = vld [vmem:[%s3341_s2 + $0x20] sm:$0xff]  ;;  %s2379_s12 = scalar_lea.vmem %s3339_s0, %s1660_s23  ;;  %v2394_v42 = vld [vmem:[%s3341_s2 + $0x8] sm:$0xff]  ;;  %s2208_s25 = smov 8  }
   0x8   : > { %v2368_v30 = vld [vmem:[%s3341_s2 + $0x50] sm:$0xff]  ;;  %v58_v34 = vld [vmem:[%s2379_s12] sm:$0xff]  ;;  %v2399_v43 = vld [vmem:[%s3341_s2 + $0x38] sm:$0xff]  ;;  %s2216_s6 = smov 120   ;;  %s46_s21 = sadd.s32 1, %s2199_s21  }
   0x9   : > { %v3395_v1 = vld [vmem:[#allocation3_spill] sm:$0xff]  ;;  %v2404_v46 = vld [vmem:[%s3341_s2 + $0x58] sm:$0xff]  ;;  %v3405_v2 = vld [vmem:[#allocation4_spill] sm:$0xff]  ;;  %p43_p0 = scmp.ge.s32.totalorder %s46_s21, 14  }
   0xa   : > { %v2410_v49 = vld [vmem:[%s3341_s2 + $0x18] sm:$0xff]  ;;  %v59_v55 = vld [vmem:[%s2379_s12 + $0x8] sm:$0xff]  ;;  %vm1572_vm0 = vcmask (%p43_p0), 64512   ;;  %vm1600_vm1 = vcmask (%p43_p0), 7168  }
   0xb   : > { %82 = vperm.xlu1 %1817, %v2191_v4   ;;  %69 = vperm.xlu0 %1816, %v2191_v4   ;;  %v2419_v57 = vld [vmem:[%s3341_s2 + $0x28] sm:$0xff] }
   0xf   : > { %1819 = vset.pattern.permute.xlu1 %v2203_v13  ;;  %1818 = vset.pattern.permute.xlu0 %v2203_v13 }
  0x10   : > { %108 = vperm.xlu1 %1819, %v2191_v4   ;;  %104 = vperm.xlu0 %1818, %v2195_v3  }
  0x14   : > { %1820 = vset.pattern.permute.xlu1 %v2204_v14  ;;  %1821 = vset.pattern.permute.xlu0 %v2204_v14 }
  0x15   : > { %117 = vperm.xlu1 %1820, %v2195_v3   ;;  %121 = vperm.xlu0 %1821, %v2191_v4  }
  0x19   : > { %1822 = vset.pattern.permute.xlu1 %v2205_v15  ;;  %1823 = vset.pattern.permute.xlu0 %v2206_v16 }
  0x1a   : > { %130 = vperm.xlu1 %1822, %v2195_v3   ;;  %91 = vperm.xlu0 %1823, %v2195_v3  }
  0x1e   : > { %134 = vperm.xlu1 %1822, %v2191_v4   ;;  %1826 = vset.pattern.permute.xlu0 %v2202_v12 }
  0x22   : > { %1824 = vset.pattern.permute.xlu1 %v2206_v16 }
  0x23   : > { %95 = vperm.xlu1 %1824, %v2191_v4  }
  0x27   : > { %1825 = vset.pattern.permute.xlu1 %v2202_v12 }
  0x86   : > { %v79_v17 = vpop.permute.xlu1 %78  ;;  %v65_v18 = vpop.permute.xlu0 %64 }
  0x87   : > { %v72_v32 = vmul.f32 %v65_v18, %v2352_v25  ;;  %v85_v37 = vmul.f32 %v2363_v29, %v79_v17 }
  0x8a   : > { %v83_v19 = vpop.permute.xlu1 %82  ;;  %v70_v20 = vpop.permute.xlu0 %69 }
  0x8b   : > { %v73_v52 = vmul.f32 %v70_v20, %v2394_v42  ;;  %v86_v58 = vmul.f32 %v2410_v49, %v83_v19 }
  0x8f   : > { %v109_v21 = vpop.permute.xlu1 %108  ;;  %v105_v22 = vpop.permute.xlu0 %104 }
  0x90   : > { %v111_v33 = vmul.f32 %v2357_v26, %v105_v22  ;;  %v112_v53 = vmul.f32 %v2399_v43, %v109_v21 }
  0x92   : > { %v139_v44 = vadd.f32 %v111_v33, %v58_v34  ;;  %v140_v61 = vadd.f32 %v112_v53, %v59_v55  ;;  %v3349_v53 = vmov 21  }
  0x94   : > { %v118_v24 = vpop.permute.xlu1 %117  ;;  %v122_v27 = vpop.permute.xlu0 %121 }
  0x95   : > { %v124_v28 = vmul.f32 %v2346_v23, %v118_v24  ;;  %v125_v47 = vmul.f32 %v2387_v39, %v122_v27 }
  0x97   : > { %v141_v38 = vadd.f32 %v124_v28, %v72_v32  ;;  %v142_v59 = vadd.f32 %v125_v47, %v73_v52  ;;  %v3355_v52 = vmov 17  }
  0x99   : > { %v131_v35 = vpop.permute.xlu1 %130  ;;  %v92_v36 = vpop.permute.xlu0 %91  ;;  %v145_v50 = vadd.f32 %v141_v38, %v139_v44  ;;  %v146_v0 = vadd.f32 %v142_v59, %v140_v61 }
  0x9a   : > { %v137_v40 = vmul.f32 %v2368_v30, %v131_v35  ;;  %v98_v41 = vmul.f32 %v2373_v31, %v92_v36 }
  0x9c   : > { %v143_v45 = vadd.f32 %v137_v40, %v85_v37 }
  0x9d   : > { %v135_v48 = vpop.permute.xlu1 %134 }
  0x9e   : > { %v147_v51 = vadd.f32 %v143_v45, %v98_v41  ;;  %v138_v54 = vmul.f32 %v2404_v46, %v135_v48 }
  0xa0   : > { %v149_v56 = vadd.f32 %v147_v51, %v145_v50  ;;  %v144_v62 = vadd.f32 %v138_v54, %v86_v58  ;;  %v3357_v51 = vmov 16   ;;  %v3351_v54 = vmov 20  }
  0xa2   : > { %1925 = vtanh.f32 %v149_v56  ;;  %v96_v60 = vpop.permute.xlu1 %95  ;;  %v1671_v18 = vmul.f32 -1.442695, %v149_v56 }
  0xa3   : > { %v99_v63 = vmul.f32 %v2419_v57, %v96_v60 }
  0xa5   : > { %v148_v3 = vadd.f32 %v144_v62, %v99_v63 }
  0xa7   : > { %v150_v4 = vadd.f32 %v148_v3, %v146_v0 }
  0xa9   : > { %1927 = vtanh.f32 %v150_v4  ;;  %v1672_v19 = vmul.f32 -1.442695, %v150_v4 }
  0xaa   : > { %1929 = vpow2.f32 %v1671_v18  ;;  %v2488_v18 = vld [vmem:[%s3342_s3 + $0x30] sm:$0xff] }
  0xab   : > { %1931 = vpow2.f32 %v1672_v19 }
  0xac   : > { %v1926_v12 = vpop.eup %1925 }
  0xad   : > { %177 = vrot.lane.b32.xlu1 %v1926_v12, %s2207_s24 }
  0xb1   : > { %167 = vrot.lane.b32.xlu1 %v2187_v5, %s2208_s25 }
  0xb3   : > { %v1928_v17 = vpop.eup %1927 }
  0xb4   : > { %179 = vrot.lane.b32.xlu0 %v1928_v17, %s2207_s24  ;;  %v1930_v20 = vpop.eup %1929 }
  0xb5   : > { %v157_v21 = vadd.f32 1.0, %v1930_v20  ;;  %v1932_v22 = vpop.eup %1931  ;;  %v2495_v20 = vld [vmem:[%s3342_s3 + $0x20] sm:$0xff] }
  0xb6   : > { %v158_v24 = vadd.f32 1.0, %v1932_v22  ;;  %3396 = vst [vmem:[#allocation5_spill] sm:$0xff] %v2495_v20 }
  0xb7   : > { %1933 = vrcp.f32 %v157_v21 }
  0xb8   : > { %169 = vrot.lane.b32.xlu0 %v2183_v6, %s2208_s25  ;;  %1935 = vrcp.f32 %v158_v24  ;;  %v2501_v24 = vld [vmem:[%s3342_s3 + $0x10] sm:$0xff] }
  0xb9   : > { %3397 = vst [vmem:[#allocation6_spill] sm:$0xff] %v2501_v24 }
  0xc1   : > { %v1934_v27 = vpop.eup %1933 }
  0xc2   : > { %v1936_v5 = vpop.eup %1935 }
 0x11f   : > { %v178_v28 = vpop.permute.xlu1 %177 }
 0x120   : > { %v183_v32 = vmul.f32 %v1934_v27, %v178_v28  ;;  %v2511_v28 = vld [vmem:[%s3342_s3 + $0x60] sm:$0xff] }
 0x122   : > { %187 = vrot.lane.b32.xlu1 %v183_v32, %s2208_s25  ;;  %v2516_v32 = vld [vmem:[%s3342_s3] sm:$0xff] }
 0x123   : > { %v168_v6 = vpop.permute.xlu1 %167  ;;  %3398 = vst [vmem:[#allocation7_spill] sm:$0xff] %v2516_v32 }
 0x124   : > { %v173_v35 = vmul.f32 %v1934_v27, %v168_v6  ;;  %v2523_v6 = vld [vmem:[%s3342_s3 + $0x40] sm:$0xff] }
 0x126   : > { %v180_v33 = vpop.permute.xlu0 %179 }
 0x127   : > { %v184_v34 = vmul.f32 %v1936_v5, %v180_v33 }
 0x129   : > { %189 = vrot.lane.b32.xlu0 %v184_v34, %s2208_s25 }
 0x12a   : > { %v170_v38 = vpop.permute.xlu0 %169 }
 0x12b   : > { %v174_v40 = vmul.f32 %v1936_v5, %v170_v38  ;;  %v2538_v38 = vld [vmem:[%s3342_s3 + $0x80] sm:$0xff] }
 0x194   : > { %v188_v36 = vpop.permute.xlu1 %187 }
 0x195   : > { %v2431_v37 = vadd.f32 %v188_v36, %v173_v35  ;;  %v2528_v35 = vld [vmem:[%s3342_s3 + $0x70] sm:$0xff] }
 0x196   : > { %3399 = vst [vmem:[#allocation8_spill] sm:$0xff] %v2528_v35  ;;  %v2533_v36 = vld [vmem:[%s3342_s3 + $0x90] sm:$0xff] }
 0x197   : > { %1937 = vtanh.f32 %v2431_v37 }
 0x19b   : > { %v190_v41 = vpop.permute.xlu0 %189 }
 0x19c   : > { %v2434_v44 = vadd.f32 %v190_v41, %v174_v40 }
 0x19e   : > { %1939 = vtanh.f32 %v2434_v44 }
 0x1a1   : > { %v1938_v45 = vpop.eup %1937 }
 0x1a2   : > { %199 = vrot.lane.b32.xlu1 %v1938_v45, %s2208_s25 }
 0x1a6   : > { %291 = vperm.xlu1 %1825, %v2179_v7  }
 0x1a8   : > { %v1940_v47 = vpop.eup %1939 }
 0x1a9   : > { %201 = vrot.lane.b32.xlu0 %v1940_v47, %s2208_s25 }
 0x1aa   : > { %1827 = vset.pattern.permute.xlu1 %v2201_v11  ;;  %v3347_v11 = vmov 19  }
 0x1ab   : > { %305 = vperm.xlu1 %1827, %v2179_v7  }
 0x1ad   : > { %296 = vperm.xlu0 %1826, %v2175_v8  }
 0x1af   : > { %309 = vperm.xlu1 %1827, %v2175_v8  }
 0x1b1   : > { %1828 = vset.pattern.permute.xlu0 %v2206_v16 }
 0x1b2   : > { %318 = vperm.xlu0 %1828, %v2179_v7  }
 0x1b3   : > { %1829 = vset.pattern.permute.xlu1 %v2206_v16 }
 0x1b4   : > { %322 = vperm.xlu1 %1829, %v2175_v8  }
 0x1b6   : > { %1831 = vset.pattern.permute.xlu0 %v2203_v13 }
 0x1b7   : > { %335 = vperm.xlu0 %1831, %v2175_v8  }
 0x1b8   : > { %1830 = vset.pattern.permute.xlu1 %v2203_v13 }
 0x1b9   : > { %331 = vperm.xlu1 %1830, %v2179_v7  }
 0x1bb   : > { %1834 = vset.pattern.permute.xlu0 %v3347_v11 }
 0x1bd   : > { %1832 = vset.pattern.permute.xlu1 %v2204_v14  ;;  %v3353_v14 = vmov 18  }
 0x1be   : > { %344 = vperm.xlu1 %1832, %v2179_v7  }
 0x1c2   : > { %348 = vperm.xlu1 %1832, %v2175_v8  }
 0x1c6   : > { %1833 = vset.pattern.permute.xlu1 %v3347_v11 }
 0x214   : > { %v200_v16 = vpop.permute.xlu1 %199 }
 0x215   : > { %v205_v48 = vmul.f32 %v1934_v27, %v200_v16  ;;  %v2506_v27 = vld [vmem:[%s3342_s3 + $0x50] sm:$0xff] }
 0x217   : > { %251 = vperm.xlu1 %1833, %v205_v48  }
 0x21b   : > { %v202_v50 = vpop.permute.xlu0 %201  ;;  %1835 = vset.pattern.permute.xlu1 %v3357_v51 }
 0x21c   : > { %v206_v13 = vmul.f32 %v1936_v5, %v202_v50  ;;  %211 = vperm.xlu1 %1835, %v205_v48  }
 0x21e   : > { %255 = vperm.xlu0 %1834, %v206_v13  }
 0x220   : > { %216 = vperm.xlu1 %1835, %v206_v13  }
 0x222   : > { %1836 = vset.pattern.permute.xlu0 %v3355_v52 }
 0x223   : > { %225 = vperm.xlu0 %1836, %v205_v48  }
 0x224   : > { %1837 = vset.pattern.permute.xlu1 %v3355_v52 }
 0x225   : > { %229 = vperm.xlu1 %1837, %v206_v13   ;;  %v292_v55 = vpop.permute.xlu1 %291 }
 0x226   : > { %v299_v16 = vmul.f32 %v2511_v28, %v292_v55  ;;  %v2559_v55 = vld [vmem:[%s3342_s3 + $0xb0] sm:$0xff] }
 0x227   : > { %1839 = vset.pattern.permute.xlu0 %v3353_v14 }
 0x228   : > { %242 = vperm.xlu0 %1839, %v206_v13  }
 0x229   : > { %1838 = vset.pattern.permute.xlu1 %v3353_v14 }
 0x22a   : > { %238 = vperm.xlu1 %1838, %v205_v48   ;;  %v306_v56 = vpop.permute.xlu1 %305 }
 0x22c   : > { %1841 = vset.pattern.permute.xlu0 %v3349_v53 }
 0x22d   : > { %277 = vperm.xlu0 %1841, %v205_v48  }
 0x22e   : > { %1840 = vset.pattern.permute.xlu1 %v3351_v54  ;;  %v2471_v58 = vpop.permute.xlu1 %309 }
 0x22f   : > { %264 = vperm.xlu1 %1840, %v205_v48   ;;  %v1698_v48 = vld [vmem:[%s2379_s12 + $0x10] sm:$0xff] }
 0x231   : > { %1842 = vset.pattern.permute.xlu0 %v2205_v15 }
 0x232   : > { %357 = vperm.xlu0 %1842, %v2179_v7   ;;  %v2475_v7 = vpop.permute.xlu0 %296 }
 0x233   : > { %268 = vperm.xlu1 %1840, %v206_v13   ;;  %v2473_v59 = vpop.permute.xlu1 %322 }
 0x236   : > { %1846 = vset.pattern.permute.xlu0 %v3347_v11  ;;  %v319_v62 = vpop.permute.xlu0 %318 }
 0x237   : > { %1843 = vset.pattern.permute.xlu1 %v3349_v53  ;;  %v2552_v53 = vld [vmem:[%s3342_s3 + $0xa0] sm:$0xff]  ;;  %v325_v52 = vmul.f32 %v2538_v38, %v319_v62 }
 0x238   : > { %281 = vperm.xlu1 %1843, %v206_v13   ;;  %v332_v60 = vpop.permute.xlu1 %331 }
 0x23a   : > { %v2479_v3 = vpop.permute.xlu0 %335 }
 0x23c   : > { %1844 = vset.pattern.permute.xlu1 %v2205_v15 }
 0x23d   : > { %361 = vperm.xlu1 %1844, %v2175_v8   ;;  %v345_v61 = vpop.permute.xlu1 %344 }
 0x241   : > { %1845 = vset.pattern.permute.xlu1 %v3347_v11  ;;  %v2477_v63 = vpop.permute.xlu1 %348 }
 0x296   : > { %v252_v0 = vpop.permute.xlu1 %251 }
 0x297   : > { %v258_v22 = vmul.f32 %v2488_v18, %v252_v0  ;;  %v457_v5 = vmul.f32 %v2357_v26, %v252_v0 }
 0x299   : > { %v366_v50 = vadd.f32 %v258_v22, %v3395_v1  ;;  %v312_v22 = vmul.f32 %v2528_v35, %v306_v56 }
 0x29b   : > { %v212_v15 = vpop.permute.xlu1 %211  ;;  %v374_v56 = vadd.f32 %v366_v50, %v312_v22  ;;  %v2585_v50 = vld [vmem:[%s3342_s3 + $0x48] sm:$0xff] }
 0x29c   : > { %v219_v13 = vmul.f32 %v212_v15, %v2516_v32  ;;  %v451_v0 = vmul.f32 %v212_v15, %v2352_v25  ;;  %v338_v15 = vmul.f32 %v2533_v36, %v332_v60 }
 0x29d   : > { %v256_v8 = vpop.permute.xlu0 %255 }
 0x29f   : > { %v2481_v4 = vpop.permute.xlu1 %216 }
 0x2a2   : > { %v226_v12 = vpop.permute.xlu0 %225 }
 0x2a3   : > { %v232_v40 = vmul.f32 %v2501_v24, %v226_v12  ;;  %v453_v41 = vmul.f32 %v2363_v29, %v226_v12  ;;  %v2569_v24 = vld [vmem:[%s3342_s3 + $0x38] sm:$0xff] }
 0x2a4   : > { %v2483_v17 = vpop.permute.xlu1 %229 }
 0x2a7   : > { %v2490_v19 = vpop.permute.xlu0 %242 }
 0x2a9   : > { %v239_v21 = vpop.permute.xlu1 %238 }
 0x2aa   : > { %v245_v33 = vmul.f32 %v2495_v20, %v239_v21  ;;  %v463_v20 = vadd.f32 %v1698_v48, %v457_v5 }
 0x2ac   : > { %v278_v34 = vpop.permute.xlu0 %277  ;;  %v372_v51 = vadd.f32 %v299_v16, %v245_v33 }
 0x2ad   : > { %v284_v45 = vmul.f32 %v2506_v27, %v278_v34  ;;  %v461_v47 = vmul.f32 %v2368_v30, %v278_v34 }
 0x2ae   : > { %v265_v11 = vpop.permute.xlu1 %264 }
 0x2af   : > { %v370_v12 = vadd.f32 %v284_v45, %v232_v40  ;;  %v467_v54 = vadd.f32 %v461_v47, %v453_v41  ;;  %v271_v14 = vmul.f32 %v2523_v6, %v265_v11  ;;  %v459_v34 = vmul.f32 %v2346_v23, %v265_v11 }
 0x2b0   : > { %v455_v40 = vmul.f32 %v2373_v31, %v239_v21  ;;  %v351_v11 = vmul.f32 %v2552_v53, %v345_v61  ;;  %v2575_v21 = vld [vmem:[%s3342_s3 + $0x18] sm:$0xff]  ;;  %v2580_v61 = vld [vmem:[%s3342_s3 + $0x28] sm:$0xff] }
 0x2b1   : > { %v368_v41 = vadd.f32 %v271_v14, %v219_v13  ;;  %v465_v45 = vadd.f32 %v459_v34, %v451_v0  ;;  %v358_v47 = vpop.permute.xlu0 %357  ;;  %v378_v32 = vadd.f32 %v370_v12, %v338_v15  ;;  %3400 = vst [vmem:[#allocation9_spill] sm:$0xff] %v2575_v21  ;;  %3401 = vst [vmem:[#allocation10_spill] sm:$0xff] %v2580_v61  ;;  %v1699_v12 = vld [vmem:[%s2379_s12 + $0x18] sm:$0xff]  ;;  %v2604_v34 = vld [vmem:[%s3342_s3 + $0x8] sm:$0xff] }
 0x2b2   : > { %v364_v60 = vmul.f32 %v2559_v55, %v358_v47  ;;  %v269_v62 = vpop.permute.xlu1 %268  ;;  %v471_v14 = vadd.f32 %v467_v54, %v455_v40  ;;  %v380_v16 = vadd.f32 %v372_v51, %v351_v11  ;;  %v259_v0 = vmul.f32 %v2569_v24, %v256_v8  ;;  %v2598_v51 = vld [vmem:[%s3342_s3 + $0x68] sm:$0xff]  ;;  %3403 = vst [vmem:[#allocation12_spill] sm:$0xff] %v2604_v34 }
 0x2b3   : > { %v376_v5 = vadd.f32 %v368_v41, %v325_v52  ;;  %v469_v33 = vadd.f32 %v465_v45, %v463_v20  ;;  %v460_v13 = vmul.f32 %v2387_v39, %v269_v62  ;;  %v458_v54 = vmul.f32 %v2399_v43, %v256_v8  ;;  %v2593_v20 = vld [vmem:[%s3342_s3 + $0x58] sm:$0xff] }
 0x2b4   : > { %v382_v48 = vadd.f32 %v374_v56, %v364_v60  ;;  %3402 = vst [vmem:[#allocation11_spill] sm:$0xff] %v2593_v20  ;;  %v452_v8 = vmul.f32 %v2481_v4, %v2394_v42  ;;  %v233_v22 = vmul.f32 %v2575_v21, %v2483_v17  ;;  %v386_v15 = vadd.f32 %v380_v16, %v378_v32  ;;  %v2618_v56 = vld [vmem:[%s3342_s3 + $0x78] sm:$0xff] }
 0x2b5   : > { %v473_v52 = vadd.f32 %v471_v14, %v469_v33  ;;  %v454_v41 = vmul.f32 %v2410_v49, %v2483_v17  ;;  %v246_v45 = vmul.f32 %v2580_v61, %v2490_v19  ;;  %v272_v47 = vmul.f32 %v2585_v50, %v269_v62  ;;  %3404 = vst [vmem:[#allocation13_spill] sm:$0xff] %v2618_v56  ;;  %v2623_v32 = vld [vmem:[%s3342_s3 + $0x98] sm:$0xff]  ;;  %v2630_v62 = vld [vmem:[%s3342_s3 + $0x88] sm:$0xff] }
 0x2b6   : > { %v384_v40 = vadd.f32 %v382_v48, %v376_v5  ;;  %v466_v14 = vadd.f32 %v460_v13, %v452_v8  ;;  %v300_v33 = vmul.f32 %v2598_v51, %v2475_v7  ;;  %v367_v16 = vadd.f32 %v259_v0, %v3405_v2  ;;  %v2640_v13 = vld [vmem:[%s3342_s3 + $0xa8] sm:$0xff]  ;;  %v2647_v7 = vld [vmem:[%s3342_s3 + $0xb8] sm:$0xff] }
 0x2b7   : > { %1941 = vtanh.f32 %v473_v52  ;;  %v282_v11 = vpop.permute.xlu1 %281  ;;  %v464_v48 = vadd.f32 %v1699_v12, %v458_v54  ;;  %v220_v21 = vmul.f32 %v2481_v4, %v2604_v34  ;;  %v456_v8 = vmul.f32 %v2419_v57, %v2490_v19 }
 0x2b8   : > { %v388_v60 = vadd.f32 %v386_v15, %v384_v40  ;;  %v285_v17 = vmul.f32 %v2593_v20, %v282_v11  ;;  %v462_v5 = vmul.f32 %v2404_v46, %v282_v11  ;;  %v313_v0 = vmul.f32 %v2618_v56, %v2471_v58 }
 0x2b9   : > { %v339_v4 = vmul.f32 %v2623_v32, %v2479_v3  ;;  %v373_v54 = vadd.f32 %v300_v33, %v246_v45  ;;  %v369_v12 = vadd.f32 %v272_v47, %v220_v21  ;;  %v326_v11 = vmul.f32 %v2630_v62, %v2473_v59 }
 0x2ba   : > { %1943 = vtanh.f32 %v388_v60  ;;  %v371_v15 = vadd.f32 %v285_v17, %v233_v22  ;;  %v468_v40 = vadd.f32 %v462_v5, %v454_v41  ;;  %v470_v19 = vadd.f32 %v466_v14, %v464_v48 }
 0x2bb   : > { %v352_v41 = vmul.f32 %v2640_v13, %v2477_v63  ;;  %v375_v34 = vadd.f32 %v367_v16, %v313_v0  ;;  %v377_v56 = vadd.f32 %v369_v12, %v326_v11 }
 0x2bc   : > { %v472_v2 = vadd.f32 %v468_v40, %v456_v8  ;;  %v362_v22 = vpop.permute.xlu1 %361  ;;  %v379_v17 = vadd.f32 %v371_v15, %v339_v4 }
 0x2bd   : > { %v365_v5 = vmul.f32 %v2647_v7, %v362_v22  ;;  %v381_v58 = vadd.f32 %v373_v54, %v352_v41 }
 0x2be   : > { %v474_v20 = vadd.f32 %v472_v2, %v470_v19 }
 0x2bf   : > { %v383_v61 = vadd.f32 %v375_v34, %v365_v5  ;;  %v387_v21 = vadd.f32 %v381_v58, %v379_v17  ;;  %v1695_v34 = vmul.f32 -1.442695, %v388_v60 }
 0x2c0   : > { %1945 = vtanh.f32 %v474_v20 }
 0x2c1   : > { %v1942_v3 = vpop.eup %1941  ;;  %v385_v45 = vadd.f32 %v383_v61, %v377_v56  ;;  %v1700_v61 = vmul.f32 -1.442695, %v473_v52  ;;  %v1701_v56 = vmul.f32 -1.442695, %v474_v20 }
 0x2c2   : > { %493 = vrot.lane.b32.xlu1 %v1942_v3, %s2207_s24 }
 0x2c3   : > { %v389_v59 = vadd.f32 %v387_v21, %v385_v45 }
 0x2c4   : > { %v1944_v47 = vpop.eup %1943 }
 0x2c5   : > { %1947 = vtanh.f32 %v389_v59  ;;  %v1696_v33 = vmul.f32 -1.442695, %v389_v59 }
 0x2c6   : > { %416 = vrot.lane.b32.xlu1 %v1944_v47, %s2207_s24  ;;  %1949 = vpow2.f32 %v1700_v61 }
 0x2c7   : > { %1951 = vpow2.f32 %v1695_v34 }
 0x2c8   : > { %1953 = vpow2.f32 %v1701_v56 }
 0x2c9   : > { %1955 = vpow2.f32 %v1696_v33 }
 0x2ca   : > { %v1946_v63 = vpop.eup %1945  ;;  %406 = vrot.lane.b32.xlu1 %v2171_v9, %s2208_s25 }
 0x2cb   : > { %495 = vrot.lane.b32.xlu0 %v1946_v63, %s2207_s24 }
 0x2cf   : > { %v1948_v2 = vpop.eup %1947 }
 0x2d0   : > { %418 = vrot.lane.b32.xlu0 %v1948_v2, %s2207_s24  ;;  %v1950_v14 = vpop.eup %1949 }
 0x2d1   : > { %v481_v16 = vadd.f32 1.0, %v1950_v14  ;;  %v1952_v48 = vpop.eup %1951 }
 0x2d2   : > { %v396_v9 = vadd.f32 1.0, %v1952_v48  ;;  %v1954_v8 = vpop.eup %1953 }
 0x2d3   : > { %1957 = vrcp.f32 %v481_v16  ;;  %v482_v15 = vadd.f32 1.0, %v1954_v8  ;;  %v1956_v40 = vpop.eup %1955 }
 0x2d4   : > { %408 = vrot.lane.b32.xlu0 %v2167_v10, %s2208_s25  ;;  %1959 = vrcp.f32 %v396_v9  ;;  %v397_v10 = vadd.f32 1.0, %v1956_v40 }
 0x2d5   : > { %1961 = vrcp.f32 %v482_v15  ;;  %v3406_v15 = vmov 16  }
 0x2d6   : > { %1963 = vrcp.f32 %v397_v10 }
 0x2dd   : > { %v1958_v0 = vpop.eup %1957 }
 0x2de   : > { %v2667_v20 = vpop.eup %1959  ;;  %v489_v58 = vmul.f32 %v1958_v0, %v2431_v37 }
 0x2df   : > { %v1962_v12 = vpop.eup %1961 }
 0x2e0   : > { %v1964_v22 = vpop.eup %1963  ;;  %v490_v2 = vmul.f32 %v1962_v12, %v2434_v44 }
 0x334   : > { %v494_v52 = vpop.permute.xlu1 %493 }
 0x335   : > { %v499_v4 = vmul.f32 %v1958_v0, %v494_v52  ;;  %v3407_v52 = vmov 17  }
 0x337   : > { %503 = vrot.lane.b32.xlu1 %v499_v4, %s2208_s25  ;;  %v3408_v4 = vmov 18  }
 0x338   : > { %v417_v60 = vpop.permute.xlu1 %416 }
 0x339   : > { %v422_v54 = vmul.f32 %v2667_v20, %v417_v60  ;;  %v3410_v60 = vmov 21  }
 0x33b   : > { %426 = vrot.lane.b32.xlu1 %v422_v54, %s2208_s25 }
 0x33c   : > { %v407_v5 = vpop.permute.xlu1 %406 }
 0x33d   : > { %v496_v11 = vpop.permute.xlu0 %495  ;;  %v412_v45 = vmul.f32 %v2667_v20, %v407_v5 }
 0x33e   : > { %v500_v19 = vmul.f32 %v1962_v12, %v496_v11 }
 0x340   : > { %505 = vrot.lane.b32.xlu0 %v500_v19, %s2208_s25 }
 0x342   : > { %v419_v41 = vpop.permute.xlu0 %418 }
 0x343   : > { %v423_v17 = vmul.f32 %v1964_v22, %v419_v41  ;;  %v3411_v41 = vmov 19  }
 0x345   : > { %428 = vrot.lane.b32.xlu0 %v423_v17, %s2208_s25 }
 0x346   : > { %v409_v47 = vpop.permute.xlu0 %408 }
 0x347   : > { %v413_v56 = vmul.f32 %v1964_v22, %v409_v47 }
 0x3a9   : > { %v504_v3 = vpop.permute.xlu1 %503 }
 0x3aa   : > { %v2674_v21 = vadd.f32 %v504_v3, %v489_v58 }
 0x3ac   : > { %1965 = vtanh.f32 %v2674_v21 }
 0x3ad   : > { %v427_v59 = vpop.permute.xlu1 %426 }
 0x3ae   : > { %v2678_v63 = vadd.f32 %v427_v59, %v412_v45 }
 0x3b0   : > { %1967 = vtanh.f32 %v2678_v63 }
 0x3b2   : > { %v506_v61 = vpop.permute.xlu0 %505 }
 0x3b3   : > { %v2682_v34 = vadd.f32 %v506_v61, %v490_v2  ;;  %v1705_v2 = vld [vmem:[%s2379_s12 + $0x20] sm:$0xff] }
 0x3b5   : > { %1969 = vtanh.f32 %v2682_v34 }
 0x3b6   : > { %v1966_v37 = vpop.eup %1965 }
 0x3b7   : > { %515 = vrot.lane.b32.xlu1 %v1966_v37, %s2208_s25  ;;  %v429_v14 = vpop.permute.xlu0 %428 }
 0x3b8   : > { %v2686_v33 = vadd.f32 %v429_v14, %v413_v56 }
 0x3ba   : > { %v1968_v16 = vpop.eup %1967  ;;  %1971 = vtanh.f32 %v2686_v33 }
 0x3bb   : > { %438 = vrot.lane.b32.xlu1 %v1968_v16, %s2208_s25 }
 0x3bf   : > { %v1970_v48 = vpop.eup %1969 }
 0x3c0   : > { %517 = vrot.lane.b32.xlu0 %v1970_v48, %s2208_s25 }
 0x3c4   : > { %v1972_v44 = vpop.eup %1971 }
 0x3c5   : > { %440 = vrot.lane.b32.xlu0 %v1972_v44, %s2208_s25 }
 0x429   : > { %v516_v9 = vpop.permute.xlu1 %515 }
 0x42a   : > { %v521_v8 = vmul.f32 %v1958_v0, %v516_v9  ;;  %v3409_v0 = vmov 20  }
 0x42c   : > { %556 = vperm.xlu1 %1845, %v521_v8  }
 0x42d   : > { %v439_v11 = vpop.permute.xlu1 %438 }
 0x42e   : > { %v444_v19 = vmul.f32 %v2667_v20, %v439_v11 }
 0x430   : > { %1847 = vset.pattern.permute.xlu1 %v3406_v15 }
 0x431   : > { %525 = vperm.xlu1 %1847, %v521_v8  }
 0x432   : > { %v518_v40 = vpop.permute.xlu0 %517 }
 0x433   : > { %v522_v10 = vmul.f32 %v1962_v12, %v518_v40 }
 0x435   : > { %530 = vperm.xlu1 %1847, %v522_v10   ;;  %560 = vperm.xlu0 %1846, %v522_v10  }
 0x437   : > { %v441_v54 = vpop.permute.xlu0 %440 }
 0x438   : > { %v445_v12 = vmul.f32 %v1964_v22, %v441_v54 }
 0x439   : > { %1849 = vset.pattern.permute.xlu1 %v3407_v52  ;;  %1848 = vset.pattern.permute.xlu0 %v3407_v52 }
 0x43a   : > { %540 = vperm.xlu1 %1849, %v522_v10   ;;  %536 = vperm.xlu0 %1848, %v521_v8  }
 0x43e   : > { %1850 = vset.pattern.permute.xlu1 %v3408_v4  ;;  %1851 = vset.pattern.permute.xlu0 %v3408_v4 }
 0x43f   : > { %546 = vperm.xlu1 %1850, %v521_v8   ;;  %550 = vperm.xlu0 %1851, %v522_v10  }
 0x443   : > { %1852 = vset.pattern.permute.xlu1 %v3409_v0  ;;  %1853 = vset.pattern.permute.xlu0 %v3410_v60 }
 0x444   : > { %566 = vperm.xlu1 %1852, %v521_v8   ;;  %576 = vperm.xlu0 %1853, %v521_v8  }
 0x448   : > { %570 = vperm.xlu1 %1852, %v522_v10   ;;  %1856 = vset.pattern.permute.xlu0 %v3406_v15 }
 0x449   : > { %592 = vperm.xlu0 %1856, %v445_v12  }
 0x44c   : > { %1854 = vset.pattern.permute.xlu1 %v3410_v60 }
 0x44d   : > { %580 = vperm.xlu1 %1854, %v522_v10   ;;  %1858 = vset.pattern.permute.xlu0 %v3408_v4 }
 0x44e   : > { %608 = vperm.xlu0 %1858, %v444_v19  }
 0x451   : > { %1855 = vset.pattern.permute.xlu1 %v3406_v15 }
 0x452   : > { %587 = vperm.xlu1 %1855, %v444_v19   ;;  %1861 = vset.pattern.permute.xlu0 %v3411_v41 }
 0x453   : > { %622 = vperm.xlu0 %1861, %v445_v12  }
 0x456   : > { %1857 = vset.pattern.permute.xlu1 %v3407_v52 }
 0x457   : > { %598 = vperm.xlu1 %1857, %v444_v19   ;;  %1863 = vset.pattern.permute.xlu0 %v3410_v60 }
 0x458   : > { %638 = vperm.xlu0 %1863, %v444_v19  }
 0x45b   : > { %602 = vperm.xlu1 %1857, %v445_v12  }
 0x45c   : > { %1866 = vset.pattern.permute.xlu0 %v3411_v41 }
 0x45f   : > { %1859 = vset.pattern.permute.xlu1 %v3408_v4 }
 0x460   : > { %612 = vperm.xlu1 %1859, %v445_v12  }
 0x464   : > { %1860 = vset.pattern.permute.xlu1 %v3411_v41 }
 0x465   : > { %618 = vperm.xlu1 %1860, %v444_v19  }
 0x469   : > { %1862 = vset.pattern.permute.xlu1 %v3409_v0 }
 0x46a   : > { %628 = vperm.xlu1 %1862, %v444_v19  }
 0x46e   : > { %632 = vperm.xlu1 %1862, %v445_v12  }
 0x472   : > { %1864 = vset.pattern.permute.xlu1 %v3410_v60 }
 0x473   : > { %642 = vperm.xlu1 %1864, %v445_v12  }
 0x477   : > { %1865 = vset.pattern.permute.xlu1 %v3411_v41 }
 0x4ab   : > { %v557_v20 = vpop.permute.xlu1 %556 }
 0x4ac   : > { %v730_v47 = vmul.f32 %v2357_v26, %v557_v20 }
 0x4ae   : > { %v736_v44 = vadd.f32 %v1705_v2, %v730_v47 }
 0x4b0   : > { %v526_v22 = vpop.permute.xlu1 %525 }
 0x4b1   : > { %v724_v56 = vmul.f32 %v526_v22, %v2352_v25 }
 0x4b4   : > { %v2713_v17 = vpop.permute.xlu1 %530  ;;  %v2715_v5 = vpop.permute.xlu0 %560 }
 0x4b5   : > { %v725_v25 = vmul.f32 %v2713_v17, %v2394_v42 }
 0x4b9   : > { %v2717_v58 = vpop.permute.xlu1 %540  ;;  %v537_v3 = vpop.permute.xlu0 %536 }
 0x4ba   : > { %v726_v14 = vmul.f32 %v2363_v29, %v537_v3  ;;  %v1706_v29 = vld [vmem:[%s2379_s12 + $0x28] sm:$0xff] }
 0x4be   : > { %v547_v45 = vpop.permute.xlu1 %546  ;;  %v2719_v59 = vpop.permute.xlu0 %550 }
 0x4bf   : > { %v728_v9 = vmul.f32 %v2373_v31, %v547_v45  ;;  %v727_v31 = vmul.f32 %v2410_v49, %v2717_v58 }
 0x4c3   : > { %v567_v61 = vpop.permute.xlu1 %566  ;;  %v577_v37 = vpop.permute.xlu0 %576 }
 0x4c4   : > { %v732_v16 = vmul.f32 %v2346_v23, %v567_v61  ;;  %v734_v48 = vmul.f32 %v2368_v30, %v577_v37  ;;  %v731_v23 = vmul.f32 %v2399_v43, %v2715_v5 }
 0x4c6   : > { %v738_v8 = vadd.f32 %v732_v16, %v724_v56  ;;  %v740_v40 = vadd.f32 %v734_v48, %v726_v14  ;;  %v737_v2 = vadd.f32 %v1706_v29, %v731_v23  ;;  %v573_v29 = vmul.f32 %v2523_v6, %v567_v61 }
 0x4c7   : > { %v571_v10 = vpop.permute.xlu1 %570 }
 0x4c8   : > { %v742_v54 = vadd.f32 %v738_v8, %v736_v44  ;;  %v744_v26 = vadd.f32 %v740_v40, %v728_v9  ;;  %v733_v12 = vmul.f32 %v2387_v39, %v571_v10  ;;  %v729_v39 = vmul.f32 %v2419_v57, %v2719_v59  ;;  %v593_v42 = vpop.permute.xlu0 %592 }
 0x4c9   : > { %v563_v57 = vmul.f32 %v2488_v18, %v557_v20  ;;  %v3413_v20 = vld [vmem:[#allocation6_spill] sm:$0xff] }
 0x4ca   : > { %v2729_v11 = vadd.f32 %v744_v26, %v742_v54  ;;  %v739_v19 = vadd.f32 %v733_v12, %v725_v25 }
 0x4cb   : > { %v647_v25 = vadd.f32 %v563_v57, %v3395_v1 }
 0x4cc   : > { %1973 = vtanh.f32 %v2729_v11  ;;  %v581_v30 = vpop.permute.xlu1 %580  ;;  %v743_v14 = vadd.f32 %v739_v19, %v737_v2 }
 0x4cd   : > { %v735_v47 = vmul.f32 %v2404_v46, %v581_v30  ;;  %v609_v8 = vpop.permute.xlu0 %608 }
 0x4cf   : > { %v741_v56 = vadd.f32 %v735_v47, %v727_v31  ;;  %v583_v31 = vmul.f32 %v2506_v27, %v577_v37 }
 0x4d1   : > { %v745_v16 = vadd.f32 %v741_v56, %v729_v39  ;;  %v588_v48 = vpop.permute.xlu1 %587  ;;  %v3412_v39 = vld [vmem:[#allocation7_spill] sm:$0xff] }
 0x4d2   : > { %v623_v46 = vpop.permute.xlu0 %622  ;;  %v595_v19 = vmul.f32 %v2511_v28, %v588_v48  ;;  %v533_v56 = vmul.f32 %v526_v22, %v3412_v39 }
 0x4d3   : > { %v2742_v43 = vadd.f32 %v745_v16, %v743_v14  ;;  %v543_v14 = vmul.f32 %v3413_v20, %v537_v3  ;;  %v3414_v16 = vld [vmem:[#allocation5_spill] sm:$0xff]  ;;  %v596_v3 = vmul.f32 %v2598_v51, %v593_v42 }
 0x4d4   : > { %v649_v57 = vadd.f32 %v573_v29, %v533_v56  ;;  %v3415_v29 = vld [vmem:[#allocation10_spill] sm:$0xff] }
 0x4d5   : > { %1975 = vtanh.f32 %v2742_v43  ;;  %v651_v61 = vadd.f32 %v583_v31, %v543_v14  ;;  %v554_v31 = vmul.f32 %v3415_v29, %v2719_v59 }
 0x4d6   : > { %v1974_v44 = vpop.eup %1973  ;;  %v599_v9 = vpop.permute.xlu1 %598 }
 0x4d7   : > { %766 = vrot.lane.b32.xlu1 %v1974_v44, %s2207_s24  ;;  %v605_v26 = vmul.f32 %v2528_v35, %v599_v9  ;;  %v639_v12 = vpop.permute.xlu0 %638  ;;  %v553_v44 = vmul.f32 %v3414_v16, %v547_v45  ;;  %v615_v9 = vmul.f32 %v2538_v38, %v609_v8  ;;  %v574_v8 = vmul.f32 %v2585_v50, %v571_v10 }
 0x4d8   : > { %v645_v2 = vmul.f32 %v2559_v55, %v639_v12 }
 0x4d9   : > { %v655_v47 = vadd.f32 %v647_v25, %v605_v26  ;;  %v653_v35 = vadd.f32 %v595_v19, %v553_v44  ;;  %v564_v26 = vmul.f32 %v2569_v24, %v2715_v5  ;;  %v657_v12 = vadd.f32 %v649_v57, %v615_v9  ;;  %v3416_v19 = vld [vmem:[#allocation11_spill] sm:$0xff]  ;;  %v3418_v5 = vld [vmem:[#allocation12_spill] sm:$0xff]  ;;  %v3420_v44 = vld [vmem:[#allocation9_spill] sm:$0xff] }
 0x4da   : > { %v603_v49 = vpop.permute.xlu1 %602  ;;  %v534_v14 = vmul.f32 %v2713_v17, %v3418_v5  ;;  %v544_v10 = vmul.f32 %v3420_v44, %v2717_v58  ;;  %v654_v9 = vadd.f32 %v596_v3, %v554_v31  ;;  %v1708_v3 = vmul.f32 -1.442695, %v2742_v43 }
 0x4db   : > { %v663_v37 = vadd.f32 %v655_v47, %v645_v2  ;;  %v584_v47 = vmul.f32 %v3416_v19, %v581_v30  ;;  %v3417_v2 = vld [vmem:[#allocation13_spill] sm:$0xff] }
 0x4dc   : > { %v650_v57 = vadd.f32 %v574_v8, %v534_v14 }
 0x4dd   : > { %v665_v20 = vadd.f32 %v663_v37, %v657_v12 }
 0x4df   : > { %v1976_v40 = vpop.eup %1975  ;;  %v613_v54 = vpop.permute.xlu1 %612 }
 0x4e0   : > { %768 = vrot.lane.b32.xlu0 %v1976_v40, %s2207_s24  ;;  %v616_v59 = vmul.f32 %v2630_v62, %v613_v54  ;;  %v1707_v54 = vmul.f32 -1.442695, %v2729_v11 }
 0x4e2   : > { %v658_v12 = vadd.f32 %v650_v57, %v616_v59 }
 0x4e4   : > { %v619_v23 = vpop.permute.xlu1 %618 }
 0x4e5   : > { %v625_v40 = vmul.f32 %v2533_v36, %v619_v23 }
 0x4e7   : > { %v659_v22 = vadd.f32 %v651_v61, %v625_v40  ;;  %v626_v40 = vmul.f32 %v2623_v32, %v623_v46 }
 0x4e9   : > { %v629_v1 = vpop.permute.xlu1 %628 }
 0x4ea   : > { %v635_v48 = vmul.f32 %v2552_v53, %v629_v1  ;;  %v606_v1 = vmul.f32 %v3417_v2, %v603_v49  ;;  %v652_v49 = vadd.f32 %v584_v47, %v544_v10 }
 0x4ec   : > { %v661_v25 = vadd.f32 %v653_v35, %v635_v48  ;;  %v3419_v35 = vld [vmem:[#allocation4_spill] sm:$0xff]  ;;  %v660_v17 = vadd.f32 %v652_v49, %v626_v40 }
 0x4ed   : > { %v633_v45 = vpop.permute.xlu1 %632  ;;  %v648_v16 = vadd.f32 %v564_v26, %v3419_v35 }
 0x4ee   : > { %v667_v23 = vadd.f32 %v661_v25, %v659_v22  ;;  %v636_v56 = vmul.f32 %v2640_v13, %v633_v45 }
 0x4ef   : > { %v656_v61 = vadd.f32 %v648_v16, %v606_v1 }
 0x4f0   : > { %v669_v42 = vadd.f32 %v667_v23, %v665_v20  ;;  %v662_v37 = vadd.f32 %v654_v9, %v636_v56 }
 0x4f2   : > { %1977 = vtanh.f32 %v669_v42  ;;  %v643_v30 = vpop.permute.xlu1 %642  ;;  %v668_v22 = vadd.f32 %v662_v37, %v660_v17  ;;  %v1702_v14 = vmul.f32 -1.442695, %v669_v42 }
 0x4f3   : > { %v646_v48 = vmul.f32 %v2647_v7, %v643_v30 }
 0x4f5   : > { %v664_v26 = vadd.f32 %v656_v61, %v646_v48 }
 0x4f7   : > { %v666_v25 = vadd.f32 %v664_v26, %v658_v12 }
 0x4f9   : > { %v670_v45 = vadd.f32 %v668_v22, %v666_v25 }
 0x4fb   : > { %1979 = vtanh.f32 %v670_v45  ;;  %v1703_v11 = vmul.f32 -1.442695, %v670_v45 }
 0x4fc   : > { %v1978_v58 = vpop.eup %1977  ;;  %1981 = vpow2.f32 %v1707_v54 }
 0x4fd   : > { %689 = vrot.lane.b32.xlu1 %v1978_v58, %s2207_s24  ;;  %1983 = vpow2.f32 %v1708_v3 }
 0x505   : > { %v1980_v46 = vpop.eup %1979 }
 0x506   : > { %691 = vrot.lane.b32.xlu0 %v1980_v46, %s2207_s24  ;;  %v1982_v8 = vpop.eup %1981 }
 0x507   : > { %v754_v20 = vadd.f32 1.0, %v1982_v8  ;;  %v1984_v23 = vpop.eup %1983 }
 0x508   : > { %v755_v31 = vadd.f32 1.0, %v1984_v23 }
 0x509   : > { %1985 = vrcp.f32 %v754_v20 }
 0x50a   : > { %1987 = vrcp.f32 %v755_v31 }
 0x50b   : > { %1989 = vpow2.f32 %v1702_v14 }
 0x50c   : > { %1991 = vpow2.f32 %v1703_v11 }
 0x513   : > { %v1986_v47 = vpop.eup %1985 }
 0x514   : > { %v1988_v16 = vpop.eup %1987  ;;  %v762_v17 = vmul.f32 %v1986_v47, %v2674_v21 }
 0x515   : > { %v1990_v43 = vpop.eup %1989  ;;  %v763_v22 = vmul.f32 %v1988_v16, %v2682_v34 }
 0x516   : > { %v677_v40 = vadd.f32 1.0, %v1990_v43  ;;  %v1992_v59 = vpop.eup %1991 }
 0x517   : > { %v678_v57 = vadd.f32 1.0, %v1992_v59 }
 0x518   : > { %1993 = vrcp.f32 %v677_v40 }
 0x519   : > { %1995 = vrcp.f32 %v678_v57 }
 0x522   : > { %v1994_v30 = vpop.eup %1993 }
 0x523   : > { %v1996_v42 = vpop.eup %1995  ;;  %v685_v21 = vmul.f32 %v1994_v30, %v2678_v63 }
 0x524   : > { %v686_v34 = vmul.f32 %v1996_v42, %v2686_v33 }
 0x549   : > { %v767_v1 = vpop.permute.xlu1 %766 }
 0x54a   : > { %v772_v56 = vmul.f32 %v1986_v47, %v767_v1 }
 0x54c   : > { %776 = vrot.lane.b32.xlu1 %v772_v56, %s2208_s25 }
 0x552   : > { %v769_v10 = vpop.permute.xlu0 %768 }
 0x553   : > { %v773_v9 = vmul.f32 %v1988_v16, %v769_v10 }
 0x555   : > { %778 = vrot.lane.b32.xlu0 %v773_v9, %s2208_s25 }
 0x56f   : > { %v690_v49 = vpop.permute.xlu1 %689 }
 0x570   : > { %v695_v61 = vmul.f32 %v1994_v30, %v690_v49 }
 0x572   : > { %699 = vrot.lane.b32.xlu1 %v695_v61, %s2208_s25  ;;  %v2842_v61 = vld [vmem:[%s3341_s2 + $0x30] sm:$0xff] }
 0x573   : > { %3421 = vst [vmem:[#allocation7_spill] sm:$0xff] %v2842_v61 }
 0x578   : > { %v692_v37 = vpop.permute.xlu0 %691 }
 0x579   : > { %v696_v48 = vmul.f32 %v1996_v42, %v692_v37  ;;  %v1712_v37 = vld [vmem:[%s2379_s12 + $0x30] sm:$0xff] }
 0x57b   : > { %701 = vrot.lane.b32.xlu0 %v696_v48, %s2208_s25 }
 0x5be   : > { %v777_v12 = vpop.permute.xlu1 %776 }
 0x5bf   : > { %v2786_v26 = vadd.f32 %v777_v12, %v762_v17  ;;  %v2849_v12 = vld [vmem:[%s3341_s2] sm:$0xff] }
 0x5c0   : > { %3422 = vst [vmem:[#allocation6_spill] sm:$0xff] %v2849_v12 }
 0x5c1   : > { %1997 = vtanh.f32 %v2786_v26 }
 0x5c7   : > { %v779_v25 = vpop.permute.xlu0 %778 }
 0x5c8   : > { %v2790_v45 = vadd.f32 %v779_v25, %v763_v22  ;;  %v2856_v25 = vld [vmem:[%s3341_s2 + $0x10] sm:$0xff] }
 0x5c9   : > { %3423 = vst [vmem:[#allocation5_spill] sm:$0xff] %v2856_v25 }
 0x5ca   : > { %1999 = vtanh.f32 %v2790_v45 }
 0x5cb   : > { %v1998_v58 = vpop.eup %1997 }
 0x5cc   : > { %788 = vrot.lane.b32.xlu1 %v1998_v58, %s2208_s25 }
 0x5d4   : > { %v2000_v46 = vpop.eup %1999 }
 0x5d5   : > { %790 = vrot.lane.b32.xlu0 %v2000_v46, %s2208_s25  ;;  %v2863_v46 = vld [vmem:[%s3341_s2 + $0x40] sm:$0xff] }
 0x5d6   : > { %3424 = vst [vmem:[#allocation10_spill] sm:$0xff] %v2863_v46 }
 0x5e4   : > { %v700_v54 = vpop.permute.xlu1 %699 }
 0x5e5   : > { %v2796_v3 = vadd.f32 %v700_v54, %v685_v21  ;;  %v2869_v54 = vld [vmem:[%s3341_s2 + $0x50] sm:$0xff] }
 0x5e6   : > { %3425 = vst [vmem:[#allocation11_spill] sm:$0xff] %v2869_v54 }
 0x5e7   : > { %2001 = vtanh.f32 %v2796_v3 }
 0x5ed   : > { %v702_v8 = vpop.permute.xlu0 %701 }
 0x5ee   : > { %v2800_v20 = vadd.f32 %v702_v8, %v686_v34 }
 0x5f0   : > { %2003 = vtanh.f32 %v2800_v20 }
 0x5f1   : > { %v2002_v23 = vpop.eup %2001 }
 0x5f2   : > { %711 = vrot.lane.b32.xlu1 %v2002_v23, %s2208_s25  ;;  %v2875_v23 = vld [vmem:[%s3341_s2 + $0x20] sm:$0xff] }
 0x5f3   : > { %3426 = vst [vmem:[#allocation13_spill] sm:$0xff] %v2875_v23 }
 0x5fa   : > { %v2004_v31 = vpop.eup %2003 }
 0x5fb   : > { %713 = vrot.lane.b32.xlu0 %v2004_v31, %s2208_s25 }
 0x63e   : > { %v789_v1 = vpop.permute.xlu1 %788 }
 0x63f   : > { %v794_v63 = vmul.f32 %v1986_v47, %v789_v1 }
 0x641   : > { %829 = vperm.xlu1 %1865, %v794_v63  }
 0x645   : > { %1867 = vset.pattern.permute.xlu1 %v3406_v15 }
 0x646   : > { %798 = vperm.xlu1 %1867, %v794_v63  }
 0x647   : > { %v791_v56 = vpop.permute.xlu0 %790 }
 0x648   : > { %v795_v14 = vmul.f32 %v1988_v16, %v791_v56 }
 0x64a   : > { %803 = vperm.xlu1 %1867, %v795_v14   ;;  %833 = vperm.xlu0 %1866, %v795_v14  }
 0x64e   : > { %1869 = vset.pattern.permute.xlu1 %v3407_v52  ;;  %1868 = vset.pattern.permute.xlu0 %v3407_v52 }
 0x64f   : > { %813 = vperm.xlu1 %1869, %v795_v14   ;;  %809 = vperm.xlu0 %1868, %v794_v63  }
 0x653   : > { %1870 = vset.pattern.permute.xlu1 %v3408_v4  ;;  %1871 = vset.pattern.permute.xlu0 %v3408_v4 }
 0x654   : > { %819 = vperm.xlu1 %1870, %v794_v63   ;;  %823 = vperm.xlu0 %1871, %v795_v14  }
 0x658   : > { %1872 = vset.pattern.permute.xlu1 %v3409_v0  ;;  %1873 = vset.pattern.permute.xlu0 %v3410_v60 }
 0x659   : > { %839 = vperm.xlu1 %1872, %v794_v63   ;;  %849 = vperm.xlu0 %1873, %v794_v63  }
 0x65d   : > { %843 = vperm.xlu1 %1872, %v795_v14   ;;  %1876 = vset.pattern.permute.xlu0 %v3406_v15 }
 0x661   : > { %1874 = vset.pattern.permute.xlu1 %v3410_v60 }
 0x662   : > { %853 = vperm.xlu1 %1874, %v795_v14  }
 0x664   : > { %v712_v33 = vpop.permute.xlu1 %711 }
 0x665   : > { %v717_v47 = vmul.f32 %v1994_v30, %v712_v33 }
 0x666   : > { %1875 = vset.pattern.permute.xlu1 %v3406_v15 }
 0x667   : > { %860 = vperm.xlu1 %1875, %v717_v47  }
 0x66b   : > { %1877 = vset.pattern.permute.xlu1 %v3407_v52 }
 0x66c   : > { %871 = vperm.xlu1 %1877, %v717_v47  }
 0x66d   : > { %v714_v16 = vpop.permute.xlu0 %713 }
 0x66e   : > { %v718_v10 = vmul.f32 %v1996_v42, %v714_v16 }
 0x670   : > { %875 = vperm.xlu1 %1877, %v718_v10   ;;  %865 = vperm.xlu0 %1876, %v718_v10  }
 0x674   : > { %1879 = vset.pattern.permute.xlu1 %v3408_v4  ;;  %1878 = vset.pattern.permute.xlu0 %v3408_v4 }
 0x675   : > { %885 = vperm.xlu1 %1879, %v718_v10   ;;  %881 = vperm.xlu0 %1878, %v717_v47  }
 0x679   : > { %1880 = vset.pattern.permute.xlu1 %v3411_v41  ;;  %1881 = vset.pattern.permute.xlu0 %v3411_v41 }
 0x67a   : > { %891 = vperm.xlu1 %1880, %v717_v47   ;;  %895 = vperm.xlu0 %1881, %v718_v10  }
 0x67e   : > { %1882 = vset.pattern.permute.xlu1 %v3409_v0  ;;  %1883 = vset.pattern.permute.xlu0 %v3410_v60 }
 0x67f   : > { %901 = vperm.xlu1 %1882, %v717_v47   ;;  %911 = vperm.xlu0 %1883, %v717_v47   ;;  %v2884_v47 = vld [vmem:[%s3341_s2 + $0x48] sm:$0xff] }
 0x680   : > { %3427 = vst [vmem:[#allocation12_spill] sm:$0xff] %v2884_v47 }
 0x683   : > { %905 = vperm.xlu1 %1882, %v718_v10   ;;  %1886 = vset.pattern.permute.xlu0 %v3411_v41 }
 0x687   : > { %1884 = vset.pattern.permute.xlu1 %v3410_v60 }
 0x688   : > { %915 = vperm.xlu1 %1884, %v718_v10  }
 0x68c   : > { %1885 = vset.pattern.permute.xlu1 %v3411_v41 }
 0x6c0   : > { %v830_v9 = vpop.permute.xlu1 %829 }
 0x6c1   : > { %v1003_v42 = vmul.f32 %v2842_v61, %v830_v9 }
 0x6c3   : > { %v1009_v8 = vadd.f32 %v1712_v37, %v1003_v42  ;;  %v2893_v42 = vld [vmem:[%s3341_s2 + $0x8] sm:$0xff] }
 0x6c4   : > { %3428 = vst [vmem:[#allocation9_spill] sm:$0xff] %v2893_v42 }
 0x6c5   : > { %v2825_v11 = vpop.permute.xlu1 %798 }
 0x6c6   : > { %v997_v22 = vmul.f32 %v2849_v12, %v2825_v11 }
 0x6c9   : > { %v2827_v43 = vpop.permute.xlu1 %803  ;;  %v2829_v40 = vpop.permute.xlu0 %833 }
 0x6ca   : > { %v998_v37 = vmul.f32 %v2893_v42, %v2827_v43 }
 0x6ce   : > { %v2831_v59 = vpop.permute.xlu1 %813  ;;  %v2833_v57 = vpop.permute.xlu0 %809 }
 0x6cf   : > { %v999_v58 = vmul.f32 %v2856_v25, %v2833_v57 }
 0x6d3   : > { %v2835_v30 = vpop.permute.xlu1 %819  ;;  %v2837_v49 = vpop.permute.xlu0 %823 }
 0x6d4   : > { %v1001_v31 = vmul.f32 %v2875_v23, %v2835_v30 }
 0x6d8   : > { %v840_v48 = vpop.permute.xlu1 %839  ;;  %v850_v17 = vpop.permute.xlu0 %849 }
 0x6d9   : > { %v1005_v21 = vmul.f32 %v2863_v46, %v840_v48  ;;  %v1007_v34 = vmul.f32 %v2869_v54, %v850_v17 }
 0x6db   : > { %v1011_v1 = vadd.f32 %v1005_v21, %v997_v22  ;;  %v1013_v63 = vadd.f32 %v1007_v34, %v999_v58  ;;  %v2900_v22 = vld [vmem:[%s3341_s2 + $0x38] sm:$0xff] }
 0x6dc   : > { %v2879_v56 = vpop.permute.xlu1 %843  ;;  %3429 = vst [vmem:[#allocation14_spill] sm:$0xff] %v2900_v22  ;;  %v1004_v58 = vmul.f32 %v2900_v22, %v2829_v40  ;;  %v1713_v21 = vld [vmem:[%s2379_s12 + $0x38] sm:$0xff]  ;;  %v2922_v22 = vld [vmem:[%s3341_s2 + $0x28] sm:$0xff] }
 0x6dd   : > { %v1015_v14 = vadd.f32 %v1011_v1, %v1009_v8  ;;  %v1017_v33 = vadd.f32 %v1013_v63, %v1001_v31  ;;  %v1006_v16 = vmul.f32 %v2884_v47, %v2879_v56  ;;  %v2909_v8 = vld [vmem:[%s3341_s2 + $0x18] sm:$0xff]  ;;  %3432 = vst [vmem:[#allocation17_spill] sm:$0xff] %v2922_v22  ;;  %v1002_v42 = vmul.f32 %v2922_v22, %v2837_v49  ;;  %v2941_v22 = vld [vmem:[%s3342_s3 + $0x10] sm:$0xff] }
 0x6de   : > { %3430 = vst [vmem:[#allocation15_spill] sm:$0xff] %v2909_v8  ;;  %v1000_v31 = vmul.f32 %v2909_v8, %v2831_v59  ;;  %v2916_v63 = vld [vmem:[%s3341_s2 + $0x58] sm:$0xff] }
 0x6df   : > { %v2888_v10 = vadd.f32 %v1017_v33, %v1015_v14  ;;  %v1012_v1 = vadd.f32 %v1006_v16, %v998_v37  ;;  %3431 = vst [vmem:[#allocation16_spill] sm:$0xff] %v2916_v63  ;;  %v1010_v33 = vadd.f32 %v1713_v21, %v1004_v58 }
 0x6e1   : > { %2005 = vtanh.f32 %v2888_v10  ;;  %v854_v34 = vpop.permute.xlu1 %853  ;;  %v1016_v23 = vadd.f32 %v1012_v1, %v1010_v33 }
 0x6e2   : > { %v1008_v14 = vmul.f32 %v2916_v63, %v854_v34 }
 0x6e4   : > { %v1014_v47 = vadd.f32 %v1008_v14, %v1000_v31  ;;  %v836_v31 = vmul.f32 %v2488_v18, %v830_v9  ;;  %v3433_v14 = vld [vmem:[#allocation8_spill] sm:$0xff]  ;;  %v816_v18 = vmul.f32 %v2941_v22, %v2833_v57  ;;  %v3435_v9 = vld [vmem:[#allocation3_spill] sm:$0xff] }
 0x6e5   : > { %3434 = vst [vmem:[#allocation8_spill] sm:$0xff] %v2941_v22 }
 0x6e6   : > { %v1018_v8 = vadd.f32 %v1014_v47, %v1002_v42  ;;  %v861_v16 = vpop.permute.xlu1 %860  ;;  %v856_v42 = vmul.f32 %v2506_v27, %v850_v17  ;;  %v2949_v27 = vld [vmem:[%s3342_s3 + $0x20] sm:$0xff] }
 0x6e7   : > { %3436 = vst [vmem:[#allocation18_spill] sm:$0xff] %v2949_v27 }
 0x6e8   : > { %v2926_v37 = vadd.f32 %v1018_v8, %v1016_v23  ;;  %v846_v23 = vmul.f32 %v2523_v6, %v840_v48  ;;  %v868_v8 = vmul.f32 %v2511_v28, %v861_v16  ;;  %v826_v28 = vmul.f32 %v2949_v27, %v2835_v30 }
 0x6ea   : > { %2007 = vtanh.f32 %v2926_v37  ;;  %v926_v16 = vadd.f32 %v868_v8, %v826_v28 }
 0x6eb   : > { %v2006_v54 = vpop.eup %2005  ;;  %v872_v46 = vpop.permute.xlu1 %871 }
 0x6ec   : > { %1039 = vrot.lane.b32.xlu1 %v2006_v54, %s2207_s24  ;;  %v878_v33 = vmul.f32 %v3433_v14, %v872_v46  ;;  %v806_v54 = vmul.f32 %v2825_v11, %v3412_v39  ;;  %v924_v11 = vadd.f32 %v856_v42, %v816_v18 }
 0x6ee   : > { %v922_v48 = vadd.f32 %v846_v23, %v806_v54 }
 0x6ef   : > { %v876_v58 = vpop.permute.xlu1 %875  ;;  %v866_v21 = vpop.permute.xlu0 %865 }
 0x6f0   : > { %v879_v42 = vmul.f32 %v3417_v2, %v876_v58 }
 0x6f4   : > { %v2008_v63 = vpop.eup %2007  ;;  %v886_v25 = vpop.permute.xlu1 %885 }
 0x6f5   : > { %v882_v12 = vpop.permute.xlu0 %881  ;;  %1041 = vrot.lane.b32.xlu0 %v2008_v63, %s2207_s24  ;;  %v920_v63 = vadd.f32 %v836_v31, %v3435_v9  ;;  %v837_v9 = vmul.f32 %v2569_v24, %v2829_v40  ;;  %v807_v40 = vmul.f32 %v2827_v43, %v3418_v5 }
 0x6f6   : > { %v888_v6 = vmul.f32 %v2538_v38, %v882_v12  ;;  %v869_v38 = vmul.f32 %v2598_v51, %v866_v21  ;;  %v847_v12 = vmul.f32 %v2585_v50, %v2879_v56  ;;  %v817_v50 = vmul.f32 %v3420_v44, %v2831_v59 }
 0x6f7   : > { %v928_v57 = vadd.f32 %v920_v63, %v878_v33  ;;  %v921_v51 = vadd.f32 %v837_v9, %v3419_v35  ;;  %v889_v56 = vmul.f32 %v2630_v62, %v886_v25  ;;  %v1715_v59 = vmul.f32 -1.442695, %v2926_v37 }
 0x6f8   : > { %v930_v22 = vadd.f32 %v922_v48, %v888_v6 }
 0x6f9   : > { %v892_v1 = vpop.permute.xlu1 %891  ;;  %v896_v47 = vpop.permute.xlu0 %895  ;;  %v929_v2 = vadd.f32 %v921_v51, %v879_v42 }
 0x6fa   : > { %v898_v39 = vmul.f32 %v2533_v36, %v892_v1 }
 0x6fc   : > { %v932_v61 = vadd.f32 %v924_v11, %v898_v39 }
 0x6fe   : > { %v902_v17 = vpop.permute.xlu1 %901  ;;  %v912_v46 = vpop.permute.xlu0 %911 }
 0x6ff   : > { %v908_v31 = vmul.f32 %v2552_v53, %v902_v17  ;;  %v918_v14 = vmul.f32 %v2559_v55, %v912_v46  ;;  %v827_v53 = vmul.f32 %v3415_v29, %v2837_v49  ;;  %v857_v55 = vmul.f32 %v3416_v19, %v854_v34 }
 0x700   : > { %v899_v29 = vmul.f32 %v2623_v32, %v896_v47  ;;  %v923_v49 = vadd.f32 %v847_v12, %v807_v40  ;;  %v1714_v32 = vmul.f32 -1.442695, %v2888_v10 }
 0x701   : > { %v934_v30 = vadd.f32 %v926_v16, %v908_v31  ;;  %v936_v27 = vadd.f32 %v928_v57, %v918_v14 }
 0x702   : > { %v906_v36 = vpop.permute.xlu1 %905  ;;  %v931_v5 = vadd.f32 %v923_v49, %v889_v56 }
 0x703   : > { %v940_v1 = vadd.f32 %v934_v30, %v932_v61  ;;  %v938_v23 = vadd.f32 %v936_v27, %v930_v22  ;;  %v909_v24 = vmul.f32 %v2640_v13, %v906_v36  ;;  %v927_v61 = vadd.f32 %v869_v38, %v827_v53 }
 0x704   : > { %v925_v22 = vadd.f32 %v857_v55, %v817_v50 }
 0x705   : > { %v942_v21 = vadd.f32 %v940_v1, %v938_v23  ;;  %v935_v13 = vadd.f32 %v927_v61, %v909_v24 }
 0x706   : > { %v933_v43 = vadd.f32 %v925_v22, %v899_v29 }
 0x707   : > { %2009 = vtanh.f32 %v942_v21  ;;  %v916_v19 = vpop.permute.xlu1 %915  ;;  %v1709_v28 = vmul.f32 -1.442695, %v942_v21 }
 0x708   : > { %v919_v34 = vmul.f32 %v2647_v7, %v916_v19  ;;  %v941_v8 = vadd.f32 %v935_v13, %v933_v43 }
 0x70a   : > { %v937_v58 = vadd.f32 %v929_v2, %v919_v34 }
 0x70c   : > { %v939_v33 = vadd.f32 %v937_v58, %v931_v5 }
 0x70e   : > { %v943_v54 = vadd.f32 %v941_v8, %v939_v33 }
 0x710   : > { %2011 = vtanh.f32 %v943_v54  ;;  %v1710_v10 = vmul.f32 -1.442695, %v943_v54 }
 0x711   : > { %v2010_v44 = vpop.eup %2009  ;;  %2013 = vpow2.f32 %v1714_v32 }
 0x712   : > { %962 = vrot.lane.b32.xlu1 %v2010_v44, %s2207_s24  ;;  %2015 = vpow2.f32 %v1715_v59  ;;  %v1719_v59 = vld [vmem:[%s2379_s12 + $0x40] sm:$0xff] }
 0x71a   : > { %v2012_v62 = vpop.eup %2011 }
 0x71b   : > { %964 = vrot.lane.b32.xlu0 %v2012_v62, %s2207_s24  ;;  %v2014_v7 = vpop.eup %2013  ;;  %v3437_v62 = vld [vmem:[#allocation7_spill] sm:$0xff] }
 0x71c   : > { %v1027_v25 = vadd.f32 1.0, %v2014_v7  ;;  %v2016_v47 = vpop.eup %2015 }
 0x71d   : > { %v1028_v18 = vadd.f32 1.0, %v2016_v47  ;;  %v3438_v47 = vld [vmem:[#allocation6_spill] sm:$0xff] }
 0x71e   : > { %2017 = vrcp.f32 %v1027_v25 }
 0x71f   : > { %2019 = vrcp.f32 %v1028_v18 }
 0x720   : > { %2021 = vpow2.f32 %v1709_v28 }
 0x721   : > { %2023 = vpow2.f32 %v1710_v10  ;;  %v3442_v10 = vld [vmem:[#allocation13_spill] sm:$0xff] }
 0x728   : > { %v2018_v9 = vpop.eup %2017 }
 0x729   : > { %v2020_v6 = vpop.eup %2019  ;;  %v1035_v36 = vmul.f32 %v2018_v9, %v2786_v26 }
 0x72a   : > { %v2022_v37 = vpop.eup %2021  ;;  %v1036_v23 = vmul.f32 %v2020_v6, %v2790_v45 }
 0x72b   : > { %v950_v48 = vadd.f32 1.0, %v2022_v37  ;;  %v2024_v17 = vpop.eup %2023 }
 0x72c   : > { %v951_v46 = vadd.f32 1.0, %v2024_v17 }
 0x72d   : > { %2025 = vrcp.f32 %v950_v48 }
 0x72e   : > { %2027 = vrcp.f32 %v951_v46 }
 0x737   : > { %v2026_v16 = vpop.eup %2025 }
 0x738   : > { %v2028_v14 = vpop.eup %2027  ;;  %v958_v26 = vmul.f32 %v2026_v16, %v2796_v3 }
 0x739   : > { %v959_v45 = vmul.f32 %v2028_v14, %v2800_v20 }
 0x75e   : > { %v1040_v63 = vpop.permute.xlu1 %1039 }
 0x75f   : > { %v1045_v27 = vmul.f32 %v2018_v9, %v1040_v63 }
 0x761   : > { %1049 = vrot.lane.b32.xlu1 %v1045_v27, %s2208_s25  ;;  %v3440_v27 = vld [vmem:[#allocation10_spill] sm:$0xff] }
 0x767   : > { %v1042_v39 = vpop.permute.xlu0 %1041 }
 0x768   : > { %v1046_v11 = vmul.f32 %v2020_v6, %v1042_v39 }
 0x76a   : > { %1051 = vrot.lane.b32.xlu0 %v1046_v11, %s2208_s25 }
 0x784   : > { %v963_v57 = vpop.permute.xlu1 %962 }
 0x785   : > { %v968_v31 = vmul.f32 %v2026_v16, %v963_v57 }
 0x787   : > { %972 = vrot.lane.b32.xlu1 %v968_v31, %s2208_s25  ;;  %v3443_v31 = vld [vmem:[#allocation12_spill] sm:$0xff] }
 0x78d   : > { %v965_v30 = vpop.permute.xlu0 %964 }
 0x78e   : > { %v969_v38 = vmul.f32 %v2028_v14, %v965_v30 }
 0x790   : > { %974 = vrot.lane.b32.xlu0 %v969_v38, %s2208_s25  ;;  %v3444_v38 = vld [vmem:[#allocation9_spill] sm:$0xff] }
 0x7d3   : > { %v1050_v12 = vpop.permute.xlu1 %1049 }
 0x7d4   : > { %v2984_v1 = vadd.f32 %v1050_v12, %v1035_v36  ;;  %v3445_v12 = vld [vmem:[#allocation14_spill] sm:$0xff] }
 0x7d6   : > { %2029 = vtanh.f32 %v2984_v1 }
 0x7dc   : > { %v1052_v53 = vpop.permute.xlu0 %1051 }
 0x7dd   : > { %v2988_v55 = vadd.f32 %v1052_v53, %v1036_v23  ;;  %v1720_v53 = vld [vmem:[%s2379_s12 + $0x48] sm:$0xff] }
 0x7df   : > { %2031 = vtanh.f32 %v2988_v55 }
 0x7e0   : > { %v2030_v42 = vpop.eup %2029 }
 0x7e1   : > { %1061 = vrot.lane.b32.xlu1 %v2030_v42, %s2208_s25 }
 0x7e9   : > { %v2032_v24 = vpop.eup %2031 }
 0x7ea   : > { %1063 = vrot.lane.b32.xlu0 %v2032_v24, %s2208_s25  ;;  %v3446_v24 = vld [vmem:[#allocation15_spill] sm:$0xff] }
 0x7f9   : > { %v973_v40 = vpop.permute.xlu1 %972 }
 0x7fa   : > { %v2994_v51 = vadd.f32 %v973_v40, %v958_v26 }
 0x7fc   : > { %2033 = vtanh.f32 %v2994_v51 }
 0x802   : > { %v975_v21 = vpop.permute.xlu0 %974 }
 0x803   : > { %v2998_v50 = vadd.f32 %v975_v21, %v959_v45  ;;  %v3447_v45 = vld [vmem:[#allocation16_spill] sm:$0xff] }
 0x805   : > { %2035 = vtanh.f32 %v2998_v50 }
 0x806   : > { %v2034_v61 = vpop.eup %2033 }
 0x807   : > { %984 = vrot.lane.b32.xlu1 %v2034_v61, %s2208_s25 }
 0x80f   : > { %v2036_v56 = vpop.eup %2035 }
 0x810   : > { %986 = vrot.lane.b32.xlu0 %v2036_v56, %s2208_s25  ;;  %v3448_v56 = vld [vmem:[#allocation17_spill] sm:$0xff] }
 0x853   : > { %v1062_v29 = vpop.permute.xlu1 %1061 }
 0x854   : > { %v1067_v3 = vmul.f32 %v2018_v9, %v1062_v29  ;;  %v3439_v9 = vld [vmem:[#allocation5_spill] sm:$0xff] }
 0x856   : > { %1102 = vperm.xlu1 %1885, %v1067_v3  }
 0x85a   : > { %1887 = vset.pattern.permute.xlu1 %v3406_v15 }
 0x85b   : > { %1071 = vperm.xlu1 %1887, %v1067_v3  }
 0x85c   : > { %v1064_v49 = vpop.permute.xlu0 %1063 }
 0x85d   : > { %v1068_v19 = vmul.f32 %v2020_v6, %v1064_v49  ;;  %v3441_v6 = vld [vmem:[#allocation11_spill] sm:$0xff] }
 0x85f   : > { %1076 = vperm.xlu1 %1887, %v1068_v19   ;;  %1106 = vperm.xlu0 %1886, %v1068_v19  }
 0x863   : > { %1889 = vset.pattern.permute.xlu1 %v3407_v52  ;;  %1888 = vset.pattern.permute.xlu0 %v3407_v52 }
 0x864   : > { %1086 = vperm.xlu1 %1889, %v1068_v19   ;;  %1082 = vperm.xlu0 %1888, %v1067_v3  }
 0x868   : > { %1890 = vset.pattern.permute.xlu1 %v3408_v4  ;;  %1891 = vset.pattern.permute.xlu0 %v3408_v4 }
 0x869   : > { %1092 = vperm.xlu1 %1890, %v1067_v3   ;;  %1096 = vperm.xlu0 %1891, %v1068_v19  }
 0x86d   : > { %1892 = vset.pattern.permute.xlu1 %v3409_v0  ;;  %1893 = vset.pattern.permute.xlu0 %v3410_v60 }
 0x86e   : > { %1112 = vperm.xlu1 %1892, %v1067_v3   ;;  %1122 = vperm.xlu0 %1893, %v1067_v3  }
 0x872   : > { %1116 = vperm.xlu1 %1892, %v1068_v19   ;;  %1896 = vset.pattern.permute.xlu0 %v3406_v15 }
 0x876   : > { %1894 = vset.pattern.permute.xlu1 %v3410_v60 }
 0x877   : > { %1126 = vperm.xlu1 %1894, %v1068_v19  }
 0x879   : > { %v985_v20 = vpop.permute.xlu1 %984 }
 0x87a   : > { %v990_v2 = vmul.f32 %v2026_v16, %v985_v20 }
 0x87b   : > { %1895 = vset.pattern.permute.xlu1 %v3406_v15 }
 0x87c   : > { %1133 = vperm.xlu1 %1895, %v990_v2  }
 0x880   : > { %1897 = vset.pattern.permute.xlu1 %v3407_v52 }
 0x881   : > { %1144 = vperm.xlu1 %1897, %v990_v2  }
 0x882   : > { %v987_v22 = vpop.permute.xlu0 %986 }
 0x883   : > { %v991_v13 = vmul.f32 %v2028_v14, %v987_v22 }
 0x885   : > { %1148 = vperm.xlu1 %1897, %v991_v13   ;;  %1138 = vperm.xlu0 %1896, %v991_v13  }
 0x889   : > { %1899 = vset.pattern.permute.xlu1 %v3408_v4  ;;  %1898 = vset.pattern.permute.xlu0 %v3408_v4 }
 0x88a   : > { %1158 = vperm.xlu1 %1899, %v991_v13   ;;  %1154 = vperm.xlu0 %1898, %v990_v2  }
 0x88e   : > { %1900 = vset.pattern.permute.xlu1 %v3411_v41  ;;  %1901 = vset.pattern.permute.xlu0 %v3411_v41 }
 0x88f   : > { %1164 = vperm.xlu1 %1900, %v990_v2   ;;  %1168 = vperm.xlu0 %1901, %v991_v13  }
 0x893   : > { %1902 = vset.pattern.permute.xlu1 %v3409_v0  ;;  %1903 = vset.pattern.permute.xlu0 %v3410_v60 }
 0x894   : > { %1174 = vperm.xlu1 %1902, %v990_v2   ;;  %1184 = vperm.xlu0 %1903, %v990_v2  }
 0x898   : > { %1178 = vperm.xlu1 %1902, %v991_v13   ;;  %1906 = vset.pattern.permute.xlu0 %v3411_v41 }
 0x89c   : > { %1904 = vset.pattern.permute.xlu1 %v3410_v60 }
 0x89d   : > { %1188 = vperm.xlu1 %1904, %v991_v13  }
 0x8a1   : > { %1905 = vset.pattern.permute.xlu1 %v3411_v41 }
 0x8d5   : > { %v1103_v34 = vpop.permute.xlu1 %1102 }
 0x8d6   : > { %v1276_v32 = vmul.f32 %v3437_v62, %v1103_v34 }
 0x8d8   : > { %v1282_v11 = vadd.f32 %v1719_v59, %v1276_v32 }
 0x8da   : > { %v1072_v5 = vpop.permute.xlu1 %1071 }
 0x8db   : > { %v1270_v18 = vmul.f32 %v3438_v47, %v1072_v5 }
 0x8de   : > { %v3023_v43 = vpop.permute.xlu1 %1076  ;;  %v3025_v58 = vpop.permute.xlu0 %1106 }
 0x8df   : > { %v1271_v36 = vmul.f32 %v3444_v38, %v3023_v43  ;;  %v1277_v23 = vmul.f32 %v3445_v12, %v3025_v58  ;;  %v3451_v38 = vld [vmem:[#allocation18_spill] sm:$0xff] }
 0x8e0   : > { %v3107_v12 = vld [vmem:[%s3342_s3 + $0x80] sm:$0xff] }
 0x8e1   : > { %v1283_v61 = vadd.f32 %v1720_v53, %v1277_v23  ;;  %v3113_v53 = vld [vmem:[%s3342_s3 + $0x90] sm:$0xff] }
 0x8e3   : > { %v3027_v8 = vpop.permute.xlu1 %1086  ;;  %v1083_v33 = vpop.permute.xlu0 %1082 }
 0x8e4   : > { %v1272_v63 = vmul.f32 %v3439_v9, %v1083_v33  ;;  %v1273_v26 = vmul.f32 %v3446_v24, %v3027_v8  ;;  %v3068_v9 = vld [vmem:[%s3342_s3 + $0x30] sm:$0xff] }
 0x8e8   : > { %v1093_v54 = vpop.permute.xlu1 %1092  ;;  %v3029_v44 = vpop.permute.xlu0 %1096 }
 0x8e9   : > { %v1274_v37 = vmul.f32 %v3442_v10, %v1093_v54  ;;  %v1275_v29 = vmul.f32 %v3448_v56, %v3029_v44  ;;  %v3125_v56 = vld [vmem:[%s3342_s3 + $0xb0] sm:$0xff] }
 0x8ed   : > { %v1113_v7 = vpop.permute.xlu1 %1112  ;;  %v1123_v25 = vpop.permute.xlu0 %1122 }
 0x8ee   : > { %v1278_v28 = vmul.f32 %v3440_v27, %v1113_v7  ;;  %v1280_v39 = vmul.f32 %v3441_v6, %v1123_v25  ;;  %v3074_v6 = vld [vmem:[%s3342_s3 + $0x40] sm:$0xff] }
 0x8f0   : > { %v1284_v48 = vadd.f32 %v1278_v28, %v1270_v18  ;;  %v1286_v17 = vadd.f32 %v1280_v39, %v1272_v63  ;;  %v1109_v63 = vmul.f32 %v3068_v9, %v1103_v34  ;;  %v1119_v39 = vmul.f32 %v3074_v6, %v1113_v7  ;;  %v3086_v34 = vld [vmem:[%s3342_s3 + $0x60] sm:$0xff] }
 0x8f1   : > { %v3038_v46 = vpop.permute.xlu1 %1116 }
 0x8f2   : > { %v1288_v16 = vadd.f32 %v1284_v48, %v1282_v11  ;;  %v1290_v57 = vadd.f32 %v1286_v17, %v1274_v37  ;;  %v1279_v14 = vmul.f32 %v3443_v31, %v3038_v46  ;;  %v3080_v11 = vld [vmem:[%s3342_s3 + $0x50] sm:$0xff]  ;;  %v3098_v17 = vld [vmem:[%s3342_s3] sm:$0xff] }
 0x8f3   : > { %v1129_v10 = vmul.f32 %v3080_v11, %v1123_v25  ;;  %v3092_v48 = vld [vmem:[%s3342_s3 + $0x70] sm:$0xff]  ;;  %v1079_v25 = vmul.f32 %v3098_v17, %v1072_v5  ;;  %v3450_v31 = vld [vmem:[#allocation3_spill] sm:$0xff] }
 0x8f4   : > { %v3042_v30 = vadd.f32 %v1290_v57, %v1288_v16  ;;  %v1285_v40 = vadd.f32 %v1279_v14, %v1271_v36  ;;  %v3449_v16 = vld [vmem:[#allocation8_spill] sm:$0xff]  ;;  %v1193_v14 = vadd.f32 %v1109_v63, %v3450_v31  ;;  %v1099_v36 = vmul.f32 %v3451_v38, %v1093_v54 }
 0x8f5   : > { %v1089_v57 = vmul.f32 %v3449_v16, %v1083_v33  ;;  %v1195_v24 = vadd.f32 %v1119_v39, %v1079_v25 }
 0x8f6   : > { %2037 = vtanh.f32 %v3042_v30  ;;  %v3050_v42 = vpop.permute.xlu1 %1126  ;;  %v1289_v49 = vadd.f32 %v1285_v40, %v1283_v61 }
 0x8f7   : > { %v1281_v21 = vmul.f32 %v3447_v45, %v3050_v42  ;;  %v1197_v33 = vadd.f32 %v1129_v10, %v1089_v57 }
 0x8f9   : > { %v1287_v3 = vadd.f32 %v1281_v21, %v1273_v26  ;;  %v3119_v21 = vld [vmem:[%s3342_s3 + $0xa0] sm:$0xff] }
 0x8fb   : > { %v1291_v19 = vadd.f32 %v1287_v3, %v1275_v29  ;;  %v1134_v20 = vpop.permute.xlu1 %1133  ;;  %v3131_v3 = vld [vmem:[%s3342_s3 + $0x38] sm:$0xff] }
 0x8fc   : > { %v1141_v37 = vmul.f32 %v3086_v34, %v1134_v20 }
 0x8fd   : > { %v3058_v2 = vadd.f32 %v1291_v19, %v1289_v49  ;;  %v1110_v49 = vmul.f32 %v3131_v3, %v3025_v58 }
 0x8fe   : > { %v1199_v45 = vadd.f32 %v1141_v37, %v1099_v36  ;;  %v3151_v37 = vld [vmem:[%s3342_s3 + $0x28] sm:$0xff] }
 0x8ff   : > { %2039 = vtanh.f32 %v3058_v2  ;;  %v3177_v36 = vld [vmem:[%s3342_s3 + $0x8] sm:$0xff] }
 0x900   : > { %v2038_v22 = vpop.eup %2037  ;;  %v1145_v13 = vpop.permute.xlu1 %1144 }
 0x901   : > { %1312 = vrot.lane.b32.xlu1 %v2038_v22, %s2207_s24  ;;  %v1151_v7 = vmul.f32 %v3092_v48, %v1145_v13 }
 0x903   : > { %v1201_v54 = vadd.f32 %v1193_v14, %v1151_v7  ;;  %v1100_v7 = vmul.f32 %v3151_v37, %v3029_v44  ;;  %v3171_v14 = vld [vmem:[%s3342_s3 + $0xa8] sm:$0xff] }
 0x904   : > { %v1149_v62 = vpop.permute.xlu1 %1148  ;;  %v1139_v32 = vpop.permute.xlu0 %1138 }
 0x909   : > { %v2040_v59 = vpop.eup %2039  ;;  %v3062_v47 = vpop.permute.xlu1 %1158 }
 0x90a   : > { %v1155_v18 = vpop.permute.xlu0 %1154  ;;  %1314 = vrot.lane.b32.xlu0 %v2040_v59, %s2207_s24  ;;  %v3138_v59 = vld [vmem:[%s3342_s3 + $0x68] sm:$0xff] }
 0x90b   : > { %v1161_v23 = vmul.f32 %v3107_v12, %v1155_v18  ;;  %v1142_v18 = vmul.f32 %v3138_v59, %v1139_v32  ;;  %v3158_v32 = vld [vmem:[%s3342_s3 + $0x58] sm:$0xff] }
 0x90c   : > { %v1130_v25 = vmul.f32 %v3158_v32, %v3050_v42  ;;  %v1080_v42 = vmul.f32 %v3177_v36, %v3023_v43 }
 0x90d   : > { %v1203_v19 = vadd.f32 %v1195_v24, %v1161_v23  ;;  %v1194_v23 = vadd.f32 %v1110_v49, %v3419_v35 }
 0x90e   : > { %v1165_v27 = vpop.permute.xlu1 %1164  ;;  %v1169_v28 = vpop.permute.xlu0 %1168 }
 0x90f   : > { %v1171_v5 = vmul.f32 %v3113_v53, %v1165_v27  ;;  %v3144_v27 = vld [vmem:[%s3342_s3 + $0x48] sm:$0xff] }
 0x910   : > { %v1120_v58 = vmul.f32 %v3144_v27, %v3038_v46  ;;  %v3165_v46 = vld [vmem:[%s3342_s3 + $0x78] sm:$0xff] }
 0x911   : > { %v1205_v20 = vadd.f32 %v1197_v33, %v1171_v5  ;;  %v1152_v57 = vmul.f32 %v3165_v46, %v1149_v62  ;;  %v3185_v62 = vld [vmem:[%s3342_s3 + $0x18] sm:$0xff]  ;;  %v1200_v33 = vadd.f32 %v1142_v18, %v1100_v7  ;;  %v1722_v7 = vmul.f32 -1.442695, %v3058_v2 }
 0x912   : > { %v1090_v24 = vmul.f32 %v3185_v62, %v3027_v8 }
 0x913   : > { %v1175_v26 = vpop.permute.xlu1 %1174  ;;  %v1185_v40 = vpop.permute.xlu0 %1184 }
 0x914   : > { %v1181_v61 = vmul.f32 %v3119_v21, %v1175_v26  ;;  %v1191_v29 = vmul.f32 %v3125_v56, %v1185_v40  ;;  %v3192_v26 = vld [vmem:[%s3342_s3 + $0x88] sm:$0xff]  ;;  %v3199_v40 = vld [vmem:[%s3342_s3 + $0x98] sm:$0xff]  ;;  %v1198_v8 = vadd.f32 %v1130_v25, %v1090_v24 }
 0x915   : > { %v1162_v43 = vmul.f32 %v3192_v26, %v3062_v47 }
 0x916   : > { %v1207_v22 = vadd.f32 %v1199_v45, %v1181_v61  ;;  %v1209_v13 = vadd.f32 %v1201_v54, %v1191_v29  ;;  %v1172_v45 = vmul.f32 %v3199_v40, %v1169_v28  ;;  %v1196_v54 = vadd.f32 %v1120_v58, %v1080_v42 }
 0x917   : > { %v1179_v63 = vpop.permute.xlu1 %1178  ;;  %v1202_v29 = vadd.f32 %v1194_v23, %v1152_v57 }
 0x918   : > { %v1213_v39 = vadd.f32 %v1207_v22, %v1205_v20  ;;  %v1211_v10 = vadd.f32 %v1209_v13, %v1203_v19  ;;  %v1182_v44 = vmul.f32 %v3171_v14, %v1179_v63  ;;  %v3205_v19 = vld [vmem:[%s3342_s3 + $0xb8] sm:$0xff]  ;;  %v1204_v20 = vadd.f32 %v1196_v54, %v1162_v43 }
 0x919   : > { %v1206_v22 = vadd.f32 %v1198_v8, %v1172_v45 }
 0x91a   : > { %v1215_v5 = vadd.f32 %v1213_v39, %v1211_v10  ;;  %v1208_v49 = vadd.f32 %v1200_v33, %v1182_v44  ;;  %v1721_v10 = vmul.f32 -1.442695, %v3042_v30 }
 0x91c   : > { %2041 = vtanh.f32 %v1215_v5  ;;  %v1189_v61 = vpop.permute.xlu1 %1188  ;;  %v1214_v18 = vadd.f32 %v1208_v49, %v1206_v22  ;;  %v1716_v43 = vmul.f32 -1.442695, %v1215_v5 }
 0x91d   : > { %v1192_v47 = vmul.f32 %v3205_v19, %v1189_v61 }
 0x91f   : > { %v1210_v13 = vadd.f32 %v1202_v29, %v1192_v47 }
 0x921   : > { %v1212_v63 = vadd.f32 %v1210_v13, %v1204_v20 }
 0x923   : > { %v1216_v39 = vadd.f32 %v1214_v18, %v1212_v63 }
 0x925   : > { %2043 = vtanh.f32 %v1216_v39  ;;  %v1717_v30 = vmul.f32 -1.442695, %v1216_v39 }
 0x926   : > { %v2042_v28 = vpop.eup %2041  ;;  %2045 = vpow2.f32 %v1721_v10 }
 0x927   : > { %1235 = vrot.lane.b32.xlu1 %v2042_v28, %s2207_s24  ;;  %2047 = vpow2.f32 %v1722_v7 }
 0x92f   : > { %v2044_v58 = vpop.eup %2043 }
 0x930   : > { %1237 = vrot.lane.b32.xlu0 %v2044_v58, %s2207_s24  ;;  %v2046_v25 = vpop.eup %2045 }
 0x931   : > { %v1300_v57 = vadd.f32 1.0, %v2046_v25  ;;  %v2048_v44 = vpop.eup %2047 }
 0x932   : > { %v1301_v42 = vadd.f32 1.0, %v2048_v44 }
 0x933   : > { %2049 = vrcp.f32 %v1300_v57 }
 0x934   : > { %2051 = vrcp.f32 %v1301_v42 }
 0x935   : > { %2053 = vpow2.f32 %v1716_v43 }
 0x936   : > { %2055 = vpow2.f32 %v1717_v30 }
 0x93d   : > { %v2050_v23 = vpop.eup %2049 }
 0x93e   : > { %v2052_v45 = vpop.eup %2051  ;;  %v1308_v63 = vmul.f32 %v2050_v23, %v2984_v1 }
 0x93f   : > { %v2054_v2 = vpop.eup %2053  ;;  %v1309_v58 = vmul.f32 %v2052_v45, %v2988_v55 }
 0x940   : > { %v1223_v8 = vadd.f32 1.0, %v2054_v2  ;;  %v2056_v29 = vpop.eup %2055 }
 0x941   : > { %v1224_v49 = vadd.f32 1.0, %v2056_v29 }
 0x942   : > { %2057 = vrcp.f32 %v1223_v8 }
 0x943   : > { %2059 = vrcp.f32 %v1224_v49 }
 0x94c   : > { %v2058_v47 = vpop.eup %2057 }
 0x94d   : > { %v2060_v5 = vpop.eup %2059  ;;  %v1231_v1 = vmul.f32 %v2058_v47, %v2994_v51 }
 0x94e   : > { %v1232_v55 = vmul.f32 %v2060_v5, %v2998_v50 }
 0x973   : > { %v1313_v24 = vpop.permute.xlu1 %1312 }
 0x974   : > { %v1318_v33 = vmul.f32 %v2050_v23, %v1313_v24 }
 0x976   : > { %1322 = vrot.lane.b32.xlu1 %v1318_v33, %s2208_s25 }
 0x97c   : > { %v1315_v54 = vpop.permute.xlu0 %1314 }
 0x97d   : > { %v1319_v61 = vmul.f32 %v2052_v45, %v1315_v54 }
 0x97f   : > { %1324 = vrot.lane.b32.xlu0 %v1319_v61, %s2208_s25 }
 0x999   : > { %v1236_v20 = vpop.permute.xlu1 %1235 }
 0x99a   : > { %v1241_v22 = vmul.f32 %v2058_v47, %v1236_v20 }
 0x99c   : > { %1245 = vrot.lane.b32.xlu1 %v1241_v22, %s2208_s25 }
 0x9a2   : > { %v1238_v13 = vpop.permute.xlu0 %1237 }
 0x9a3   : > { %v1242_v18 = vmul.f32 %v2060_v5, %v1238_v13 }
 0x9a5   : > { %1247 = vrot.lane.b32.xlu0 %v1242_v18, %s2208_s25 }
 0x9e8   : > { %v1323_v39 = vpop.permute.xlu1 %1322 }
 0x9e9   : > { %v3217_v28 = vadd.f32 %v1323_v39, %v1308_v63 }
 0x9eb   : > { %2061 = vtanh.f32 %v3217_v28 }
 0x9f1   : > { %v1325_v10 = vpop.permute.xlu0 %1324 }
 0x9f2   : > { %v3221_v7 = vadd.f32 %v1325_v10, %v1309_v58 }
 0x9f4   : > { %2063 = vtanh.f32 %v3221_v7 }
 0x9f5   : > { %v2062_v25 = vpop.eup %2061 }
 0x9f6   : > { %1334 = vrot.lane.b32.xlu1 %v2062_v25, %s2208_s25 }
 0x9fe   : > { %v2064_v57 = vpop.eup %2063 }
 0x9ff   : > { %1336 = vrot.lane.b32.xlu0 %v2064_v57, %s2208_s25 }
 0xa0e   : > { %v1246_v44 = vpop.permute.xlu1 %1245 }
 0xa0f   : > { %v3227_v42 = vadd.f32 %v1246_v44, %v1231_v1 }
 0xa11   : > { %2065 = vtanh.f32 %v3227_v42 }
 0xa17   : > { %v1248_v24 = vpop.permute.xlu0 %1247 }
 0xa18   : > { %v3231_v33 = vadd.f32 %v1248_v24, %v1232_v55 }
 0xa1a   : > { %2067 = vtanh.f32 %v3231_v33 }
 0xa1b   : > { %v2066_v43 = vpop.eup %2065 }
 0xa1c   : > { %1257 = vrot.lane.b32.xlu1 %v2066_v43, %s2208_s25 }
 0xa24   : > { %v2068_v54 = vpop.eup %2067 }
 0xa25   : > { %1259 = vrot.lane.b32.xlu0 %v2068_v54, %s2208_s25 }
 0xa68   : > { %v1335_v61 = vpop.permute.xlu1 %1334 }
 0xa69   : > { %v3236_v51 = vmul.f32 %v2050_v23, %v1335_v61 }
 0xa6b   : > { %1375 = vperm.xlu1 %1905, %v3236_v51  }
 0xa6f   : > { %1907 = vset.pattern.permute.xlu1 %v3406_v15 }
 0xa70   : > { %1344 = vperm.xlu1 %1907, %v3236_v51  }
 0xa71   : > { %v1337_v50 = vpop.permute.xlu0 %1336 }
 0xa72   : > { %v3241_v30 = vmul.f32 %v2052_v45, %v1337_v50 }
 0xa74   : > { %1349 = vperm.xlu1 %1907, %v3241_v30   ;;  %1379 = vperm.xlu0 %1906, %v3241_v30  }
 0xa78   : > { %1909 = vset.pattern.permute.xlu1 %v3407_v52  ;;  %1908 = vset.pattern.permute.xlu0 %v3407_v52 }
 0xa79   : > { %1359 = vperm.xlu1 %1909, %v3241_v30   ;;  %1355 = vperm.xlu0 %1908, %v3236_v51  }
 0xa7d   : > { %1910 = vset.pattern.permute.xlu1 %v3408_v4  ;;  %1911 = vset.pattern.permute.xlu0 %v3408_v4 }
 0xa7e   : > { %1365 = vperm.xlu1 %1910, %v3236_v51   ;;  %1369 = vperm.xlu0 %1911, %v3241_v30  }
 0xa82   : > { %1912 = vset.pattern.permute.xlu1 %v3409_v0  ;;  %1913 = vset.pattern.permute.xlu0 %v3410_v60 }
 0xa83   : > { %1385 = vperm.xlu1 %1912, %v3236_v51   ;;  %1395 = vperm.xlu0 %1913, %v3236_v51  }
 0xa87   : > { %1389 = vperm.xlu1 %1912, %v3241_v30   ;;  %1916 = vset.pattern.permute.xlu0 %v3406_v15 }
 0xa8b   : > { %1914 = vset.pattern.permute.xlu1 %v3410_v60 }
 0xa8c   : > { %1399 = vperm.xlu1 %1914, %v3241_v30  }
 0xa8e   : > { %v1258_v23 = vpop.permute.xlu1 %1257 }
 0xa8f   : > { %v1263_v45 = vmul.f32 %v2058_v47, %v1258_v23 }
 0xa90   : > { %1915 = vset.pattern.permute.xlu1 %v3406_v15 }
 0xa91   : > { %1406 = vperm.xlu1 %1915, %v1263_v45  }
 0xa95   : > { %1917 = vset.pattern.permute.xlu1 %v3407_v52 }
 0xa96   : > { %1417 = vperm.xlu1 %1917, %v1263_v45  }
 0xa97   : > { %v1260_v2 = vpop.permute.xlu0 %1259 }
 0xa98   : > { %v1264_v8 = vmul.f32 %v2060_v5, %v1260_v2 }
 0xa9a   : > { %1421 = vperm.xlu1 %1917, %v1264_v8   ;;  %1411 = vperm.xlu0 %1916, %v1264_v8  }
 0xa9e   : > { %1919 = vset.pattern.permute.xlu1 %v3408_v4  ;;  %1918 = vset.pattern.permute.xlu0 %v3408_v4 }
 0xa9f   : > { %1431 = vperm.xlu1 %1919, %v1264_v8   ;;  %1427 = vperm.xlu0 %1918, %v1263_v45  }
 0xaa3   : > { %1920 = vset.pattern.permute.xlu1 %v3411_v41  ;;  %1921 = vset.pattern.permute.xlu0 %v3411_v41 }
 0xaa4   : > { %1437 = vperm.xlu1 %1920, %v1263_v45   ;;  %1441 = vperm.xlu0 %1921, %v1264_v8  }
 0xaa8   : > { %1922 = vset.pattern.permute.xlu1 %v3409_v0  ;;  %1923 = vset.pattern.permute.xlu0 %v3410_v60 }
 0xaa9   : > { %1447 = vperm.xlu1 %1922, %v1263_v45   ;;  %1457 = vperm.xlu0 %1923, %v1263_v45  }
 0xaad   : > { %1451 = vperm.xlu1 %1922, %v1264_v8  }
 0xab1   : > { %1924 = vset.pattern.permute.xlu1 %v3410_v60 }
 0xab2   : > { %1461 = vperm.xlu1 %1924, %v1264_v8  }
 0xaea   : > { %v1376_v15 = vpop.permute.xlu1 %1375 }
 0xaeb   : > { %v1382_v60 = vmul.f32 %v3068_v9, %v1376_v15 }
 0xaed   : > { %v1466_v50 = vadd.f32 %v1382_v60, %v3450_v31 }
 0xaef   : > { %v1345_v52 = vpop.permute.xlu1 %1344 }
 0xaf0   : > { %v1352_v54 = vmul.f32 %v3098_v17, %v1345_v52 }
 0xaf3   : > { %v1350_v4 = vpop.permute.xlu1 %1349  ;;  %v1380_v20 = vpop.permute.xlu0 %1379 }
 0xaf8   : > { %v1360_v29 = vpop.permute.xlu1 %1359  ;;  %v1356_v22 = vpop.permute.xlu0 %1355 }
 0xaf9   : > { %v1362_v61 = vmul.f32 %v3449_v16, %v1356_v22  ;;  %v1383_v16 = vmul.f32 %v3131_v3, %v1380_v20  ;;  %v1353_v3 = vmul.f32 %v3177_v36, %v1350_v4 }
 0xafb   : > { %v1467_v20 = vadd.f32 %v1383_v16, %v3419_v35 }
 0xafd   : > { %v1366_v49 = vpop.permute.xlu1 %1365  ;;  %v1370_v13 = vpop.permute.xlu0 %1369 }
 0xafe   : > { %v1372_v23 = vmul.f32 %v3451_v38, %v1366_v49 }
 0xb02   : > { %v1386_v47 = vpop.permute.xlu1 %1385  ;;  %v1396_v18 = vpop.permute.xlu0 %1395 }
 0xb03   : > { %v1392_v44 = vmul.f32 %v3074_v6, %v1386_v47  ;;  %v1402_v55 = vmul.f32 %v3080_v11, %v1396_v18  ;;  %v1373_v18 = vmul.f32 %v3151_v37, %v1370_v13 }
 0xb05   : > { %v1468_v2 = vadd.f32 %v1392_v44, %v1352_v54  ;;  %v1470_v6 = vadd.f32 %v1402_v55, %v1362_v61 }
 0xb06   : > { %v1390_v41 = vpop.permute.xlu1 %1389 }
 0xb0b   : > { %v1400_v5 = vpop.permute.xlu1 %1399 }
 0xb10   : > { %v1407_v0 = vpop.permute.xlu1 %1406 }
 0xb11   : > { %v1414_v24 = vmul.f32 %v3086_v34, %v1407_v0 }
 0xb13   : > { %v1472_v15 = vadd.f32 %v1414_v24, %v1372_v23 }
 0xb15   : > { %v1418_v63 = vpop.permute.xlu1 %1417 }
 0xb16   : > { %v1424_v43 = vmul.f32 %v3092_v48, %v1418_v63  ;;  %v1403_v63 = vmul.f32 %v3158_v32, %v1400_v5 }
 0xb18   : > { %v1474_v34 = vadd.f32 %v1466_v50, %v1424_v43 }
 0xb19   : > { %v1422_v39 = vpop.permute.xlu1 %1421  ;;  %v1412_v58 = vpop.permute.xlu0 %1411 }
 0xb1e   : > { %v1432_v10 = vpop.permute.xlu1 %1431  ;;  %v1428_v25 = vpop.permute.xlu0 %1427 }
 0xb1f   : > { %v1434_v9 = vmul.f32 %v3107_v12, %v1428_v25  ;;  %v1415_v12 = vmul.f32 %v3138_v59, %v1412_v58  ;;  %v1363_v59 = vmul.f32 %v3185_v62, %v1360_v29 }
 0xb21   : > { %v1476_v52 = vadd.f32 %v1468_v2, %v1434_v9  ;;  %v1473_v58 = vadd.f32 %v1415_v12, %v1373_v18  ;;  %v1471_v32 = vadd.f32 %v1403_v63, %v1363_v59 }
 0xb23   : > { %v1438_v57 = vpop.permute.xlu1 %1437  ;;  %v1442_v1 = vpop.permute.xlu0 %1441 }
 0xb24   : > { %v1444_v45 = vmul.f32 %v3113_v53, %v1438_v57  ;;  %v1393_v53 = vmul.f32 %v3144_v27, %v1390_v41  ;;  %v1435_v27 = vmul.f32 %v3192_v26, %v1432_v10  ;;  %v1445_v41 = vmul.f32 %v3199_v40, %v1442_v1 }
 0xb26   : > { %v1478_v31 = vadd.f32 %v1470_v6, %v1444_v45  ;;  %v1469_v60 = vadd.f32 %v1393_v53, %v1353_v3  ;;  %v1479_v36 = vadd.f32 %v1471_v32, %v1445_v41 }
 0xb28   : > { %v1448_v8 = vpop.permute.xlu1 %1447  ;;  %v1458_v11 = vpop.permute.xlu0 %1457  ;;  %v1477_v13 = vadd.f32 %v1469_v60, %v1435_v27 }
 0xb29   : > { %v1454_v48 = vmul.f32 %v3119_v21, %v1448_v8  ;;  %v1464_v17 = vmul.f32 %v3125_v56, %v1458_v11  ;;  %v1425_v21 = vmul.f32 %v3165_v46, %v1422_v39 }
 0xb2b   : > { %v1480_v47 = vadd.f32 %v1472_v15, %v1454_v48  ;;  %v1482_v38 = vadd.f32 %v1474_v34, %v1464_v17  ;;  %v1475_v5 = vadd.f32 %v1467_v20, %v1425_v21  ;;  %v1569_v17 = vld [vmem:[%s3344_s5 + $0x8] sm:$0xff] (%p43_p0) }
 0xb2c   : > { %v1452_v49 = vpop.permute.xlu1 %1451 }
 0xb2d   : > { %v1486_v22 = vadd.f32 %v1480_v47, %v1478_v31  ;;  %v1484_v0 = vadd.f32 %v1482_v38, %v1476_v52  ;;  %v1455_v56 = vmul.f32 %v3171_v14, %v1452_v49  ;;  %v1725_v38 = vld [vmem:[#allocation2] ss:$0 sm:$0xff] (%p43_p0) }
 0xb2f   : > { %v1488_v25 = vadd.f32 %v1486_v22, %v1484_v0  ;;  %v1481_v46 = vadd.f32 %v1473_v58, %v1455_v56 }
 0xb31   : > { %2069 = vtanh.f32 %v1488_v25  ;;  %v1462_v37 = vpop.permute.xlu1 %1461  ;;  %v1487_v35 = vadd.f32 %v1481_v46, %v1479_v36  ;;  %v1723_v40 = vmul.f32 -1.442695, %v1488_v25 }
 0xb32   : > { %v1465_v14 = vmul.f32 %v3205_v19, %v1462_v37 }
 0xb34   : > { %v1483_v4 = vadd.f32 %v1475_v5, %v1465_v14 }
 0xb36   : > { %v1485_v39 = vadd.f32 %v1483_v4, %v1477_v13 }
 0xb38   : > { %v1489_v57 = vadd.f32 %v1487_v35, %v1485_v39 }
 0xb3a   : > { %2071 = vtanh.f32 %v1489_v57  ;;  %v1724_v29 = vmul.f32 -1.442695, %v1489_v57 }
 0xb3b   : > { %v2070_v62 = vpop.eup %2069  ;;  %2073 = vpow2.f32 %v1723_v40 }
 0xb3c   : > { %1508 = vrot.lane.b32.xlu1 %v2070_v62, %s2207_s24  ;;  %2075 = vpow2.f32 %v1724_v29 }
 0xb44   : > { %v2072_v26 = vpop.eup %2071 }
 0xb45   : > { %1510 = vrot.lane.b32.xlu0 %v2072_v26, %s2207_s24  ;;  %v2074_v10 = vpop.eup %2073  ;;  %s2215_s24 = smov 112  }
 0xb46   : > { %v1496_v1 = vadd.f32 1.0, %v2074_v10  ;;  %v2076_v19 = vpop.eup %2075 }
 0xb47   : > { %v1497_v44 = vadd.f32 1.0, %v2076_v19 }
 0xb48   : > { %2077 = vrcp.f32 %v1496_v1 }
 0xb49   : > { %2079 = vrcp.f32 %v1497_v44 }
 0xb52   : > { %v2078_v55 = vpop.eup %2077 }
 0xb53   : > { %v2080_v54 = vpop.eup %2079  ;;  %v1504_v23 = vmul.f32 %v2078_v55, %v3227_v42 }
 0xb54   : > { %v1505_v2 = vmul.f32 %v2080_v54, %v3231_v33 }
 0xbae   : > { %v1509_v24 = vpop.permute.xlu1 %1508 }
 0xbaf   : > { %v1514_v43 = vmul.f32 %v2078_v55, %v1509_v24 }
 0xbb1   : > { %1518 = vrot.lane.b32.xlu1 %v1514_v43, %s2208_s25 }
 0xbb7   : > { %v1511_v61 = vpop.permute.xlu0 %1510 }
 0xbb8   : > { %v1515_v50 = vmul.f32 %v2080_v54, %v1511_v61 }
 0xbba   : > { %1520 = vrot.lane.b32.xlu0 %v1515_v50, %s2208_s25 }
 0xc23   : > { %v1519_v9 = vpop.permute.xlu1 %1518 }
 0xc24   : > { %v1524_v45 = vadd.f32 %v1519_v9, %v1504_v23 }
 0xc26   : > { %2081 = vtanh.f32 %v1524_v45 }
 0xc2c   : > { %v1521_v6 = vpop.permute.xlu0 %1520 }
 0xc2d   : > { %v1525_v8 = vadd.f32 %v1521_v6, %v1505_v2 }
 0xc2f   : > { %2083 = vtanh.f32 %v1525_v8 }
 0xc30   : > { %v2082_v11 = vpop.eup %2081 }
 0xc31   : > { %1530 = vrot.lane.b32.xlu1 %v2082_v11, %s2208_s25 }
 0xc35   : > { %1538 = vrot.lane.b32.xlu1 %v3236_v51, %s2215_s24 }
 0xc39   : > { %v2084_v15 = vpop.eup %2083  ;;  %1546 = vrot.lane.b32.xlu1 %v3217_v28, %s2216_s6 }
 0xc3a   : > { %1532 = vrot.lane.b32.xlu0 %v2084_v15, %s2208_s25 }
 0xc3e   : > { %1540 = vrot.lane.b32.xlu0 %v3241_v30, %s2215_s24  ;;  %v1568_v30 = vld [vmem:[%s3344_s5] sm:$0xff] (%p43_p0) }
 0xc42   : > { %1548 = vrot.lane.b32.xlu0 %v3221_v7, %s2216_s6 }
 0xca3   : > { %v1531_v42 = vpop.permute.xlu1 %1530 }
 0xca4   : > { %v1536_v33 = vmul.f32 %v2078_v55, %v1531_v42 }
 0xca6   : > { %1554 = vrot.lane.b32.xlu1 %v1536_v33, %s2215_s24 }
 0xca7   : > { %v1539_v3 = vpop.permute.xlu1 %1538  }
 0xcaa   : > { %1562 = vrot.lane.b32.xlu1 %v1524_v45, %s2216_s6 }
 0xcab   : > { %v1547_v5 = vpop.permute.xlu1 %1546  }
 0xcac   : > { %v1533_v34 = vpop.permute.xlu0 %1532 }
 0xcad   : > { %v1537_v48 = vmul.f32 %v2080_v54, %v1533_v34 }
 0xcaf   : > { %1556 = vrot.lane.b32.xlu0 %v1537_v48, %s2215_s24 }
 0xcb0   : > { %v1541_v4 = vpop.permute.xlu0 %1540  }
 0xcb3   : > { %1564 = vrot.lane.b32.xlu0 %v1525_v8, %s2216_s6 }
 0xcb4   : > { %v1549_v6 = vpop.permute.xlu0 %1548  }
 0xd18   : > { %v1555_v51 = vpop.permute.xlu1 %1554  }
 0xd19   : > { %v3453_v7 = vmov %v1555_v51  ;;  %v1570_v16 = vmul.f32 (%p43_p0), %v1568_v30, %v1555_v51 }
 0xd1b   :  { %v1573_v31 = vsel (%p43_p0), %vm1572_vm0, %v1570_v16, 0.0 }
 0xd1c   : > { %v1563_v9 = vpop.permute.xlu1 %1562   ;;  %1574 = vadd.xlane.f32.xlu0 (%p43_p0), %v1573_v31 }
 0xd1f   :  { %45 = sbr.rel (!%p43_p0) target bundleno = 5 (0x5), region = 79 }
 0xd21   : > { %v1557_v28 = vpop.permute.xlu0 %1556  }
 0xd22   : > { %v3452_v8 = vmov %v1557_v28  ;;  %v1571_v52 = vmul.f32 (%p43_p0), %v1569_v17, %v1557_v28 }
 0xd24   :  { %v1576_v47 = vsel (%p43_p0), %vm1572_vm0, %v1571_v52, 0.0 }
 0xd25   : > { %v1565_v10 = vpop.permute.xlu0 %1564   ;;  %1577 = vadd.xlane.f32.xlu0 (%p43_p0), %v1576_v47 }
 0xda9   :  { %v1575_v12 = vpop.xlane.xlu0 %1574 }
 0xdaa   :  { %v1586_v49 = vadd.f32 %v1725_v38, %v1575_v12 }
 0xdac   :  { %v1726_v53 = vmul.f32 -1.442695, %v1586_v49 }
 0xdae   :  { %2121 = vpow2.f32 %v1726_v53 }
 0xdb2   :  { %v1578_v22 = vpop.xlane.xlu0 %1577 }
 0xdb3   :  { %v1587_v7 = vadd.f32 %v1725_v38, %v1578_v22 }
 0xdb5   :  { %v1727_v0 = vmul.f32 -1.442695, %v1587_v7 }
 0xdb7   :  { %2123 = vpow2.f32 %v1727_v0 }
 0xdb8   :  { %v2122_v18 = vpop.eup %2121 }
 0xdb9   :  { %v1594_v63 = vadd.f32 1.0, %v2122_v18 }
 0xdbb   :  { %2125 = vrcp.f32 %v1594_v63 }
 0xdc1   :  { %v2124_v21 = vpop.eup %2123 }
 0xdc2   :  { %v1595_v56 = vadd.f32 1.0, %v2124_v21 }
 0xdc4   :  { %2127 = vrcp.f32 %v1595_v56 }
 0xdc5   :  { %v2126_v3 = vpop.eup %2125 }
 0xdc6   :  { %1601 = vst.msk [vmem:[%s3346_s7] sm:$0xff] %vm1600_vm1, %v2126_v3 }
 0xdce   :  { %v2128_v20 = vpop.eup %2127 }
 0xdcf   :  { %1602 = vst.msk [vmem:[%s3346_s7 + $0x8] sm:$0xff] %vm1600_vm1, %v2128_v20 }

</bundles_post_ra>
